<compile_context>
chip_gen: v7x
topology: tpu7x:2x2x1
jax: 0.10.0
libtpu: 0.0.40
codegen_flags: <defaults>
</compile_context>

<pallas_src>
import functools

import jax
import jax.numpy as jnp
from jax import lax
from jax.experimental import pallas as pl
from jax.experimental.pallas import tpu as pltpu


# ---------------------------------------------------------------------------
# Pallas kernel: full invariant slot-attention forward for one batch block.
# ---------------------------------------------------------------------------
def _slot_attn_kernel(
    feat_ref,       # (bb, N, Df)
    posk_ref,       # (bb, N, 4)   token-major columns [gx, gy, gx^2, gy^2]
    grid_ref,       # (bb, 2, N)   lane-major rows: x, y (for final |rel| only)
    cond_ref,       # (bb, K, Do)
    wqa_ref,        # (Do, D+2)    dot_scale * [wq | wq@wpos_x^T | wq@wpos_y^T]
    wk_ref,         # (Df, D)
    wv_ref,         # (Df, D)
    wgru_ref,       # (D+2+Do+1, 6*Do)  fused GRU weight (see wrapper)
    lnf_ref,        # (2, Df)      rows: gamma, beta
    lns_ref,        # (2, Do)      rows: gamma, beta
    slots_out_ref,  # (bb, K, SLOT_PAD)  [slots | px py sx sy | 0-pad]
    kn_out_ref,     # (bb, K, 2*N)       [attn | rel_abs_sum]
    *,
    iters: int,
    eps: float,
    scale_factor: float,
    num_slots: int,
    kvq_dim: int,
    object_dim: int,
    slot_pad: int,
):
    K = num_slots
    D = kvq_dim
    Do = object_dim

    f = feat_ref[...]                        # (bb, N, Df)
    bb, N, _ = f.shape
    posk = posk_ref[...]                     # (bb, N, 4)
    gx = grid_ref[:, 0:1, :]                 # (bb, 1, N)
    gy = grid_ref[:, 1:2, :]
    slots0 = cond_ref[...]                   # (bb, K, Do)

    lnf_g = lnf_ref[0:1, :]
    lnf_b = lnf_ref[1:2, :]
    lns_g = lns_ref[0:1, :]
    lns_b = lns_ref[1:2, :]

    # Broadcast the (tiny) shared weights once so every per-iteration matmul is
    # a plain batched contraction (the pattern Mosaic handles natively); all
    # broadcasts are hoisted out of the iteration loop.
    wqa_full = wqa_ref[...]
    wgru_full = wgru_ref[...]
    wk_full = wk_ref[...]
    wv_full = wv_ref[...]
    wqa_b = jnp.broadcast_to(wqa_full, (bb,) + wqa_full.shape)      # (bb, Do, D+2)
    wgru_b = jnp.broadcast_to(wgru_full, (bb,) + wgru_full.shape)   # (bb, C, 6Do)
    wk_b = jnp.broadcast_to(wk_full, (bb,) + wk_full.shape)
    wv_b = jnp.broadcast_to(wv_full, (bb,) + wv_full.shape)

    # ---- input layer norm + shared k / v projections (done once) -----------
    mu = jnp.mean(f, axis=-1, keepdims=True)
    var = jnp.mean((f - mu) ** 2, axis=-1, keepdims=True)
    f_ln = (f - mu) * lax.rsqrt(var + 1e-5) * lnf_g + lnf_b

    # TODO(synk): for very large N*Df on v6e/v7x, cast matmul operands to bf16
    # (preferred_element_type=f32) and set vmem_limit_bytes; unneeded here.
    k_base = jnp.einsum('bnf,bfd->bnd', f_ln, wk_b,
                        preferred_element_type=jnp.float32)          # (bb, N, D)
    v_base = jnp.einsum('bnf,bfd->bnd', f_ln, wv_b,
                        preferred_element_type=jnp.float32)          # (bb, N, D)

    ones_n = jnp.ones((bb, N, 1), jnp.float32)
    # dots contraction operand:    [k | gx | gy | 1]            -> (bb, N, D+3)
    k_aug = jnp.concatenate([k_base, posk[..., 0:2], ones_n], axis=-1)
    # moments contraction operand: [v | gx | gy | gx^2 | gy^2]  -> (bb, N, D+4)
    v_aug = jnp.concatenate([v_base, posk], axis=-1)

    ones_k = jnp.ones((bb, K, 1), jnp.float32)

    def step(carry):
        slots, px, py, sx, sy = carry        # slots (bb,K,Do); pos/scale (bb,K,1)

        # ---- slot layer norm + q projection (scale + q·wpos fused into wqa) --
        smu = jnp.mean(slots, axis=-1, keepdims=True)
        svar = jnp.mean((slots - smu) ** 2, axis=-1, keepdims=True)
        slots_ln = (slots - smu) * lax.rsqrt(svar + 1e-5) * lns_g + lns_b
        q_ext = jnp.einsum('bko,boe->bke', slots_ln, wqa_b,
                           preferred_element_type=jnp.float32)       # (bb,K,D+2)
        q = q_ext[..., :D]
        qpx = q_ext[..., D:D + 1]
        qpy = q_ext[..., D + 1:D + 2]

        inv_sx = 1.0 / (sx * scale_factor)   # (bb,K,1)
        inv_sy = 1.0 / (sy * scale_factor)

        # dots = q·k + qpx*rel_x + qpy*rel_y, folded into one MXU contraction:
        cx = qpx * inv_sx
        cy = qpy * inv_sy
        c1 = -(cx * px + cy * py)
        q_full = jnp.concatenate([q, cx, cy, c1], axis=-1)           # (bb,K,D+3)
        dots = jnp.einsum('bke,bne->bkn', q_full, k_aug,
                          preferred_element_type=jnp.float32)        # (bb,K,N)

        # ---- attention: softmax over the slot axis ---------------------------
        m = jnp.max(dots, axis=1, keepdims=True)
        e = jnp.exp(dots - m)
        attn = e * pl.reciprocal(jnp.sum(e, axis=1, keepdims=True), approx=True)

        # token-weight normalization (use_weighted_avg=True); exact reciprocal so
        # sum(wts) == 1, which the algebraic moment identities below rely on.
        attn_eps = attn + eps
        wts = attn_eps * (1.0 / jnp.sum(attn_eps, axis=2, keepdims=True))

        # ---- one matmul delivers the value update and ALL token moments ------
        mom = jnp.einsum('bkn,bne->bke', wts, v_aug,
                         preferred_element_type=jnp.float32)         # (bb,K,D+4)
        upd_base = mom[..., :D]
        new_px = mom[..., D:D + 1]
        new_py = mom[..., D + 1:D + 2]
        ex2 = mom[..., D + 2:D + 3]
        ey2 = mom[..., D + 3:D + 4]
        new_sx = jnp.sqrt(jnp.maximum(ex2 - new_px * new_px, 0.0) + eps)
        new_sy = jnp.sqrt(jnp.maximum(ey2 - new_py * new_py, 0.0) + eps)

        # s_r = sum_n(wts * rel) = inv_s * (new_p - p)   (since sum(wts) == 1)
        s_rx = inv_sx * (new_px - px)
        s_ry = inv_sy * (new_py - py)

        # ---- fused GRU cell: [upd | s_rx | s_ry | slots | 1] @ W_gru ----------
        # W_gru carries w_ih, wpos@w_ih (positional update term), w_hh and both
        # biases in one block-structured matrix (built in the wrapper).
        x_cat = jnp.concatenate([upd_base, s_rx, s_ry, slots, ones_k], axis=-1)
        gigh = jnp.einsum('bkc,bcd->bkd', x_cat, wgru_b,
                          preferred_element_type=jnp.float32)        # (bb,K,6Do)
        gi = gigh[..., :3 * Do]
        gh = gigh[..., 3 * Do:]
        r = jax.nn.sigmoid(gi[..., :Do] + gh[..., :Do])
        z = jax.nn.sigmoid(gi[..., Do:2 * Do] + gh[..., Do:2 * Do])
        n = jnp.tanh(gi[..., 2 * Do:] + r * gh[..., 2 * Do:])
        new_slots = (1.0 - z) * n + z * slots
        # TODO(synk): ff_mlp=None in this config; a residual MLP would apply here.

        return (new_slots, new_px, new_py, new_sx, new_sy), attn

    init = (
        slots0,
        jnp.zeros((bb, K, 1), jnp.float32), jnp.zeros((bb, K, 1), jnp.float32),
        jnp.ones((bb, K, 1), jnp.float32), jnp.ones((bb, K, 1), jnp.float32),
    )
    # First (iters-1) iterations carry only the 5-tuple of slot state; the last
    # iteration is peeled so attn never lives in the loop carry.
    carry = lax.fori_loop(0, iters - 1, lambda _, c: step(c)[0], init, unroll=True)
    (slots, px, py, sx, sy), attn = step(carry)

    # final relative grid under the last pos/scale, reported as |.|.sum(-1)
    inv_sx = 1.0 / (sx * scale_factor)
    inv_sy = 1.0 / (sy * scale_factor)
    rel_abs = jnp.abs((gx - px) * inv_sx) + jnp.abs((gy - py) * inv_sy)   # (bb,K,N)

    # ---- lane-dense packed stores -------------------------------------------
    parts = [slots, px, py, sx, sy]
    if slot_pad > Do + 4:
        parts.append(jnp.zeros((bb, K, slot_pad - Do - 4), jnp.float32))
    slots_out_ref[...] = jnp.concatenate(parts, axis=-1)               # (bb,K,slot_pad)
    kn_out_ref[...] = jnp.concatenate([attn, rel_abs], axis=-1)        # (bb,K,2N)


# ---------------------------------------------------------------------------
# Wrapper (glue): parameter packing/fusion, BlockSpecs, output split.
# ---------------------------------------------------------------------------
def slot_attention_grouping_inv_trans_scale(
    features,       # (B, N, Df)
    positions,      # (B, N, 2)
    conditioning,   # (B, K, Do)
    params,
    *,
    iters=3,
    eps=1e-8,
    scale_factor=5.0,
    batch_block_size=None,
):
    B, N, Df = features.shape
    _, K, Do = conditioning.shape
    D = params["wq"].shape[1]
    slot_pad = ((Do + 4 + 127) // 128) * 128   # 128-lane padded slot slab
    f32 = jnp.float32

    if batch_block_size is None:
        # One grid step for the whole batch: optimal on single-TC v5e/v6e
        # (~0.35 us pipeline overhead per extra step). On v7x (2 TensorCores,
        # B >= 2 and even) pass batch_block_size=B//2 to use both cores.
        batch_block_size = B
    assert B % batch_block_size == 0, "batch_block_size must divide batch"
    bb = batch_block_size
    nb = B // bb
    # TODO(synk): if N is not a multiple of 64, pad tokens (mask with -inf
    # before softmax) in the wrapper to keep lane-dense tiles/stores.

    # token-major [gx, gy, gx^2, gy^2] and lane-major (2, N) coordinate layouts
    gxw = positions[..., 0].astype(f32)
    gyw = positions[..., 1].astype(f32)
    pos_aug = jnp.stack([gxw, gyw, gxw * gxw, gyw * gyw], axis=-1)        # (B, N, 4)
    grid_lm = jnp.transpose(positions, (0, 2, 1)).astype(f32)             # (B, 2, N)

    # q projection augmented with q·wpos columns; dot_scale folded in.
    dot_scale = float(D) ** -0.5
    wq, wpos = params["wq"].astype(f32), params["wpos"].astype(f32)
    wq_aug = dot_scale * jnp.concatenate([wq, wq @ wpos.T], axis=1)       # (Do, D+2)

    # fused GRU weight: rows = [w_ih | wpos@w_ih | w_hh | bias], cols = [gi | gh]
    w_ih, w_hh = params["w_ih"].astype(f32), params["w_hh"].astype(f32)
    b_ih, b_hh = params["b_ih"].astype(f32), params["b_hh"].astype(f32)
    C = D + 2 + Do + 1
    w_gru = jnp.zeros((C, 6 * Do), f32)
    w_gru = w_gru.at[:D, :3 * Do].set(w_ih)
    w_gru = w_gru.at[D:D + 2, :3 * Do].set(wpos @ w_ih)
    w_gru = w_gru.at[D + 2:D + 2 + Do, 3 * Do:].set(w_hh)
    w_gru = w_gru.at[C - 1:C, :3 * Do].set(b_ih)
    w_gru = w_gru.at[C - 1:C, 3 * Do:].set(b_hh)

    lnf = jnp.concatenate([params["lnf_g"], params["lnf_b"]], axis=0)     # (2, Df)
    lns = jnp.concatenate([params["lns_g"], params["lns_b"]], axis=0)     # (2, Do)

    kernel = functools.partial(
        _slot_attn_kernel,
        iters=iters, eps=eps, scale_factor=scale_factor,
        num_slots=K, kvq_dim=D, object_dim=Do, slot_pad=slot_pad,
    )

    def full(shape):
        return pl.BlockSpec(shape, lambda b, _n=len(shape): (0,) * _n)

    in_specs = [
        pl.BlockSpec((bb, N, Df), lambda b: (b, 0, 0)),
        pl.BlockSpec((bb, N, 4), lambda b: (b, 0, 0)),
        pl.BlockSpec((bb, 2, N), lambda b: (b, 0, 0)),
        pl.BlockSpec((bb, K, Do), lambda b: (b, 0, 0)),
        full((Do, D + 2)),        # wq_aug
        full((Df, D)),            # wk
        full((Df, D)),            # wv
        full((C, 6 * Do)),        # fused GRU weight (+wpos rows, +biases)
        full((2, Df)),            # [lnf_g; lnf_b]
        full((2, Do)),            # [lns_g; lns_b]
    ]
    out_specs = [
        pl.BlockSpec((bb, K, slot_pad), lambda b: (b, 0, 0)),
        pl.BlockSpec((bb, K, 2 * N), lambda b: (b, 0, 0)),
    ]
    out_shape = (
        jax.ShapeDtypeStruct((B, K, slot_pad), f32),
        jax.ShapeDtypeStruct((B, K, 2 * N), f32),
    )

    slots_padded, kn = pl.pallas_call(
        kernel,
        out_shape=out_shape,
        grid=(nb,),
        in_specs=in_specs,
        out_specs=out_specs,
        compiler_params=pltpu.CompilerParams(dimension_semantics=("parallel",)),
    )(
        features.astype(f32), pos_aug, grid_lm, conditioning.astype(f32),
        wq_aug, params["wk"].astype(f32), params["wv"].astype(f32),
        w_gru, lnf, lns,
    )

    # forward() of the grouping module: split object / position slots.
    object_slots = slots_padded[..., :Do]
    position_slots = slots_padded[..., Do:Do + 4]
    attn = kn[..., :N]
    rel_pos_grid = kn[..., N:]
    # TODO(synk): slot_mask / use_empty_slot_for_masked_slots path not exercised
    # (slot_mask=None in this config).
    return {
        "objects": object_slots,
        "positions": position_slots,
        "feature_attributions": attn,
        "is_empty": None,
        "rel_pos_grid": rel_pos_grid,
    }


def make_params(key, feature_dim, object_dim, kvq_dim):
    ks = jax.random.split(key, 8)
    s = 0.02
    return {
        "wq": s * jax.random.normal(ks[0], (object_dim, kvq_dim), jnp.float32),
        "wk": s * jax.random.normal(ks[1], (feature_dim, kvq_dim), jnp.float32),
        "wv": s * jax.random.normal(ks[2], (feature_dim, kvq_dim), jnp.float32),
        "wpos": s * jax.random.normal(ks[3], (2, kvq_dim), jnp.float32),
        "w_ih": s * jax.random.normal(ks[4], (kvq_dim, 3 * object_dim), jnp.float32),
        "w_hh": s * jax.random.normal(ks[5], (object_dim, 3 * object_dim), jnp.float32),
        "b_ih": jnp.zeros((1, 3 * object_dim), jnp.float32),
        "b_hh": jnp.zeros((1, 3 * object_dim), jnp.float32),
        "lnf_g": jnp.ones((1, feature_dim), jnp.float32),
        "lnf_b": jnp.zeros((1, feature_dim), jnp.float32),
        "lns_g": jnp.ones((1, object_dim), jnp.float32),
        "lns_b": jnp.zeros((1, object_dim), jnp.float32),
    }


if __name__ == "__main__":
    B, H, W = 2, 8, 8
    N = H * W
    feature_dim = 32
    object_dim = 32
    kvq_dim = 32
    K = 8  # number of slots

    key = jax.random.PRNGKey(0)
    k_feat, k_cond, k_par = jax.random.split(key, 3)

    features = jax.random.normal(k_feat, (B, N, feature_dim), jnp.float32)
    conditioning = jax.random.normal(k_cond, (B, K, object_dim), jnp.float32)

    # absolute position grid in [-1, 1] (the module builds this from H, W).
    xs = jnp.linspace(-1.0, 1.0, W)
    ys = jnp.linspace(-1.0, 1.0, H)
    gy, gx = jnp.meshgrid(ys, xs, indexing="ij")
    agrid = jnp.stack([gx, gy], axis=-1).reshape(N, 2).astype(jnp.float32)
    positions = jnp.broadcast_to(agrid[None], (B, N, 2))

    params = make_params(k_par, feature_dim, object_dim, kvq_dim)

    out = slot_attention_grouping_inv_trans_scale(
        features, positions, conditioning, params,
        iters=3, eps=1e-8, scale_factor=5.0,
    )
    jax.block_until_ready(out["objects"])
    jax.block_until_ready(out["positions"])
    jax.block_until_ready(out["feature_attributions"])
    jax.block_until_ready(out["rel_pos_grid"])

    assert out["objects"].shape == (B, K, object_dim)
    assert out["positions"].shape == (B, K, 4)
    assert out["feature_attributions"].shape == (B, K, N)
    assert out["rel_pos_grid"].shape == (B, K, N)
    assert bool(jnp.all(jnp.isfinite(out["objects"])))
    assert bool(jnp.all(jnp.isfinite(out["positions"])))
    assert bool(jnp.all(jnp.isfinite(out["feature_attributions"])))
    assert bool(jnp.all(jnp.isfinite(out["rel_pos_grid"])))
    print("KERNEL_OK")
</pallas_src>

<mosaic_0001>
module attributes {stable_mosaic.version = 11 : i64} {
  func.func @_slot_attn_kernel(%arg0: i32, %arg1: memref<2x64x32xf32, #tpu.memory_space<vmem>>, %arg2: memref<2x64x4xf32, #tpu.memory_space<vmem>>, %arg3: memref<2x2x64xf32, #tpu.memory_space<vmem>>, %arg4: memref<2x8x32xf32, #tpu.memory_space<vmem>>, %arg5: memref<32x34xf32, #tpu.memory_space<vmem>>, %arg6: memref<32x32xf32, #tpu.memory_space<vmem>>, %arg7: memref<32x32xf32, #tpu.memory_space<vmem>>, %arg8: memref<67x192xf32, #tpu.memory_space<vmem>>, %arg9: memref<2x32xf32, #tpu.memory_space<vmem>>, %arg10: memref<2x32xf32, #tpu.memory_space<vmem>>, %arg11: memref<2x8x128xf32, #tpu.memory_space<vmem>>, %arg12: memref<2x8x128xf32, #tpu.memory_space<vmem>>) attributes {dimension_semantics = [#tpu.dimension_semantics<parallel>], iteration_bounds = array<i64: 1>, scalar_prefetch = 0 : i64, scratch_operands = 0 : i64, tpu.core_type = #tpu.core_type<tc>, window_params = [{transform_indices = @transform_0, window_bounds = array<i64: 2, 64, 32>}, {transform_indices = @transform_1, window_bounds = array<i64: 2, 64, 4>}, {transform_indices = @transform_2, window_bounds = array<i64: 2, 2, 64>}, {transform_indices = @transform_3, window_bounds = array<i64: 2, 8, 32>}, {pipeline_mode = #tpu.pipeline_mode<synchronous>, transform_indices = @transform_4, window_bounds = array<i64: 32, 34>}, {pipeline_mode = #tpu.pipeline_mode<synchronous>, transform_indices = @transform_5, window_bounds = array<i64: 32, 32>}, {pipeline_mode = #tpu.pipeline_mode<synchronous>, transform_indices = @transform_6, window_bounds = array<i64: 32, 32>}, {pipeline_mode = #tpu.pipeline_mode<synchronous>, transform_indices = @transform_7, window_bounds = array<i64: 67, 192>}, {pipeline_mode = #tpu.pipeline_mode<synchronous>, transform_indices = @transform_8, window_bounds = array<i64: 2, 32>}, {pipeline_mode = #tpu.pipeline_mode<synchronous>, transform_indices = @transform_9, window_bounds = array<i64: 2, 32>}, {transform_indices = @transform_10, window_bounds = array<i64: 2, 8, 128>}, {transform_indices = @transform_11, window_bounds = array<i64: 2, 8, 128>}]} {
    %c0 = arith.constant 0 : index
    %c0_0 = arith.constant 0 : index
    %c0_1 = arith.constant 0 : index
    %0 = vector.load %arg1[%c0, %c0_0, %c0_1] : memref<2x64x32xf32, #tpu.memory_space<vmem>>, vector<2x64x32xf32>
    %c0_2 = arith.constant 0 : index
    %c0_3 = arith.constant 0 : index
    %c0_4 = arith.constant 0 : index
    %1 = vector.load %arg2[%c0_2, %c0_3, %c0_4] : memref<2x64x4xf32, #tpu.memory_space<vmem>>, vector<2x64x4xf32>
    %c0_5 = arith.constant 0 : index
    %c0_6 = arith.constant 0 : index
    %c0_7 = arith.constant 0 : index
    %2 = vector.load %arg3[%c0_5, %c0_6, %c0_7] : memref<2x2x64xf32, #tpu.memory_space<vmem>>, vector<2x1x64xf32>
    %c0_8 = arith.constant 0 : index
    %c1 = arith.constant 1 : index
    %c0_9 = arith.constant 0 : index
    %3 = vector.load %arg3[%c0_8, %c1, %c0_9] : memref<2x2x64xf32, #tpu.memory_space<vmem>>, vector<2x1x64xf32>
    %c0_10 = arith.constant 0 : index
    %c0_11 = arith.constant 0 : index
    %c0_12 = arith.constant 0 : index
    %4 = vector.load %arg4[%c0_10, %c0_11, %c0_12] : memref<2x8x32xf32, #tpu.memory_space<vmem>>, vector<2x8x32xf32>
    %c0_13 = arith.constant 0 : index
    %c0_14 = arith.constant 0 : index
    %5 = vector.load %arg9[%c0_13, %c0_14] : memref<2x32xf32, #tpu.memory_space<vmem>>, vector<1x32xf32>
    %c1_15 = arith.constant 1 : index
    %c0_16 = arith.constant 0 : index
    %6 = vector.load %arg9[%c1_15, %c0_16] : memref<2x32xf32, #tpu.memory_space<vmem>>, vector<1x32xf32>
    %c0_17 = arith.constant 0 : index
    %c0_18 = arith.constant 0 : index
    %7 = vector.load %arg10[%c0_17, %c0_18] : memref<2x32xf32, #tpu.memory_space<vmem>>, vector<1x32xf32>
    %c1_19 = arith.constant 1 : index
    %c0_20 = arith.constant 0 : index
    %8 = vector.load %arg10[%c1_19, %c0_20] : memref<2x32xf32, #tpu.memory_space<vmem>>, vector<1x32xf32>
    %c0_21 = arith.constant 0 : index
    %c0_22 = arith.constant 0 : index
    %9 = vector.load %arg5[%c0_21, %c0_22] : memref<32x34xf32, #tpu.memory_space<vmem>>, vector<32x34xf32>
    %c0_23 = arith.constant 0 : index
    %c0_24 = arith.constant 0 : index
    %10 = vector.load %arg8[%c0_23, %c0_24] : memref<67x192xf32, #tpu.memory_space<vmem>>, vector<67x192xf32>
    %c0_25 = arith.constant 0 : index
    %c0_26 = arith.constant 0 : index
    %11 = vector.load %arg6[%c0_25, %c0_26] : memref<32x32xf32, #tpu.memory_space<vmem>>, vector<32x32xf32>
    %c0_27 = arith.constant 0 : index
    %c0_28 = arith.constant 0 : index
    %12 = vector.load %arg7[%c0_27, %c0_28] : memref<32x32xf32, #tpu.memory_space<vmem>>, vector<32x32xf32>
    %13 = vector.shape_cast %9 : vector<32x34xf32> to vector<1x32x34xf32>
    %14 = vector.broadcast %13 : vector<1x32x34xf32> to vector<2x32x34xf32>
    %15 = vector.shape_cast %10 : vector<67x192xf32> to vector<1x67x192xf32>
    %16 = vector.broadcast %15 : vector<1x67x192xf32> to vector<2x67x192xf32>
    %17 = vector.shape_cast %11 : vector<32x32xf32> to vector<1x32x32xf32>
    %18 = vector.broadcast %17 : vector<1x32x32xf32> to vector<2x32x32xf32>
    %19 = vector.shape_cast %12 : vector<32x32xf32> to vector<1x32x32xf32>
    %20 = vector.broadcast %19 : vector<1x32x32xf32> to vector<2x32x32xf32>
    %cst = arith.constant dense<0.000000e+00> : vector<2x64xf32>
    %21 = vector.multi_reduction <add>, %0, %cst [2] : vector<2x64x32xf32> to vector<2x64xf32>
    %22 = vector.shape_cast %21 : vector<2x64xf32> to vector<2x64x1xf32>
    %cst_29 = arith.constant 3.200000e+01 : f32
    %23 = vector.broadcast %cst_29 : f32 to vector<2x64x1xf32>
    %24 = arith.divf %22, %23 : vector<2x64x1xf32>
    %25 = vector.broadcast %24 : vector<2x64x1xf32> to vector<2x64x32xf32>
    %26 = arith.subf %0, %25 : vector<2x64x32xf32>
    %27 = arith.mulf %26, %26 : vector<2x64x32xf32>
    %cst_30 = arith.constant dense<0.000000e+00> : vector<2x64xf32>
    %28 = vector.multi_reduction <add>, %27, %cst_30 [2] : vector<2x64x32xf32> to vector<2x64xf32>
    %29 = vector.shape_cast %28 : vector<2x64xf32> to vector<2x64x1xf32>
    %cst_31 = arith.constant 3.200000e+01 : f32
    %30 = vector.broadcast %cst_31 : f32 to vector<2x64x1xf32>
    %31 = arith.divf %29, %30 : vector<2x64x1xf32>
    %32 = vector.broadcast %24 : vector<2x64x1xf32> to vector<2x64x32xf32>
    %33 = arith.subf %0, %32 : vector<2x64x32xf32>
    %cst_32 = arith.constant 9.99999974E-6 : f32
    %34 = vector.broadcast %cst_32 : f32 to vector<2x64x1xf32>
    %35 = arith.addf %31, %34 : vector<2x64x1xf32>
    %36 = math.rsqrt %35 : vector<2x64x1xf32>
    %37 = vector.broadcast %36 : vector<2x64x1xf32> to vector<2x64x32xf32>
    %38 = arith.mulf %33, %37 : vector<2x64x32xf32>
    %39 = vector.shape_cast %5 : vector<1x32xf32> to vector<1x1x32xf32>
    %40 = vector.broadcast %39 : vector<1x1x32xf32> to vector<2x64x32xf32>
    %41 = arith.mulf %38, %40 : vector<2x64x32xf32>
    %42 = vector.shape_cast %6 : vector<1x32xf32> to vector<1x1x32xf32>
    %43 = vector.broadcast %42 : vector<1x1x32xf32> to vector<2x64x32xf32>
    %44 = arith.addf %41, %43 : vector<2x64x32xf32>
    "tpu.trace_start"() <{level = 10 : i32, message = "bnf,bfd->bnd"}> : () -> ()
    %cst_33 = arith.constant dense<0.000000e+00> : vector<2x64x32xf32>
    %45 = tpu.matmul %44, %18, %cst_33 {dimension_numbers = #tpu.dot_dimension_numbers<[2], [1], [1], [2], [0, 0, 0, 1, 1, 2], [0], [0]>} : vector<2x64x32xf32>, vector<2x32x32xf32>, vector<2x64x32xf32> -> vector<2x64x32xf32>
    %cst_34 = arith.constant dense<0.000000e+00> : vector<2x64x32xf32>
    %46 = tpu.matmul %44, %20, %cst_34 {dimension_numbers = #tpu.dot_dimension_numbers<[2], [1], [1], [2], [0, 0, 0, 1, 1, 2], [0], [0]>} : vector<2x64x32xf32>, vector<2x32x32xf32>, vector<2x64x32xf32> -> vector<2x64x32xf32>
    %cst_35 = arith.constant 1.000000e+00 : f32
    "tpu.trace_stop"() : () -> ()
    %47 = vector.broadcast %cst_35 : f32 to vector<2x64x1xf32>
    %48 = vector.extract_strided_slice %1 {offsets = [0, 0, 0], sizes = [2, 64, 2], strides = [1, 1, 1]} : vector<2x64x4xf32> to vector<2x64x2xf32>
    %49 = tpu.concatenate %45, %48, %47 in 2 : vector<2x64x32xf32>, vector<2x64x2xf32>, vector<2x64x1xf32> -> vector<2x64x35xf32>
    %50 = tpu.concatenate %46, %1 in 2 : vector<2x64x32xf32>, vector<2x64x4xf32> -> vector<2x64x36xf32>
    %cst_36 = arith.constant 1.000000e+00 : f32
    %51 = vector.broadcast %cst_36 : f32 to vector<2x8x1xf32>
    %cst_37 = arith.constant 0.000000e+00 : f32
    %52 = vector.broadcast %cst_37 : f32 to vector<2x8x1xf32>
    %cst_38 = arith.constant 0.000000e+00 : f32
    %53 = vector.broadcast %cst_38 : f32 to vector<2x8x1xf32>
    %cst_39 = arith.constant 1.000000e+00 : f32
    %54 = vector.broadcast %cst_39 : f32 to vector<2x8x1xf32>
    %cst_40 = arith.constant 1.000000e+00 : f32
    %55 = vector.broadcast %cst_40 : f32 to vector<2x8x1xf32>
    %c0_i32 = arith.constant 0 : i32
    %cst_41 = arith.constant dense<0.000000e+00> : vector<2x8xf32>
    %56 = vector.multi_reduction <add>, %4, %cst_41 [2] : vector<2x8x32xf32> to vector<2x8xf32>
    %57 = vector.shape_cast %56 : vector<2x8xf32> to vector<2x8x1xf32>
    %cst_42 = arith.constant 3.200000e+01 : f32
    %58 = vector.broadcast %cst_42 : f32 to vector<2x8x1xf32>
    %59 = arith.divf %57, %58 : vector<2x8x1xf32>
    %60 = vector.broadcast %59 : vector<2x8x1xf32> to vector<2x8x32xf32>
    %61 = arith.subf %4, %60 : vector<2x8x32xf32>
    %62 = arith.mulf %61, %61 : vector<2x8x32xf32>
    %cst_43 = arith.constant dense<0.000000e+00> : vector<2x8xf32>
    %63 = vector.multi_reduction <add>, %62, %cst_43 [2] : vector<2x8x32xf32> to vector<2x8xf32>
    %64 = vector.shape_cast %63 : vector<2x8xf32> to vector<2x8x1xf32>
    %cst_44 = arith.constant 3.200000e+01 : f32
    %65 = vector.broadcast %cst_44 : f32 to vector<2x8x1xf32>
    %66 = arith.divf %64, %65 : vector<2x8x1xf32>
    %67 = vector.broadcast %59 : vector<2x8x1xf32> to vector<2x8x32xf32>
    %68 = arith.subf %4, %67 : vector<2x8x32xf32>
    %cst_45 = arith.constant 9.99999974E-6 : f32
    %69 = vector.broadcast %cst_45 : f32 to vector<2x8x1xf32>
    %70 = arith.addf %66, %69 : vector<2x8x1xf32>
    %71 = math.rsqrt %70 : vector<2x8x1xf32>
    %72 = vector.broadcast %71 : vector<2x8x1xf32> to vector<2x8x32xf32>
    %73 = arith.mulf %68, %72 : vector<2x8x32xf32>
    %74 = vector.shape_cast %7 : vector<1x32xf32> to vector<1x1x32xf32>
    %75 = vector.broadcast %74 : vector<1x1x32xf32> to vector<2x8x32xf32>
    %76 = arith.mulf %73, %75 : vector<2x8x32xf32>
    %77 = vector.shape_cast %8 : vector<1x32xf32> to vector<1x1x32xf32>
    %78 = vector.broadcast %77 : vector<1x1x32xf32> to vector<2x8x32xf32>
    %79 = arith.addf %76, %78 : vector<2x8x32xf32>
    "tpu.trace_start"() <{level = 10 : i32, message = "bko,boe->bke"}> : () -> ()
    %cst_46 = arith.constant dense<0.000000e+00> : vector<2x8x34xf32>
    %80 = tpu.matmul %79, %14, %cst_46 {dimension_numbers = #tpu.dot_dimension_numbers<[2], [1], [1], [2], [0, 0, 0, 1, 1, 2], [0], [0]>} : vector<2x8x32xf32>, vector<2x32x34xf32>, vector<2x8x34xf32> -> vector<2x8x34xf32>
    "tpu.trace_stop"() : () -> ()
    %81 = vector.extract_strided_slice %80 {offsets = [0, 0, 0], sizes = [2, 8, 32], strides = [1, 1, 1]} : vector<2x8x34xf32> to vector<2x8x32xf32>
    %82 = vector.extract_strided_slice %80 {offsets = [0, 0, 32], sizes = [2, 8, 1], strides = [1, 1, 1]} : vector<2x8x34xf32> to vector<2x8x1xf32>
    %83 = vector.extract_strided_slice %80 {offsets = [0, 0, 33], sizes = [2, 8, 1], strides = [1, 1, 1]} : vector<2x8x34xf32> to vector<2x8x1xf32>
    %cst_47 = arith.constant 5.000000e+00 : f32
    %84 = vector.broadcast %cst_47 : f32 to vector<2x8x1xf32>
    %85 = arith.mulf %54, %84 : vector<2x8x1xf32>
    %cst_48 = arith.constant 1.000000e+00 : f32
    %86 = vector.broadcast %cst_48 : f32 to vector<2x8x1xf32>
    %87 = arith.divf %86, %85 : vector<2x8x1xf32>
    %cst_49 = arith.constant 5.000000e+00 : f32
    %88 = vector.broadcast %cst_49 : f32 to vector<2x8x1xf32>
    %89 = arith.mulf %55, %88 : vector<2x8x1xf32>
    %cst_50 = arith.constant 1.000000e+00 : f32
    %90 = vector.broadcast %cst_50 : f32 to vector<2x8x1xf32>
    %91 = arith.divf %90, %89 : vector<2x8x1xf32>
    %92 = arith.mulf %82, %87 : vector<2x8x1xf32>
    %93 = arith.mulf %83, %91 : vector<2x8x1xf32>
    %94 = arith.mulf %92, %52 : vector<2x8x1xf32>
    %95 = arith.mulf %93, %53 : vector<2x8x1xf32>
    %96 = arith.addf %94, %95 : vector<2x8x1xf32>
    %cst_51 = arith.constant 0.000000e+00 : f32
    %97 = vector.broadcast %cst_51 : f32 to vector<2x8x1xf32>
    %98 = arith.subf %97, %96 : vector<2x8x1xf32>
    %99 = tpu.concatenate %81, %92, %93, %98 in 2 : vector<2x8x32xf32>, vector<2x8x1xf32>, vector<2x8x1xf32>, vector<2x8x1xf32> -> vector<2x8x35xf32>
    "tpu.trace_start"() <{level = 10 : i32, message = "bke,bne->bkn"}> : () -> ()
    %cst_52 = arith.constant dense<0.000000e+00> : vector<2x8x64xf32>
    %100 = tpu.matmul %99, %49, %cst_52 {dimension_numbers = #tpu.dot_dimension_numbers<[2], [2], [1], [1], [0, 0, 0, 1, 1, 1], [0], [0]>} : vector<2x8x35xf32>, vector<2x64x35xf32>, vector<2x8x64xf32> -> vector<2x8x64xf32>
    "tpu.trace_stop"() : () -> ()
    %cst_53 = arith.constant dense<0xFF800000> : vector<2x64xf32>
    %101 = vector.multi_reduction <maximumf>, %100, %cst_53 [1] : vector<2x8x64xf32> to vector<2x64xf32>
    %102 = vector.shape_cast %101 : vector<2x64xf32> to vector<2x1x64xf32>
    %103 = vector.broadcast %102 : vector<2x1x64xf32> to vector<2x8x64xf32>
    %104 = arith.subf %100, %103 : vector<2x8x64xf32>
    %105 = math.exp %104 : vector<2x8x64xf32>
    %cst_54 = arith.constant dense<0.000000e+00> : vector<2x64xf32>
    %106 = vector.multi_reduction <add>, %105, %cst_54 [1] : vector<2x8x64xf32> to vector<2x64xf32>
    %107 = vector.shape_cast %106 : vector<2x64xf32> to vector<2x1x64xf32>
    %108 = tpu.reciprocal %107 {approx = true} : vector<2x1x64xf32> -> vector<2x1x64xf32>
    %109 = vector.broadcast %108 : vector<2x1x64xf32> to vector<2x8x64xf32>
    %110 = arith.mulf %105, %109 : vector<2x8x64xf32>
    %cst_55 = arith.constant 9.99999993E-9 : f32
    %111 = vector.broadcast %cst_55 : f32 to vector<2x8x64xf32>
    %112 = arith.addf %110, %111 : vector<2x8x64xf32>
    %cst_56 = arith.constant dense<0.000000e+00> : vector<2x8xf32>
    %113 = vector.multi_reduction <add>, %112, %cst_56 [2] : vector<2x8x64xf32> to vector<2x8xf32>
    %114 = vector.shape_cast %113 : vector<2x8xf32> to vector<2x8x1xf32>
    %cst_57 = arith.constant 1.000000e+00 : f32
    %115 = vector.broadcast %cst_57 : f32 to vector<2x8x1xf32>
    %116 = arith.divf %115, %114 : vector<2x8x1xf32>
    %117 = vector.broadcast %116 : vector<2x8x1xf32> to vector<2x8x64xf32>
    %118 = arith.mulf %112, %117 : vector<2x8x64xf32>
    "tpu.trace_start"() <{level = 10 : i32, message = "bkn,bne->bke"}> : () -> ()
    %cst_58 = arith.constant dense<0.000000e+00> : vector<2x8x36xf32>
    %119 = tpu.matmul %118, %50, %cst_58 {dimension_numbers = #tpu.dot_dimension_numbers<[2], [1], [1], [2], [0, 0, 0, 1, 1, 2], [0], [0]>} : vector<2x8x64xf32>, vector<2x64x36xf32>, vector<2x8x36xf32> -> vector<2x8x36xf32>
    "tpu.trace_stop"() : () -> ()
    %120 = vector.extract_strided_slice %119 {offsets = [0, 0, 0], sizes = [2, 8, 32], strides = [1, 1, 1]} : vector<2x8x36xf32> to vector<2x8x32xf32>
    %121 = vector.extract_strided_slice %119 {offsets = [0, 0, 32], sizes = [2, 8, 1], strides = [1, 1, 1]} : vector<2x8x36xf32> to vector<2x8x1xf32>
    %122 = vector.extract_strided_slice %119 {offsets = [0, 0, 33], sizes = [2, 8, 1], strides = [1, 1, 1]} : vector<2x8x36xf32> to vector<2x8x1xf32>
    %123 = vector.extract_strided_slice %119 {offsets = [0, 0, 34], sizes = [2, 8, 1], strides = [1, 1, 1]} : vector<2x8x36xf32> to vector<2x8x1xf32>
    %124 = vector.extract_strided_slice %119 {offsets = [0, 0, 35], sizes = [2, 8, 1], strides = [1, 1, 1]} : vector<2x8x36xf32> to vector<2x8x1xf32>
    %125 = arith.mulf %121, %121 : vector<2x8x1xf32>
    %126 = arith.subf %123, %125 : vector<2x8x1xf32>
    %cst_59 = arith.constant 0.000000e+00 : f32
    %127 = vector.broadcast %cst_59 : f32 to vector<2x8x1xf32>
    %128 = arith.maximumf %126, %127 : vector<2x8x1xf32>
    %cst_60 = arith.constant 9.99999993E-9 : f32
    %129 = vector.broadcast %cst_60 : f32 to vector<2x8x1xf32>
    %130 = arith.addf %128, %129 : vector<2x8x1xf32>
    %131 = math.sqrt %130 : vector<2x8x1xf32>
    %132 = arith.mulf %122, %122 : vector<2x8x1xf32>
    %133 = arith.subf %124, %132 : vector<2x8x1xf32>
    %cst_61 = arith.constant 0.000000e+00 : f32
    %134 = vector.broadcast %cst_61 : f32 to vector<2x8x1xf32>
    %135 = arith.maximumf %133, %134 : vector<2x8x1xf32>
    %cst_62 = arith.constant 9.99999993E-9 : f32
    %136 = vector.broadcast %cst_62 : f32 to vector<2x8x1xf32>
    %137 = arith.addf %135, %136 : vector<2x8x1xf32>
    %138 = math.sqrt %137 : vector<2x8x1xf32>
    %139 = arith.subf %121, %52 : vector<2x8x1xf32>
    %140 = arith.mulf %87, %139 : vector<2x8x1xf32>
    %141 = arith.subf %122, %53 : vector<2x8x1xf32>
    %142 = arith.mulf %91, %141 : vector<2x8x1xf32>
    %143 = tpu.concatenate %120, %140, %142, %4, %51 in 2 : vector<2x8x32xf32>, vector<2x8x1xf32>, vector<2x8x1xf32>, vector<2x8x32xf32>, vector<2x8x1xf32> -> vector<2x8x67xf32>
    "tpu.trace_start"() <{level = 10 : i32, message = "bkc,bcd->bkd"}> : () -> ()
    %cst_63 = arith.constant dense<0.000000e+00> : vector<2x8x192xf32>
    %144 = tpu.matmul %143, %16, %cst_63 {dimension_numbers = #tpu.dot_dimension_numbers<[2], [1], [1], [2], [0, 0, 0, 1, 1, 2], [0], [0]>} : vector<2x8x67xf32>, vector<2x67x192xf32>, vector<2x8x192xf32> -> vector<2x8x192xf32>
    "tpu.trace_stop"() : () -> ()
    %145 = vector.extract_strided_slice %144 {offsets = [0, 0, 0], sizes = [2, 8, 96], strides = [1, 1, 1]} : vector<2x8x192xf32> to vector<2x8x96xf32>
    %146 = vector.extract_strided_slice %144 {offsets = [0, 0, 96], sizes = [2, 8, 96], strides = [1, 1, 1]} : vector<2x8x192xf32> to vector<2x8x96xf32>
    %147 = vector.extract_strided_slice %145 {offsets = [0, 0, 0], sizes = [2, 8, 32], strides = [1, 1, 1]} : vector<2x8x96xf32> to vector<2x8x32xf32>
    %148 = vector.extract_strided_slice %146 {offsets = [0, 0, 0], sizes = [2, 8, 32], strides = [1, 1, 1]} : vector<2x8x96xf32> to vector<2x8x32xf32>
    %149 = arith.addf %147, %148 : vector<2x8x32xf32>
    %150 = arith.negf %149 : vector<2x8x32xf32>
    %151 = math.exp %150 : vector<2x8x32xf32>
    %cst_64 = arith.constant 1.000000e+00 : f32
    %152 = vector.broadcast %cst_64 : f32 to vector<2x8x32xf32>
    %153 = arith.addf %152, %151 : vector<2x8x32xf32>
    %154 = arith.divf %152, %153 : vector<2x8x32xf32>
    %155 = vector.extract_strided_slice %145 {offsets = [0, 0, 32], sizes = [2, 8, 32], strides = [1, 1, 1]} : vector<2x8x96xf32> to vector<2x8x32xf32>
    %156 = vector.extract_strided_slice %146 {offsets = [0, 0, 32], sizes = [2, 8, 32], strides = [1, 1, 1]} : vector<2x8x96xf32> to vector<2x8x32xf32>
    %157 = arith.addf %155, %156 : vector<2x8x32xf32>
    %158 = arith.negf %157 : vector<2x8x32xf32>
    %159 = math.exp %158 : vector<2x8x32xf32>
    %cst_65 = arith.constant 1.000000e+00 : f32
    %160 = vector.broadcast %cst_65 : f32 to vector<2x8x32xf32>
    %161 = arith.addf %160, %159 : vector<2x8x32xf32>
    %162 = arith.divf %160, %161 : vector<2x8x32xf32>
    %163 = vector.extract_strided_slice %145 {offsets = [0, 0, 64], sizes = [2, 8, 32], strides = [1, 1, 1]} : vector<2x8x96xf32> to vector<2x8x32xf32>
    %164 = vector.extract_strided_slice %146 {offsets = [0, 0, 64], sizes = [2, 8, 32], strides = [1, 1, 1]} : vector<2x8x96xf32> to vector<2x8x32xf32>
    %165 = arith.mulf %154, %164 : vector<2x8x32xf32>
    %166 = arith.addf %163, %165 : vector<2x8x32xf32>
    %167 = math.tanh %166 : vector<2x8x32xf32>
    %cst_66 = arith.constant 1.000000e+00 : f32
    %168 = vector.broadcast %cst_66 : f32 to vector<2x8x32xf32>
    %169 = arith.subf %168, %162 : vector<2x8x32xf32>
    %170 = arith.mulf %169, %167 : vector<2x8x32xf32>
    %171 = arith.mulf %162, %4 : vector<2x8x32xf32>
    %172 = arith.addf %170, %171 : vector<2x8x32xf32>
    %c1_i32 = arith.constant 1 : i32
    %cst_67 = arith.constant dense<0.000000e+00> : vector<2x8xf32>
    %173 = vector.multi_reduction <add>, %172, %cst_67 [2] : vector<2x8x32xf32> to vector<2x8xf32>
    %174 = vector.shape_cast %173 : vector<2x8xf32> to vector<2x8x1xf32>
    %cst_68 = arith.constant 3.200000e+01 : f32
    %175 = vector.broadcast %cst_68 : f32 to vector<2x8x1xf32>
    %176 = arith.divf %174, %175 : vector<2x8x1xf32>
    %177 = vector.broadcast %176 : vector<2x8x1xf32> to vector<2x8x32xf32>
    %178 = arith.subf %172, %177 : vector<2x8x32xf32>
    %179 = arith.mulf %178, %178 : vector<2x8x32xf32>
    %cst_69 = arith.constant dense<0.000000e+00> : vector<2x8xf32>
    %180 = vector.multi_reduction <add>, %179, %cst_69 [2] : vector<2x8x32xf32> to vector<2x8xf32>
    %181 = vector.shape_cast %180 : vector<2x8xf32> to vector<2x8x1xf32>
    %cst_70 = arith.constant 3.200000e+01 : f32
    %182 = vector.broadcast %cst_70 : f32 to vector<2x8x1xf32>
    %183 = arith.divf %181, %182 : vector<2x8x1xf32>
    %184 = vector.broadcast %176 : vector<2x8x1xf32> to vector<2x8x32xf32>
    %185 = arith.subf %172, %184 : vector<2x8x32xf32>
    %cst_71 = arith.constant 9.99999974E-6 : f32
    %186 = vector.broadcast %cst_71 : f32 to vector<2x8x1xf32>
    %187 = arith.addf %183, %186 : vector<2x8x1xf32>
    %188 = math.rsqrt %187 : vector<2x8x1xf32>
    %189 = vector.broadcast %188 : vector<2x8x1xf32> to vector<2x8x32xf32>
    %190 = arith.mulf %185, %189 : vector<2x8x32xf32>
    %191 = vector.shape_cast %7 : vector<1x32xf32> to vector<1x1x32xf32>
    %192 = vector.broadcast %191 : vector<1x1x32xf32> to vector<2x8x32xf32>
    %193 = arith.mulf %190, %192 : vector<2x8x32xf32>
    %194 = vector.shape_cast %8 : vector<1x32xf32> to vector<1x1x32xf32>
    %195 = vector.broadcast %194 : vector<1x1x32xf32> to vector<2x8x32xf32>
    %196 = arith.addf %193, %195 : vector<2x8x32xf32>
    "tpu.trace_start"() <{level = 10 : i32, message = "bko,boe->bke"}> : () -> ()
    %cst_72 = arith.constant dense<0.000000e+00> : vector<2x8x34xf32>
    %197 = tpu.matmul %196, %14, %cst_72 {dimension_numbers = #tpu.dot_dimension_numbers<[2], [1], [1], [2], [0, 0, 0, 1, 1, 2], [0], [0]>} : vector<2x8x32xf32>, vector<2x32x34xf32>, vector<2x8x34xf32> -> vector<2x8x34xf32>
    "tpu.trace_stop"() : () -> ()
    %198 = vector.extract_strided_slice %197 {offsets = [0, 0, 0], sizes = [2, 8, 32], strides = [1, 1, 1]} : vector<2x8x34xf32> to vector<2x8x32xf32>
    %199 = vector.extract_strided_slice %197 {offsets = [0, 0, 32], sizes = [2, 8, 1], strides = [1, 1, 1]} : vector<2x8x34xf32> to vector<2x8x1xf32>
    %200 = vector.extract_strided_slice %197 {offsets = [0, 0, 33], sizes = [2, 8, 1], strides = [1, 1, 1]} : vector<2x8x34xf32> to vector<2x8x1xf32>
    %cst_73 = arith.constant 5.000000e+00 : f32
    %201 = vector.broadcast %cst_73 : f32 to vector<2x8x1xf32>
    %202 = arith.mulf %131, %201 : vector<2x8x1xf32>
    %cst_74 = arith.constant 1.000000e+00 : f32
    %203 = vector.broadcast %cst_74 : f32 to vector<2x8x1xf32>
    %204 = arith.divf %203, %202 : vector<2x8x1xf32>
    %cst_75 = arith.constant 5.000000e+00 : f32
    %205 = vector.broadcast %cst_75 : f32 to vector<2x8x1xf32>
    %206 = arith.mulf %138, %205 : vector<2x8x1xf32>
    %cst_76 = arith.constant 1.000000e+00 : f32
    %207 = vector.broadcast %cst_76 : f32 to vector<2x8x1xf32>
    %208 = arith.divf %207, %206 : vector<2x8x1xf32>
    %209 = arith.mulf %199, %204 : vector<2x8x1xf32>
    %210 = arith.mulf %200, %208 : vector<2x8x1xf32>
    %211 = arith.mulf %209, %121 : vector<2x8x1xf32>
    %212 = arith.mulf %210, %122 : vector<2x8x1xf32>
    %213 = arith.addf %211, %212 : vector<2x8x1xf32>
    %cst_77 = arith.constant 0.000000e+00 : f32
    %214 = vector.broadcast %cst_77 : f32 to vector<2x8x1xf32>
    %215 = arith.subf %214, %213 : vector<2x8x1xf32>
    %216 = tpu.concatenate %198, %209, %210, %215 in 2 : vector<2x8x32xf32>, vector<2x8x1xf32>, vector<2x8x1xf32>, vector<2x8x1xf32> -> vector<2x8x35xf32>
    "tpu.trace_start"() <{level = 10 : i32, message = "bke,bne->bkn"}> : () -> ()
    %cst_78 = arith.constant dense<0.000000e+00> : vector<2x8x64xf32>
    %217 = tpu.matmul %216, %49, %cst_78 {dimension_numbers = #tpu.dot_dimension_numbers<[2], [2], [1], [1], [0, 0, 0, 1, 1, 1], [0], [0]>} : vector<2x8x35xf32>, vector<2x64x35xf32>, vector<2x8x64xf32> -> vector<2x8x64xf32>
    "tpu.trace_stop"() : () -> ()
    %cst_79 = arith.constant dense<0xFF800000> : vector<2x64xf32>
    %218 = vector.multi_reduction <maximumf>, %217, %cst_79 [1] : vector<2x8x64xf32> to vector<2x64xf32>
    %219 = vector.shape_cast %218 : vector<2x64xf32> to vector<2x1x64xf32>
    %220 = vector.broadcast %219 : vector<2x1x64xf32> to vector<2x8x64xf32>
    %221 = arith.subf %217, %220 : vector<2x8x64xf32>
    %222 = math.exp %221 : vector<2x8x64xf32>
    %cst_80 = arith.constant dense<0.000000e+00> : vector<2x64xf32>
    %223 = vector.multi_reduction <add>, %222, %cst_80 [1] : vector<2x8x64xf32> to vector<2x64xf32>
    %224 = vector.shape_cast %223 : vector<2x64xf32> to vector<2x1x64xf32>
    %225 = tpu.reciprocal %224 {approx = true} : vector<2x1x64xf32> -> vector<2x1x64xf32>
    %226 = vector.broadcast %225 : vector<2x1x64xf32> to vector<2x8x64xf32>
    %227 = arith.mulf %222, %226 : vector<2x8x64xf32>
    %cst_81 = arith.constant 9.99999993E-9 : f32
    %228 = vector.broadcast %cst_81 : f32 to vector<2x8x64xf32>
    %229 = arith.addf %227, %228 : vector<2x8x64xf32>
    %cst_82 = arith.constant dense<0.000000e+00> : vector<2x8xf32>
    %230 = vector.multi_reduction <add>, %229, %cst_82 [2] : vector<2x8x64xf32> to vector<2x8xf32>
    %231 = vector.shape_cast %230 : vector<2x8xf32> to vector<2x8x1xf32>
    %cst_83 = arith.constant 1.000000e+00 : f32
    %232 = vector.broadcast %cst_83 : f32 to vector<2x8x1xf32>
    %233 = arith.divf %232, %231 : vector<2x8x1xf32>
    %234 = vector.broadcast %233 : vector<2x8x1xf32> to vector<2x8x64xf32>
    %235 = arith.mulf %229, %234 : vector<2x8x64xf32>
    "tpu.trace_start"() <{level = 10 : i32, message = "bkn,bne->bke"}> : () -> ()
    %cst_84 = arith.constant dense<0.000000e+00> : vector<2x8x36xf32>
    %236 = tpu.matmul %235, %50, %cst_84 {dimension_numbers = #tpu.dot_dimension_numbers<[2], [1], [1], [2], [0, 0, 0, 1, 1, 2], [0], [0]>} : vector<2x8x64xf32>, vector<2x64x36xf32>, vector<2x8x36xf32> -> vector<2x8x36xf32>
    "tpu.trace_stop"() : () -> ()
    %237 = vector.extract_strided_slice %236 {offsets = [0, 0, 0], sizes = [2, 8, 32], strides = [1, 1, 1]} : vector<2x8x36xf32> to vector<2x8x32xf32>
    %238 = vector.extract_strided_slice %236 {offsets = [0, 0, 32], sizes = [2, 8, 1], strides = [1, 1, 1]} : vector<2x8x36xf32> to vector<2x8x1xf32>
    %239 = vector.extract_strided_slice %236 {offsets = [0, 0, 33], sizes = [2, 8, 1], strides = [1, 1, 1]} : vector<2x8x36xf32> to vector<2x8x1xf32>
    %240 = vector.extract_strided_slice %236 {offsets = [0, 0, 34], sizes = [2, 8, 1], strides = [1, 1, 1]} : vector<2x8x36xf32> to vector<2x8x1xf32>
    %241 = vector.extract_strided_slice %236 {offsets = [0, 0, 35], sizes = [2, 8, 1], strides = [1, 1, 1]} : vector<2x8x36xf32> to vector<2x8x1xf32>
    %242 = arith.mulf %238, %238 : vector<2x8x1xf32>
    %243 = arith.subf %240, %242 : vector<2x8x1xf32>
    %cst_85 = arith.constant 0.000000e+00 : f32
    %244 = vector.broadcast %cst_85 : f32 to vector<2x8x1xf32>
    %245 = arith.maximumf %243, %244 : vector<2x8x1xf32>
    %cst_86 = arith.constant 9.99999993E-9 : f32
    %246 = vector.broadcast %cst_86 : f32 to vector<2x8x1xf32>
    %247 = arith.addf %245, %246 : vector<2x8x1xf32>
    %248 = math.sqrt %247 : vector<2x8x1xf32>
    %249 = arith.mulf %239, %239 : vector<2x8x1xf32>
    %250 = arith.subf %241, %249 : vector<2x8x1xf32>
    %cst_87 = arith.constant 0.000000e+00 : f32
    %251 = vector.broadcast %cst_87 : f32 to vector<2x8x1xf32>
    %252 = arith.maximumf %250, %251 : vector<2x8x1xf32>
    %cst_88 = arith.constant 9.99999993E-9 : f32
    %253 = vector.broadcast %cst_88 : f32 to vector<2x8x1xf32>
    %254 = arith.addf %252, %253 : vector<2x8x1xf32>
    %255 = math.sqrt %254 : vector<2x8x1xf32>
    %256 = arith.subf %238, %121 : vector<2x8x1xf32>
    %257 = arith.mulf %204, %256 : vector<2x8x1xf32>
    %258 = arith.subf %239, %122 : vector<2x8x1xf32>
    %259 = arith.mulf %208, %258 : vector<2x8x1xf32>
    %260 = tpu.concatenate %237, %257, %259, %172, %51 in 2 : vector<2x8x32xf32>, vector<2x8x1xf32>, vector<2x8x1xf32>, vector<2x8x32xf32>, vector<2x8x1xf32> -> vector<2x8x67xf32>
    "tpu.trace_start"() <{level = 10 : i32, message = "bkc,bcd->bkd"}> : () -> ()
    %cst_89 = arith.constant dense<0.000000e+00> : vector<2x8x192xf32>
    %261 = tpu.matmul %260, %16, %cst_89 {dimension_numbers = #tpu.dot_dimension_numbers<[2], [1], [1], [2], [0, 0, 0, 1, 1, 2], [0], [0]>} : vector<2x8x67xf32>, vector<2x67x192xf32>, vector<2x8x192xf32> -> vector<2x8x192xf32>
    "tpu.trace_stop"() : () -> ()
    %262 = vector.extract_strided_slice %261 {offsets = [0, 0, 0], sizes = [2, 8, 96], strides = [1, 1, 1]} : vector<2x8x192xf32> to vector<2x8x96xf32>
    %263 = vector.extract_strided_slice %261 {offsets = [0, 0, 96], sizes = [2, 8, 96], strides = [1, 1, 1]} : vector<2x8x192xf32> to vector<2x8x96xf32>
    %264 = vector.extract_strided_slice %262 {offsets = [0, 0, 0], sizes = [2, 8, 32], strides = [1, 1, 1]} : vector<2x8x96xf32> to vector<2x8x32xf32>
    %265 = vector.extract_strided_slice %263 {offsets = [0, 0, 0], sizes = [2, 8, 32], strides = [1, 1, 1]} : vector<2x8x96xf32> to vector<2x8x32xf32>
    %266 = arith.addf %264, %265 : vector<2x8x32xf32>
    %267 = arith.negf %266 : vector<2x8x32xf32>
    %268 = math.exp %267 : vector<2x8x32xf32>
    %cst_90 = arith.constant 1.000000e+00 : f32
    %269 = vector.broadcast %cst_90 : f32 to vector<2x8x32xf32>
    %270 = arith.addf %269, %268 : vector<2x8x32xf32>
    %271 = arith.divf %269, %270 : vector<2x8x32xf32>
    %272 = vector.extract_strided_slice %262 {offsets = [0, 0, 32], sizes = [2, 8, 32], strides = [1, 1, 1]} : vector<2x8x96xf32> to vector<2x8x32xf32>
    %273 = vector.extract_strided_slice %263 {offsets = [0, 0, 32], sizes = [2, 8, 32], strides = [1, 1, 1]} : vector<2x8x96xf32> to vector<2x8x32xf32>
    %274 = arith.addf %272, %273 : vector<2x8x32xf32>
    %275 = arith.negf %274 : vector<2x8x32xf32>
    %276 = math.exp %275 : vector<2x8x32xf32>
    %cst_91 = arith.constant 1.000000e+00 : f32
    %277 = vector.broadcast %cst_91 : f32 to vector<2x8x32xf32>
    %278 = arith.addf %277, %276 : vector<2x8x32xf32>
    %279 = arith.divf %277, %278 : vector<2x8x32xf32>
    %280 = vector.extract_strided_slice %262 {offsets = [0, 0, 64], sizes = [2, 8, 32], strides = [1, 1, 1]} : vector<2x8x96xf32> to vector<2x8x32xf32>
    %281 = vector.extract_strided_slice %263 {offsets = [0, 0, 64], sizes = [2, 8, 32], strides = [1, 1, 1]} : vector<2x8x96xf32> to vector<2x8x32xf32>
    %282 = arith.mulf %271, %281 : vector<2x8x32xf32>
    %283 = arith.addf %280, %282 : vector<2x8x32xf32>
    %284 = math.tanh %283 : vector<2x8x32xf32>
    %cst_92 = arith.constant 1.000000e+00 : f32
    %285 = vector.broadcast %cst_92 : f32 to vector<2x8x32xf32>
    %286 = arith.subf %285, %279 : vector<2x8x32xf32>
    %287 = arith.mulf %286, %284 : vector<2x8x32xf32>
    %288 = arith.mulf %279, %172 : vector<2x8x32xf32>
    %289 = arith.addf %287, %288 : vector<2x8x32xf32>
    %cst_93 = arith.constant dense<0.000000e+00> : vector<2x8xf32>
    %290 = vector.multi_reduction <add>, %289, %cst_93 [2] : vector<2x8x32xf32> to vector<2x8xf32>
    %291 = vector.shape_cast %290 : vector<2x8xf32> to vector<2x8x1xf32>
    %cst_94 = arith.constant 3.200000e+01 : f32
    %292 = vector.broadcast %cst_94 : f32 to vector<2x8x1xf32>
    %293 = arith.divf %291, %292 : vector<2x8x1xf32>
    %294 = vector.broadcast %293 : vector<2x8x1xf32> to vector<2x8x32xf32>
    %295 = arith.subf %289, %294 : vector<2x8x32xf32>
    %296 = arith.mulf %295, %295 : vector<2x8x32xf32>
    %cst_95 = arith.constant dense<0.000000e+00> : vector<2x8xf32>
    %297 = vector.multi_reduction <add>, %296, %cst_95 [2] : vector<2x8x32xf32> to vector<2x8xf32>
    %298 = vector.shape_cast %297 : vector<2x8xf32> to vector<2x8x1xf32>
    %cst_96 = arith.constant 3.200000e+01 : f32
    %299 = vector.broadcast %cst_96 : f32 to vector<2x8x1xf32>
    %300 = arith.divf %298, %299 : vector<2x8x1xf32>
    %301 = vector.broadcast %293 : vector<2x8x1xf32> to vector<2x8x32xf32>
    %302 = arith.subf %289, %301 : vector<2x8x32xf32>
    %cst_97 = arith.constant 9.99999974E-6 : f32
    %303 = vector.broadcast %cst_97 : f32 to vector<2x8x1xf32>
    %304 = arith.addf %300, %303 : vector<2x8x1xf32>
    %305 = math.rsqrt %304 : vector<2x8x1xf32>
    %306 = vector.broadcast %305 : vector<2x8x1xf32> to vector<2x8x32xf32>
    %307 = arith.mulf %302, %306 : vector<2x8x32xf32>
    %308 = vector.shape_cast %7 : vector<1x32xf32> to vector<1x1x32xf32>
    %309 = vector.broadcast %308 : vector<1x1x32xf32> to vector<2x8x32xf32>
    %310 = arith.mulf %307, %309 : vector<2x8x32xf32>
    %311 = vector.shape_cast %8 : vector<1x32xf32> to vector<1x1x32xf32>
    %312 = vector.broadcast %311 : vector<1x1x32xf32> to vector<2x8x32xf32>
    %313 = arith.addf %310, %312 : vector<2x8x32xf32>
    "tpu.trace_start"() <{level = 10 : i32, message = "bko,boe->bke"}> : () -> ()
    %cst_98 = arith.constant dense<0.000000e+00> : vector<2x8x34xf32>
    %314 = tpu.matmul %313, %14, %cst_98 {dimension_numbers = #tpu.dot_dimension_numbers<[2], [1], [1], [2], [0, 0, 0, 1, 1, 2], [0], [0]>} : vector<2x8x32xf32>, vector<2x32x34xf32>, vector<2x8x34xf32> -> vector<2x8x34xf32>
    "tpu.trace_stop"() : () -> ()
    %315 = vector.extract_strided_slice %314 {offsets = [0, 0, 0], sizes = [2, 8, 32], strides = [1, 1, 1]} : vector<2x8x34xf32> to vector<2x8x32xf32>
    %316 = vector.extract_strided_slice %314 {offsets = [0, 0, 32], sizes = [2, 8, 1], strides = [1, 1, 1]} : vector<2x8x34xf32> to vector<2x8x1xf32>
    %317 = vector.extract_strided_slice %314 {offsets = [0, 0, 33], sizes = [2, 8, 1], strides = [1, 1, 1]} : vector<2x8x34xf32> to vector<2x8x1xf32>
    %cst_99 = arith.constant 5.000000e+00 : f32
    %318 = vector.broadcast %cst_99 : f32 to vector<2x8x1xf32>
    %319 = arith.mulf %248, %318 : vector<2x8x1xf32>
    %cst_100 = arith.constant 1.000000e+00 : f32
    %320 = vector.broadcast %cst_100 : f32 to vector<2x8x1xf32>
    %321 = arith.divf %320, %319 : vector<2x8x1xf32>
    %cst_101 = arith.constant 5.000000e+00 : f32
    %322 = vector.broadcast %cst_101 : f32 to vector<2x8x1xf32>
    %323 = arith.mulf %255, %322 : vector<2x8x1xf32>
    %cst_102 = arith.constant 1.000000e+00 : f32
    %324 = vector.broadcast %cst_102 : f32 to vector<2x8x1xf32>
    %325 = arith.divf %324, %323 : vector<2x8x1xf32>
    %326 = arith.mulf %316, %321 : vector<2x8x1xf32>
    %327 = arith.mulf %317, %325 : vector<2x8x1xf32>
    %328 = arith.mulf %326, %238 : vector<2x8x1xf32>
    %329 = arith.mulf %327, %239 : vector<2x8x1xf32>
    %330 = arith.addf %328, %329 : vector<2x8x1xf32>
    %cst_103 = arith.constant 0.000000e+00 : f32
    %331 = vector.broadcast %cst_103 : f32 to vector<2x8x1xf32>
    %332 = arith.subf %331, %330 : vector<2x8x1xf32>
    %333 = tpu.concatenate %315, %326, %327, %332 in 2 : vector<2x8x32xf32>, vector<2x8x1xf32>, vector<2x8x1xf32>, vector<2x8x1xf32> -> vector<2x8x35xf32>
    "tpu.trace_start"() <{level = 10 : i32, message = "bke,bne->bkn"}> : () -> ()
    %cst_104 = arith.constant dense<0.000000e+00> : vector<2x8x64xf32>
    %334 = tpu.matmul %333, %49, %cst_104 {dimension_numbers = #tpu.dot_dimension_numbers<[2], [2], [1], [1], [0, 0, 0, 1, 1, 1], [0], [0]>} : vector<2x8x35xf32>, vector<2x64x35xf32>, vector<2x8x64xf32> -> vector<2x8x64xf32>
    "tpu.trace_stop"() : () -> ()
    %cst_105 = arith.constant dense<0xFF800000> : vector<2x64xf32>
    %335 = vector.multi_reduction <maximumf>, %334, %cst_105 [1] : vector<2x8x64xf32> to vector<2x64xf32>
    %336 = vector.shape_cast %335 : vector<2x64xf32> to vector<2x1x64xf32>
    %337 = vector.broadcast %336 : vector<2x1x64xf32> to vector<2x8x64xf32>
    %338 = arith.subf %334, %337 : vector<2x8x64xf32>
    %339 = math.exp %338 : vector<2x8x64xf32>
    %cst_106 = arith.constant dense<0.000000e+00> : vector<2x64xf32>
    %340 = vector.multi_reduction <add>, %339, %cst_106 [1] : vector<2x8x64xf32> to vector<2x64xf32>
    %341 = vector.shape_cast %340 : vector<2x64xf32> to vector<2x1x64xf32>
    %342 = tpu.reciprocal %341 {approx = true} : vector<2x1x64xf32> -> vector<2x1x64xf32>
    %343 = vector.broadcast %342 : vector<2x1x64xf32> to vector<2x8x64xf32>
    %344 = arith.mulf %339, %343 : vector<2x8x64xf32>
    %cst_107 = arith.constant 9.99999993E-9 : f32
    %345 = vector.broadcast %cst_107 : f32 to vector<2x8x64xf32>
    %346 = arith.addf %344, %345 : vector<2x8x64xf32>
    %cst_108 = arith.constant dense<0.000000e+00> : vector<2x8xf32>
    %347 = vector.multi_reduction <add>, %346, %cst_108 [2] : vector<2x8x64xf32> to vector<2x8xf32>
    %348 = vector.shape_cast %347 : vector<2x8xf32> to vector<2x8x1xf32>
    %cst_109 = arith.constant 1.000000e+00 : f32
    %349 = vector.broadcast %cst_109 : f32 to vector<2x8x1xf32>
    %350 = arith.divf %349, %348 : vector<2x8x1xf32>
    %351 = vector.broadcast %350 : vector<2x8x1xf32> to vector<2x8x64xf32>
    %352 = arith.mulf %346, %351 : vector<2x8x64xf32>
    "tpu.trace_start"() <{level = 10 : i32, message = "bkn,bne->bke"}> : () -> ()
    %cst_110 = arith.constant dense<0.000000e+00> : vector<2x8x36xf32>
    %353 = tpu.matmul %352, %50, %cst_110 {dimension_numbers = #tpu.dot_dimension_numbers<[2], [1], [1], [2], [0, 0, 0, 1, 1, 2], [0], [0]>} : vector<2x8x64xf32>, vector<2x64x36xf32>, vector<2x8x36xf32> -> vector<2x8x36xf32>
    "tpu.trace_stop"() : () -> ()
    %354 = vector.extract_strided_slice %353 {offsets = [0, 0, 0], sizes = [2, 8, 32], strides = [1, 1, 1]} : vector<2x8x36xf32> to vector<2x8x32xf32>
    %355 = vector.extract_strided_slice %353 {offsets = [0, 0, 32], sizes = [2, 8, 1], strides = [1, 1, 1]} : vector<2x8x36xf32> to vector<2x8x1xf32>
    %356 = vector.extract_strided_slice %353 {offsets = [0, 0, 33], sizes = [2, 8, 1], strides = [1, 1, 1]} : vector<2x8x36xf32> to vector<2x8x1xf32>
    %357 = vector.extract_strided_slice %353 {offsets = [0, 0, 34], sizes = [2, 8, 1], strides = [1, 1, 1]} : vector<2x8x36xf32> to vector<2x8x1xf32>
    %358 = vector.extract_strided_slice %353 {offsets = [0, 0, 35], sizes = [2, 8, 1], strides = [1, 1, 1]} : vector<2x8x36xf32> to vector<2x8x1xf32>
    %359 = arith.mulf %355, %355 : vector<2x8x1xf32>
    %360 = arith.subf %357, %359 : vector<2x8x1xf32>
    %cst_111 = arith.constant 0.000000e+00 : f32
    %361 = vector.broadcast %cst_111 : f32 to vector<2x8x1xf32>
    %362 = arith.maximumf %360, %361 : vector<2x8x1xf32>
    %cst_112 = arith.constant 9.99999993E-9 : f32
    %363 = vector.broadcast %cst_112 : f32 to vector<2x8x1xf32>
    %364 = arith.addf %362, %363 : vector<2x8x1xf32>
    %365 = math.sqrt %364 : vector<2x8x1xf32>
    %366 = arith.mulf %356, %356 : vector<2x8x1xf32>
    %367 = arith.subf %358, %366 : vector<2x8x1xf32>
    %cst_113 = arith.constant 0.000000e+00 : f32
    %368 = vector.broadcast %cst_113 : f32 to vector<2x8x1xf32>
    %369 = arith.maximumf %367, %368 : vector<2x8x1xf32>
    %cst_114 = arith.constant 9.99999993E-9 : f32
    %370 = vector.broadcast %cst_114 : f32 to vector<2x8x1xf32>
    %371 = arith.addf %369, %370 : vector<2x8x1xf32>
    %372 = math.sqrt %371 : vector<2x8x1xf32>
    %373 = arith.subf %355, %238 : vector<2x8x1xf32>
    %374 = arith.mulf %321, %373 : vector<2x8x1xf32>
    %375 = arith.subf %356, %239 : vector<2x8x1xf32>
    %376 = arith.mulf %325, %375 : vector<2x8x1xf32>
    %377 = tpu.concatenate %354, %374, %376, %289, %51 in 2 : vector<2x8x32xf32>, vector<2x8x1xf32>, vector<2x8x1xf32>, vector<2x8x32xf32>, vector<2x8x1xf32> -> vector<2x8x67xf32>
    "tpu.trace_start"() <{level = 10 : i32, message = "bkc,bcd->bkd"}> : () -> ()
    %cst_115 = arith.constant dense<0.000000e+00> : vector<2x8x192xf32>
    %378 = tpu.matmul %377, %16, %cst_115 {dimension_numbers = #tpu.dot_dimension_numbers<[2], [1], [1], [2], [0, 0, 0, 1, 1, 2], [0], [0]>} : vector<2x8x67xf32>, vector<2x67x192xf32>, vector<2x8x192xf32> -> vector<2x8x192xf32>
    "tpu.trace_stop"() : () -> ()
    %379 = vector.extract_strided_slice %378 {offsets = [0, 0, 0], sizes = [2, 8, 96], strides = [1, 1, 1]} : vector<2x8x192xf32> to vector<2x8x96xf32>
    %380 = vector.extract_strided_slice %378 {offsets = [0, 0, 96], sizes = [2, 8, 96], strides = [1, 1, 1]} : vector<2x8x192xf32> to vector<2x8x96xf32>
    %381 = vector.extract_strided_slice %379 {offsets = [0, 0, 0], sizes = [2, 8, 32], strides = [1, 1, 1]} : vector<2x8x96xf32> to vector<2x8x32xf32>
    %382 = vector.extract_strided_slice %380 {offsets = [0, 0, 0], sizes = [2, 8, 32], strides = [1, 1, 1]} : vector<2x8x96xf32> to vector<2x8x32xf32>
    %383 = arith.addf %381, %382 : vector<2x8x32xf32>
    %384 = arith.negf %383 : vector<2x8x32xf32>
    %385 = math.exp %384 : vector<2x8x32xf32>
    %cst_116 = arith.constant 1.000000e+00 : f32
    %386 = vector.broadcast %cst_116 : f32 to vector<2x8x32xf32>
    %387 = arith.addf %386, %385 : vector<2x8x32xf32>
    %388 = arith.divf %386, %387 : vector<2x8x32xf32>
    %389 = vector.extract_strided_slice %379 {offsets = [0, 0, 32], sizes = [2, 8, 32], strides = [1, 1, 1]} : vector<2x8x96xf32> to vector<2x8x32xf32>
    %390 = vector.extract_strided_slice %380 {offsets = [0, 0, 32], sizes = [2, 8, 32], strides = [1, 1, 1]} : vector<2x8x96xf32> to vector<2x8x32xf32>
    %391 = arith.addf %389, %390 : vector<2x8x32xf32>
    %392 = arith.negf %391 : vector<2x8x32xf32>
    %393 = math.exp %392 : vector<2x8x32xf32>
    %cst_117 = arith.constant 1.000000e+00 : f32
    %394 = vector.broadcast %cst_117 : f32 to vector<2x8x32xf32>
    %395 = arith.addf %394, %393 : vector<2x8x32xf32>
    %396 = arith.divf %394, %395 : vector<2x8x32xf32>
    %397 = vector.extract_strided_slice %379 {offsets = [0, 0, 64], sizes = [2, 8, 32], strides = [1, 1, 1]} : vector<2x8x96xf32> to vector<2x8x32xf32>
    %398 = vector.extract_strided_slice %380 {offsets = [0, 0, 64], sizes = [2, 8, 32], strides = [1, 1, 1]} : vector<2x8x96xf32> to vector<2x8x32xf32>
    %399 = arith.mulf %388, %398 : vector<2x8x32xf32>
    %400 = arith.addf %397, %399 : vector<2x8x32xf32>
    %401 = math.tanh %400 : vector<2x8x32xf32>
    %cst_118 = arith.constant 1.000000e+00 : f32
    %402 = vector.broadcast %cst_118 : f32 to vector<2x8x32xf32>
    %403 = arith.subf %402, %396 : vector<2x8x32xf32>
    %404 = arith.mulf %403, %401 : vector<2x8x32xf32>
    %405 = arith.mulf %396, %289 : vector<2x8x32xf32>
    %406 = arith.addf %404, %405 : vector<2x8x32xf32>
    %cst_119 = arith.constant 5.000000e+00 : f32
    %407 = vector.broadcast %cst_119 : f32 to vector<2x8x1xf32>
    %408 = arith.mulf %365, %407 : vector<2x8x1xf32>
    %cst_120 = arith.constant 1.000000e+00 : f32
    %409 = vector.broadcast %cst_120 : f32 to vector<2x8x1xf32>
    %410 = arith.divf %409, %408 : vector<2x8x1xf32>
    %cst_121 = arith.constant 5.000000e+00 : f32
    %411 = vector.broadcast %cst_121 : f32 to vector<2x8x1xf32>
    %412 = arith.mulf %372, %411 : vector<2x8x1xf32>
    %cst_122 = arith.constant 1.000000e+00 : f32
    %413 = vector.broadcast %cst_122 : f32 to vector<2x8x1xf32>
    %414 = arith.divf %413, %412 : vector<2x8x1xf32>
    %415 = vector.broadcast %2 : vector<2x1x64xf32> to vector<2x8x64xf32>
    %416 = vector.broadcast %355 : vector<2x8x1xf32> to vector<2x8x64xf32>
    %417 = arith.subf %415, %416 : vector<2x8x64xf32>
    %418 = vector.broadcast %410 : vector<2x8x1xf32> to vector<2x8x64xf32>
    %419 = arith.mulf %417, %418 : vector<2x8x64xf32>
    %420 = math.absf %419 : vector<2x8x64xf32>
    %421 = vector.broadcast %3 : vector<2x1x64xf32> to vector<2x8x64xf32>
    %422 = vector.broadcast %356 : vector<2x8x1xf32> to vector<2x8x64xf32>
    %423 = arith.subf %421, %422 : vector<2x8x64xf32>
    %424 = vector.broadcast %414 : vector<2x8x1xf32> to vector<2x8x64xf32>
    %425 = arith.mulf %423, %424 : vector<2x8x64xf32>
    %426 = math.absf %425 : vector<2x8x64xf32>
    %427 = arith.addf %420, %426 : vector<2x8x64xf32>
    %cst_123 = arith.constant 0.000000e+00 : f32
    %428 = vector.broadcast %cst_123 : f32 to vector<2x8x92xf32>
    %429 = tpu.concatenate %406, %355, %356, %365, %372, %428 in 2 : vector<2x8x32xf32>, vector<2x8x1xf32>, vector<2x8x1xf32>, vector<2x8x1xf32>, vector<2x8x1xf32>, vector<2x8x92xf32> -> vector<2x8x128xf32>
    %c0_124 = arith.constant 0 : index
    %c0_125 = arith.constant 0 : index
    %c0_126 = arith.constant 0 : index
    %430 = vector.load %arg11[%c0_124, %c0_125, %c0_126] : memref<2x8x128xf32, #tpu.memory_space<vmem>>, vector<2x8x128xf32>
    tpu.vector_store %arg11[%c0_124, %c0_125, %c0_126], %429 {strides = array<i32>} : memref<2x8x128xf32, #tpu.memory_space<vmem>>, vector<2x8x128xf32>,
    %431 = tpu.concatenate %344, %427 in 2 : vector<2x8x64xf32>, vector<2x8x64xf32> -> vector<2x8x128xf32>
    %c0_127 = arith.constant 0 : index
    %c0_128 = arith.constant 0 : index
    %c0_129 = arith.constant 0 : index
    %432 = vector.load %arg12[%c0_127, %c0_128, %c0_129] : memref<2x8x128xf32, #tpu.memory_space<vmem>>, vector<2x8x128xf32>
    tpu.vector_store %arg12[%c0_127, %c0_128, %c0_129], %431 {strides = array<i32>} : memref<2x8x128xf32, #tpu.memory_space<vmem>>, vector<2x8x128xf32>,
    return
  }
  func.func @transform_0(%arg0: i32) -> (i32, i32, i32) {
    %c0_i32 = arith.constant 0 : i32
    %c0_i32_0 = arith.constant 0 : i32
    %c0_i32_1 = arith.constant 0 : i32
    return %arg0, %c0_i32, %c0_i32_0 : i32, i32, i32
  }
  func.func @transform_1(%arg0: i32) -> (i32, i32, i32) {
    %c0_i32 = arith.constant 0 : i32
    %c0_i32_0 = arith.constant 0 : i32
    %c0_i32_1 = arith.constant 0 : i32
    return %arg0, %c0_i32, %c0_i32_0 : i32, i32, i32
  }
  func.func @transform_2(%arg0: i32) -> (i32, i32, i32) {
    %c0_i32 = arith.constant 0 : i32
    %c0_i32_0 = arith.constant 0 : i32
    %c0_i32_1 = arith.constant 0 : i32
    return %arg0, %c0_i32, %c0_i32_0 : i32, i32, i32
  }
  func.func @transform_3(%arg0: i32) -> (i32, i32, i32) {
    %c0_i32 = arith.constant 0 : i32
    %c0_i32_0 = arith.constant 0 : i32
    %c0_i32_1 = arith.constant 0 : i32
    return %arg0, %c0_i32, %c0_i32_0 : i32, i32, i32
  }
  func.func @transform_4(%arg0: i32) -> (i32, i32) {
    %c0_i32 = arith.constant 0 : i32
    %c0_i32_0 = arith.constant 0 : i32
    %c0_i32_1 = arith.constant 0 : i32
    return %c0_i32, %c0_i32_0 : i32, i32
  }
  func.func @transform_5(%arg0: i32) -> (i32, i32) {
    %c0_i32 = arith.constant 0 : i32
    %c0_i32_0 = arith.constant 0 : i32
    %c0_i32_1 = arith.constant 0 : i32
    return %c0_i32, %c0_i32_0 : i32, i32
  }
  func.func @transform_6(%arg0: i32) -> (i32, i32) {
    %c0_i32 = arith.constant 0 : i32
    %c0_i32_0 = arith.constant 0 : i32
    %c0_i32_1 = arith.constant 0 : i32
    return %c0_i32, %c0_i32_0 : i32, i32
  }
  func.func @transform_7(%arg0: i32) -> (i32, i32) {
    %c0_i32 = arith.constant 0 : i32
    %c0_i32_0 = arith.constant 0 : i32
    %c0_i32_1 = arith.constant 0 : i32
    return %c0_i32, %c0_i32_0 : i32, i32
  }
  func.func @transform_8(%arg0: i32) -> (i32, i32) {
    %c0_i32 = arith.constant 0 : i32
    %c0_i32_0 = arith.constant 0 : i32
    %c0_i32_1 = arith.constant 0 : i32
    return %c0_i32, %c0_i32_0 : i32, i32
  }
  func.func @transform_9(%arg0: i32) -> (i32, i32) {
    %c0_i32 = arith.constant 0 : i32
    %c0_i32_0 = arith.constant 0 : i32
    %c0_i32_1 = arith.constant 0 : i32
    return %c0_i32, %c0_i32_0 : i32, i32
  }
  func.func @transform_10(%arg0: i32) -> (i32, i32, i32) {
    %c0_i32 = arith.constant 0 : i32
    %c0_i32_0 = arith.constant 0 : i32
    %c0_i32_1 = arith.constant 0 : i32
    return %arg0, %c0_i32, %c0_i32_0 : i32, i32, i32
  }
  func.func @transform_11(%arg0: i32) -> (i32, i32, i32) {
    %c0_i32 = arith.constant 0 : i32
    %c0_i32_0 = arith.constant 0 : i32
    %c0_i32_1 = arith.constant 0 : i32
    return %arg0, %c0_i32, %c0_i32_0 : i32, i32, i32
  }
}

</mosaic_0001>

<bundles_post_ra>
// kernel: tpu_custom_call.1
= control target key start
LH: loop header
LB: loop body
LE: loop exit
PB: predicated region body
PF: predicated region fallthrough
CT: control target
= control target key end

     0   :  { %17 = vsyncpa [#allocation3], 0  ;;  %vm111_vm0 = vcmask 261120   ;;  %s6525_s0 = inlined_call_operand.vmem [shape: f32[2,64,32], index: 0, kind: input, shape index: {}]   ;;  %s6526_s1 = inlined_call_operand.vmem [shape: f32[2,64,4], index: 1, kind: input, shape index: {}]   ;;  %s6527_s2 = inlined_call_operand.vmem [shape: f32[2,2,64], index: 2, kind: input, shape index: {}]   ;;  %s6528_s3 = inlined_call_operand.vmem [shape: f32[2,8,32], index: 3, kind: input, shape index: {}]   ;;  %s6529_s4 = inlined_call_operand.vmem [shape: f32[32,34], index: 4, kind: input, shape index: {}]   ;;  %s6530_s5 = inlined_call_operand.vmem [shape: f32[32,32], index: 5, kind: input, shape index: {}]   ;;  %s6531_s6 = inlined_call_operand.vmem [shape: f32[32,32], index: 6, kind: input, shape index: {}]   ;;  %s6532_s7 = inlined_call_operand.vmem [shape: f32[67,192], index: 7, kind: input, shape index: {}]   ;;  %s6533_s8 = inlined_call_operand.vmem [shape: f32[2,32], index: 8, kind: input, shape index: {}]   ;;  %s6534_s9 = inlined_call_operand.vmem [shape: f32[2,32], index: 9, kind: input, shape index: {}]   ;;  %s6535_s10 = inlined_call_operand.hbm [shape: f32[2,8,128], index: 10, kind: output, shape index: {0}]   ;;  %s6536_s11 = inlined_call_operand.hbm [shape: f32[2,8,128], index: 11, kind: output, shape index: {1}]  }
   0x1   :  { %v39_v0 = vld [vmem:[%s6525_s0] sm:$0xff]  ;;  %v40_v1 = vld [vmem:[%s6525_s0 + $0x8] sm:$0xff]  ;;  %v5151_v8 = vld [vmem:[%s6525_s0 + $0x10] sm:$0xff] }
   0x2   :  { %v5135_v2 = vld [vmem:[%s6525_s0 + $0x40] sm:$0xff]  ;;  %v112_v3 = vsel %vm111_vm0, %v39_v0, 0.0  ;;  %v115_v4 = vsel %vm111_vm0, %v40_v1, 0.0  ;;  %v5142_v5 = vld [vmem:[%s6525_s0 + $0x48] sm:$0xff]  ;;  %v5156_v9 = vld [vmem:[%s6525_s0 + $0x50] sm:$0xff] }
   0x3   :  { %113 = vadd.xlane.f32.xlu0 %v112_v3  ;;  %116 = vadd.xlane.f32.xlu1 %v115_v4  ;;  %v136_v6 = vsel %vm111_vm0, %v5135_v2, 0.0  ;;  %v139_v7 = vsel %vm111_vm0, %v5142_v5, 0.0 }
   0x7   :  { %137 = vadd.xlane.f32.xlu0 %v136_v6  ;;  %140 = vadd.xlane.f32.xlu1 %v139_v7 }
   0x8   :  { %18 = vsyncpa [#allocation5], 0  ;;  %v118_v10 = vsel %vm111_vm0, %v5151_v8, 0.0  ;;  %v142_v11 = vsel %vm111_vm0, %v5156_v9, 0.0  ;;  %v5165_v12 = vld [vmem:[%s6525_s0 + $0x18] sm:$0xff]  ;;  %v5179_v16 = vld [vmem:[%s6525_s0 + $0x20] sm:$0xff] }
   0x9   :  { %v5170_v13 = vld [vmem:[%s6525_s0 + $0x58] sm:$0xff]  ;;  %v121_v14 = vsel %vm111_vm0, %v5165_v12, 0.0  ;;  %v5184_v17 = vld [vmem:[%s6525_s0 + $0x60] sm:$0xff]  ;;  %v124_v18 = vsel %vm111_vm0, %v5179_v16, 0.0  ;;  %v5193_v20 = vld [vmem:[%s6525_s0 + $0x28] sm:$0xff]  ;;  %vm5049_vm1 = vmmov 0  }
   0xa   :  { %v145_v15 = vsel %vm111_vm0, %v5170_v13, 0.0  ;;  %v148_v19 = vsel %vm111_vm0, %v5184_v17, 0.0  ;;  %v5198_v21 = vld [vmem:[%s6525_s0 + $0x68] sm:$0xff]  ;;  %v127_v22 = vsel %vm111_vm0, %v5193_v20, 0.0  ;;  %v5207_v24 = vld [vmem:[%s6525_s0 + $0x30] sm:$0xff]  ;;  %v5221_v28 = vld [vmem:[%s6525_s0 + $0x38] sm:$0xff] }
   0xb   :  { %119 = vadd.xlane.f32.xlu0 %v118_v10  ;;  %143 = vadd.xlane.f32.xlu1 %v142_v11  ;;  %v151_v23 = vsel %vm111_vm0, %v5198_v21, 0.0  ;;  %v5212_v25 = vld [vmem:[%s6525_s0 + $0x70] sm:$0xff]  ;;  %v130_v26 = vsel %vm111_vm0, %v5207_v24, 0.0  ;;  %v5226_v29 = vld [vmem:[%s6525_s0 + $0x78] sm:$0xff]  ;;  %v133_v30 = vsel %vm111_vm0, %v5221_v28, 0.0  ;;  %v5235_v32 = vld [vmem:[%s6528_s3] sm:$0xff] }
   0xc   :  { %v154_v27 = vsel %vm111_vm0, %v5212_v25, 0.0  ;;  %v157_v31 = vsel %vm111_vm0, %v5226_v29, 0.0  ;;  %v5240_v33 = vld [vmem:[%s6528_s3 + $0x8] sm:$0xff]  ;;  %v942_v34 = vsel %vm111_vm0, %v5235_v32, 0.0  ;;  %vm1152_vm2 = vcmask 269312   ;;  %s5051_s25 = smov 127  }
   0xd   :  { %v945_v35 = vsel %vm111_vm0, %v5240_v33, 0.0  ;;  %vm909_vm3 = vcmask 277504   ;;  %s5053_s29 = smov 2   ;;  %vm1157_vm4 = vcmask 285696   ;;  %vm1352_vm6 = vcmask 523264   ;;  %s5054_s15 = smov 34  }
   0xe   :  { %vm5718_vm5 = vmpackc.low %vm1157_vm4, %vm1157_vm4  ;;  %vm1604_vm7 = vcmask 1042432   ;;  %vm1597_vm8 = vcmask 539648   ;;  %vm1600_vm9 = vcmask 547840   ;;  %s5055_s23 = smov 96   ;;  %s5056_s24 = smov 64  }
   0xf   :  { %122 = vadd.xlane.f32.xlu0 %v121_v14  ;;  %146 = vadd.xlane.f32.xlu1 %v145_v15  ;;  %s5063_s0 = smov [#allocation4]  }
  0x13   :  { %125 = vadd.xlane.f32.xlu0 %v124_v18  ;;  %149 = vadd.xlane.f32.xlu1 %v148_v19 }
  0x17   :  { %128 = vadd.xlane.f32.xlu0 %v127_v22  ;;  %152 = vadd.xlane.f32.xlu1 %v151_v23 }
  0x1b   :  { %131 = vadd.xlane.f32.xlu0 %v130_v26  ;;  %155 = vadd.xlane.f32.xlu1 %v154_v27 }
  0x1f   :  { %134 = vadd.xlane.f32.xlu0 %v133_v30  ;;  %158 = vadd.xlane.f32.xlu1 %v157_v31 }
  0x23   :  { %943 = vadd.xlane.f32.xlu0 %v942_v34  ;;  %946 = vadd.xlane.f32.xlu1 %v945_v35 }
  0x90   :  { %v114_v36 = vpop.xlane.xlu0 %113  ;;  %v117_v37 = vpop.xlane.xlu1 %116 }
  0x91   :  { %v161_v38 = vmul.f32 0.03125, %v114_v36  ;;  %v162_v39 = vmul.f32 0.03125, %v117_v37 }
  0x93   :  { %v5246_v40 = vsub.f32 %v39_v0, %v161_v38  ;;  %v5248_v41 = vsub.f32 %v40_v1, %v162_v39 }
  0x94   :  { %v138_v42 = vpop.xlane.xlu0 %137  ;;  %v141_v43 = vpop.xlane.xlu1 %140 }
  0x95   :  { %v169_v44 = vmul.f32 0.03125, %v138_v42  ;;  %v170_v45 = vmul.f32 0.03125, %v141_v43  ;;  %v193_v46 = vmul.f32 %v5246_v40, %v5246_v40  ;;  %v194_v47 = vmul.f32 %v5248_v41, %v5248_v41 }
  0x97   :  { %v5255_v48 = vsub.f32 %v5135_v2, %v169_v44  ;;  %v5258_v49 = vsub.f32 %v5142_v5, %v170_v45  ;;  %v209_v50 = vsel %vm111_vm0, %v193_v46, 0.0  ;;  %v212_v53 = vsel %vm111_vm0, %v194_v47, 0.0 }
  0x98   :  { %210 = vadd.xlane.f32.xlu0 %v209_v50  ;;  %v120_v51 = vpop.xlane.xlu0 %119  ;;  %v144_v52 = vpop.xlane.xlu1 %143 }
  0x99   :  { %v163_v54 = vmul.f32 0.03125, %v120_v51  ;;  %v171_v55 = vmul.f32 0.03125, %v144_v52  ;;  %v201_v56 = vmul.f32 %v5255_v48, %v5255_v48  ;;  %v202_v57 = vmul.f32 %v5258_v49, %v5258_v49 }
  0x9b   :  { %v5267_v58 = vsub.f32 %v5151_v8, %v163_v54  ;;  %v5270_v59 = vsub.f32 %v5156_v9, %v171_v55  ;;  %v233_v60 = vsel %vm111_vm0, %v201_v56, 0.0  ;;  %v236_v63 = vsel %vm111_vm0, %v202_v57, 0.0 }
  0x9c   :  { %213 = vadd.xlane.f32.xlu0 %v212_v53  ;;  %234 = vadd.xlane.f32.xlu1 %v233_v60  ;;  %v123_v61 = vpop.xlane.xlu0 %122  ;;  %v147_v62 = vpop.xlane.xlu1 %146 }
  0x9d   :  { %v164_v0 = vmul.f32 0.03125, %v123_v61  ;;  %v172_v1 = vmul.f32 0.03125, %v147_v62  ;;  %v195_v2 = vmul.f32 %v5267_v58, %v5267_v58  ;;  %v203_v3 = vmul.f32 %v5270_v59, %v5270_v59 }
  0x9f   :  { %v5279_v4 = vsub.f32 %v5165_v12, %v164_v0  ;;  %v5282_v5 = vsub.f32 %v5170_v13, %v172_v1  ;;  %v215_v6 = vsel %vm111_vm0, %v195_v2, 0.0  ;;  %v239_v9 = vsel %vm111_vm0, %v203_v3, 0.0 }
  0xa0   :  { %237 = vadd.xlane.f32.xlu1 %v236_v63  ;;  %216 = vadd.xlane.f32.xlu0 %v215_v6  ;;  %v126_v7 = vpop.xlane.xlu0 %125  ;;  %v150_v8 = vpop.xlane.xlu1 %149 }
  0xa1   :  { %v165_v10 = vmul.f32 0.03125, %v126_v7  ;;  %v173_v11 = vmul.f32 0.03125, %v150_v8  ;;  %v196_v14 = vmul.f32 %v5279_v4, %v5279_v4  ;;  %v204_v12 = vmul.f32 %v5282_v5, %v5282_v5 }
  0xa3   :  { %v5291_v15 = vsub.f32 %v5179_v16, %v165_v10  ;;  %v5294_v13 = vsub.f32 %v5184_v17, %v173_v11  ;;  %v218_v18 = vsel %vm111_vm0, %v196_v14, 0.0  ;;  %v242_v23 = vsel %vm111_vm0, %v204_v12, 0.0  ;;  %v106_v10 = vld [vmem:[%s6530_s5 + $0x18] sm:$0xff]  ;;  %v107_v14 = vld [vmem:[%s6531_s6] sm:$0xff]  ;;  %v108_v12 = vld [vmem:[%s6531_s6 + $0x8] sm:$0xff] }
  0xa4   :  { %240 = vadd.xlane.f32.xlu1 %v239_v9  ;;  %219 = vadd.xlane.f32.xlu0 %v218_v18  ;;  %v129_v19 = vpop.xlane.xlu0 %128  ;;  %v153_v22 = vpop.xlane.xlu1 %152  ;;  %v105_v9 = vld [vmem:[%s6530_s5 + $0x10] sm:$0xff]  ;;  %v5370_v18 = vpack.c.bf16 %v108_v12, %v107_v14 }
  0xa5   :  { %v166_v26 = vmul.f32 0.03125, %v129_v19  ;;  %v174_v27 = vmul.f32 0.03125, %v153_v22  ;;  %v197_v30 = vmul.f32 %v5291_v15, %v5291_v15  ;;  %v205_v16 = vmul.f32 %v5294_v13, %v5294_v13 }
  0xa6   :  { %v4439_v11 = vpack.c.bf16 %v106_v10, %v105_v9  ;;  %v109_v9 = vld [vmem:[%s6531_s6 + $0x10] sm:$0xff]  ;;  %v110_v10 = vld [vmem:[%s6531_s6 + $0x18] sm:$0xff]  ;;  %s5052_s6 = smov 32  }
  0xa7   :  { %v5303_v31 = vsub.f32 %v5193_v20, %v166_v26  ;;  %v5306_v17 = vsub.f32 %v5198_v21, %v174_v27  ;;  %v221_v34 = vsel %vm111_vm0, %v197_v30, 0.0  ;;  %v245_v37 = vsel %vm111_vm0, %v205_v16, 0.0 }
  0xa8   :  { %243 = vadd.xlane.f32.xlu1 %v242_v23  ;;  %222 = vadd.xlane.f32.xlu0 %v221_v34  ;;  %v132_v35 = vpop.xlane.xlu0 %131  ;;  %v156_v36 = vpop.xlane.xlu1 %155 }
  0xa9   :  { %v167_v38 = vmul.f32 0.03125, %v132_v35  ;;  %v175_v39 = vmul.f32 0.03125, %v156_v36  ;;  %v198_v42 = vmul.f32 %v5303_v31, %v5303_v31  ;;  %v206_v20 = vmul.f32 %v5306_v17, %v5306_v17 }
  0xab   :  { %v5315_v43 = vsub.f32 %v5207_v24, %v167_v38  ;;  %v5318_v21 = vsub.f32 %v5212_v25, %v175_v39  ;;  %v224_v44 = vsel %vm111_vm0, %v198_v42, 0.0  ;;  %v248_v47 = vsel %vm111_vm0, %v206_v20, 0.0 }
  0xac   :  { %246 = vadd.xlane.f32.xlu1 %v245_v37  ;;  %225 = vadd.xlane.f32.xlu0 %v224_v44  ;;  %v135_v45 = vpop.xlane.xlu0 %134  ;;  %v159_v46 = vpop.xlane.xlu1 %158 }
  0xad   :  { %v168_v50 = vmul.f32 0.03125, %v135_v45  ;;  %v176_v51 = vmul.f32 0.03125, %v159_v46  ;;  %v199_v52 = vmul.f32 %v5315_v43, %v5315_v43  ;;  %v207_v24 = vmul.f32 %v5318_v21, %v5318_v21 }
  0xaf   :  { %v5327_v53 = vsub.f32 %v5221_v28, %v168_v50  ;;  %v5330_v25 = vsub.f32 %v5226_v29, %v176_v51  ;;  %v227_v54 = vsel %vm111_vm0, %v199_v52, 0.0  ;;  %v251_v57 = vsel %vm111_vm0, %v207_v24, 0.0  ;;  %v5377_v24 = vld [vmem:[%s6533_s8] ss:$0 sm:$0xff] }
  0xb0   :  { %249 = vadd.xlane.f32.xlu1 %v248_v47  ;;  %228 = vadd.xlane.f32.xlu0 %v227_v54  ;;  %v944_v55 = vpop.xlane.xlu0 %943  ;;  %v947_v56 = vpop.xlane.xlu1 %946 }
  0xb1   :  { %v948_v60 = vmul.f32 0.03125, %v944_v55  ;;  %v949_v61 = vmul.f32 0.03125, %v947_v56  ;;  %v200_v62 = vmul.f32 %v5327_v53, %v5327_v53  ;;  %v208_v28 = vmul.f32 %v5330_v25, %v5330_v25 }
  0xb3   :  { %v5339_v63 = vsub.f32 %v5235_v32, %v948_v60  ;;  %v5342_v29 = vsub.f32 %v5240_v33, %v949_v61  ;;  %v230_v0 = vsel %vm111_vm0, %v200_v62, 0.0  ;;  %v254_v1 = vsel %vm111_vm0, %v208_v28, 0.0  ;;  %v103_v32 = vld [vmem:[%s6530_s5] sm:$0xff]  ;;  %v104_v33 = vld [vmem:[%s6530_s5 + $0x8] sm:$0xff]  ;;  %s5057_s5 = smov 126  }
  0xb4   :  { %252 = vadd.xlane.f32.xlu1 %v251_v57  ;;  %231 = vadd.xlane.f32.xlu0 %v230_v0  ;;  %v4435_v6 = vpack.c.bf16 %v104_v33, %v103_v32  ;;  %v5383_v61 = vld [vmem:[%s6533_s8 + $0x1] ss:$0 sm:$0xff] }
  0xb5   :  { %v952_v2 = vmul.f32 %v5339_v63, %v5339_v63  ;;  %v953_v3 = vmul.f32 %v5342_v29, %v5342_v29 }
  0xb6   :  { %4436 = vmatprep.subr.bf16.mxu0 %v4435_v6  ;;  %4444 = vmatprep.subr.bf16.mxu1 %v4435_v6 }
  0xb7   :  { %v954_v7 = vsel %vm111_vm0, %v952_v2, 0.0  ;;  %v957_v8 = vsel %vm111_vm0, %v953_v3, 0.0  ;;  %4438 = vmatpush3.bf16.msra.mxu0 %v4435_v6  ;;  %4446 = vmatpush3.bf16.msra.mxu1 %v4435_v6 }
  0xb8   :  { %255 = vadd.xlane.f32.xlu1 %v254_v1  ;;  %955 = vadd.xlane.f32.xlu0 %v954_v7 }
  0xb9   :  { %4440 = vmatprep.subr.bf16.mxu0 %v4439_v11  ;;  %4448 = vmatprep.subr.bf16.mxu1 %v4439_v11 }
  0xbb   :  { %4442 = vmatpush3.bf16.msra.mxu0 %v4439_v11  ;;  %4450 = vmatpush3.bf16.msra.mxu1 %v4439_v11 }
  0xbc   :  { %958 = vadd.xlane.f32.xlu1 %v957_v8  ;;  %4452 = vmatprep.subr.bf16.mxu0 %v5370_v18 }
  0xbd   :  { %4460 = vmatprep.subr.bf16.mxu1 %v5370_v18 }
 0x125   :  { %v211_v19 = vpop.xlane.xlu0 %210 }
 0x126   :  { %v257_v22 = vmul.f32 0.03125, %v211_v19 }
 0x128   :  { %v273_v23 = vadd.f32 1e-05, %v257_v22 }
 0x129   :  { %v235_v26 = vpop.xlane.xlu1 %234  ;;  %v214_v27 = vpop.xlane.xlu0 %213 }
 0x12a   :  { %4832 = vrsqrt.f32 %v273_v23  ;;  %v265_v30 = vmul.f32 0.03125, %v235_v26  ;;  %v258_v16 = vmul.f32 0.03125, %v214_v27 }
 0x12c   :  { %v281_v34 = vadd.f32 1e-05, %v265_v30  ;;  %v274_v35 = vadd.f32 1e-05, %v258_v16  ;;  %v4455_v30 = vpack.c.bf16 %v110_v10, %v109_v9 }
 0x12d   :  { %v238_v36 = vpop.xlane.xlu1 %237  ;;  %v217_v37 = vpop.xlane.xlu0 %216 }
 0x12e   :  { %4834 = vrsqrt.f32 %v281_v34  ;;  %v266_v38 = vmul.f32 0.03125, %v238_v36  ;;  %v259_v39 = vmul.f32 0.03125, %v217_v37 }
 0x12f   :  { %4836 = vrsqrt.f32 %v274_v35 }
 0x130   :  { %v282_v42 = vadd.f32 1e-05, %v266_v38  ;;  %v275_v20 = vadd.f32 1e-05, %v259_v39 }
 0x131   :  { %v241_v44 = vpop.xlane.xlu1 %240  ;;  %v220_v45 = vpop.xlane.xlu0 %219 }
 0x132   :  { %4838 = vrsqrt.f32 %v282_v42  ;;  %v267_v46 = vmul.f32 0.03125, %v241_v44  ;;  %v260_v47 = vmul.f32 0.03125, %v220_v45 }
 0x133   :  { %4840 = vrsqrt.f32 %v275_v20 }
 0x134   :  { %v4833_v50 = vpop.eup %4832  ;;  %v283_v51 = vadd.f32 1e-05, %v267_v46  ;;  %v276_v52 = vadd.f32 1e-05, %v260_v47 }
 0x135   :  { %v244_v54 = vpop.xlane.xlu1 %243  ;;  %v223_v55 = vpop.xlane.xlu0 %222  ;;  %v305_v56 = vmul.f32 %v4833_v50, %v5246_v40 }
 0x136   :  { %4842 = vrsqrt.f32 %v283_v51  ;;  %v268_v57 = vmul.f32 0.03125, %v244_v54  ;;  %v261_v60 = vmul.f32 0.03125, %v223_v55 }
 0x137   :  { %4844 = vrsqrt.f32 %v276_v52  ;;  %v325_v62 = vmul.f32 %v5377_v24, %v305_v56 }
 0x138   :  { %v4835_v28 = vpop.eup %4834  ;;  %v284_v0 = vadd.f32 1e-05, %v268_v57  ;;  %v277_v1 = vadd.f32 1e-05, %v261_v60 }
 0x139   :  { %v4837_v2 = vpop.eup %4836  ;;  %v247_v3 = vpop.xlane.xlu1 %246  ;;  %v5387_v33 = vadd.f32 %v5383_v61, %v325_v62  ;;  %v313_v40 = vmul.f32 %v4835_v28, %v5255_v48 }
 0x13a   :  { %v226_v32 = vpop.xlane.xlu0 %225  ;;  %4846 = vrsqrt.f32 %v284_v0  ;;  %v269_v6 = vmul.f32 0.03125, %v247_v3  ;;  %v306_v8 = vmul.f32 %v4837_v2, %v5248_v41  ;;  %v5048_v3 = vmov 0.0|0.0  }
 0x13b   :  { %v262_v7 = vmul.f32 0.03125, %v226_v32  ;;  %4848 = vrsqrt.f32 %v277_v1  ;;  %4069 = vmatprep.mubr.msk.f32.mxu0 %vm111_vm0, %v5387_v33  ;;  %v333_v11 = vmul.f32 %v5377_v24, %v313_v40 }
 0x13c   :  { %v4839_v48 = vpop.eup %4838  ;;  %v285_v14 = vadd.f32 1e-05, %v269_v6  ;;  %v326_v19 = vmul.f32 %v5377_v24, %v306_v8 }
 0x13d   :  { %v278_v12 = vadd.f32 1e-05, %v262_v7  ;;  %v4841_v41 = vpop.eup %4840  ;;  %v250_v22 = vpop.xlane.xlu1 %249  ;;  %v5402_v26 = vadd.f32 %v5383_v61, %v333_v11  ;;  %v314_v27 = vmul.f32 %v4839_v48, %v5258_v49 }
 0x13e   :  { %v229_v23 = vpop.xlane.xlu0 %228  ;;  %4850 = vrsqrt.f32 %v285_v14  ;;  %v270_v16 = vmul.f32 0.03125, %v250_v22  ;;  %v5406_v35 = vadd.f32 %v5383_v61, %v326_v19  ;;  %v307_v36 = vmul.f32 %v4841_v41, %v5267_v58 }
 0x13f   :  { %v263_v34 = vmul.f32 0.03125, %v229_v23  ;;  %4852 = vrsqrt.f32 %v278_v12  ;;  %4089 = vmatprep.mubr.msk.f32.mxu1 %vm111_vm0, %v5402_v26  ;;  %v334_v37 = vmul.f32 %v5377_v24, %v314_v27 }
 0x140   :  { %v4843_v38 = vpop.eup %4842  ;;  %v286_v39 = vadd.f32 1e-05, %v270_v16  ;;  %4070 = vmatmul.mubr.msk.f32.vlgmr.msra.gmra.mrb[0].mxu0 %vm111_vm0, %v5406_v35  ;;  %v327_v45 = vmul.f32 %v5377_v24, %v307_v36 }
 0x141   :  { %v279_v42 = vadd.f32 1e-05, %v263_v34  ;;  %v4845_v49 = vpop.eup %4844  ;;  %v253_v20 = vpop.xlane.xlu1 %252  ;;  %v5416_v46 = vadd.f32 %v5383_v61, %v334_v37  ;;  %v315_v47 = vmul.f32 %v4843_v38, %v5270_v59  ;;  %4454 = vmatpush3.bf16.msra.mxu0 %v5370_v18 }
 0x142   :  { %v232_v44 = vpop.xlane.xlu0 %231  ;;  %4854 = vrsqrt.f32 %v286_v39  ;;  %v271_v58 = vmul.f32 0.03125, %v253_v20  ;;  %v308_v51 = vmul.f32 %v4845_v49, %v5279_v4  ;;  %4456 = vmatprep.subr.bf16.mxu0 %v4455_v30  ;;  %v5422_v52 = vadd.f32 %v5383_v61, %v327_v45 }
 0x143   :  { %v264_v50 = vmul.f32 0.03125, %v232_v44  ;;  %4856 = vrsqrt.f32 %v279_v42  ;;  %4090 = vmatmul.mubr.msk.f32.vlgmr.msra.gmra.mrb[0].mxu1 %vm111_vm0, %v5416_v46  ;;  %v335_v54 = vmul.f32 %v5377_v24, %v315_v47 }
 0x144   :  { %v4847_v55 = vpop.eup %4846  ;;  %v287_v56 = vadd.f32 1e-05, %v271_v58  ;;  %v328_v57 = vmul.f32 %v5377_v24, %v308_v51  ;;  %4462 = vmatpush3.bf16.msra.mxu1 %v5370_v18  ;;  %4072 = vmatprep.mubr.msk.f32.mxu0 %vm111_vm0, %v5422_v52  ;;  %v82_v58 = vld [vmem:[%s6529_s4 + $0x8] sm:$0xff] }
 0x145   :  { %v280_v59 = vadd.f32 1e-05, %v264_v50  ;;  %v4849_v60 = vpop.eup %4848  ;;  %v256_v4 = vpop.xlane.xlu1 %255  ;;  %v5432_v62 = vadd.f32 %v5383_v61, %v335_v54  ;;  %v316_v28 = vmul.f32 %v4847_v55, %v5282_v5  ;;  %4464 = vmatprep.subr.bf16.mxu1 %v4455_v30  ;;  %4458 = vmatpush3.bf16.msra.mxu0 %v4455_v30  ;;  %v83_v54 = vld [vmem:[%s6529_s4 + $0x10] sm:$0xff]  ;;  %v5538_v55 = vld [vmem:[%s6534_s9 + $0x1] ss:$0 sm:$0xff] }
 0x146   :  { %4858 = vrsqrt.f32 %v287_v56  ;;  %v272_v0 = vmul.f32 0.03125, %v256_v4  ;;  %v5436_v1 = vadd.f32 %v5383_v61, %v328_v57  ;;  %v309_v18 = vmul.f32 %v4849_v60, %v5291_v15  ;;  %4467 = vmatprep.subr.bf16.mxu0 %v5048_v3  ;;  %v956_v15 = vpop.xlane.xlu0 %955 }
 0x147   :  { %4860 = vrsqrt.f32 %v280_v59  ;;  %4092 = vmatprep.mubr.msk.f32.mxu1 %vm111_vm0, %v5432_v62  ;;  %v336_v2 = vmul.f32 %v5377_v24, %v316_v28  ;;  %v960_v19 = vmul.f32 0.03125, %v956_v15  ;;  %v5050_v56 = vmov 0.0  }
 0x148   :  { %v4851_v32 = vpop.eup %4850  ;;  %v288_v5 = vadd.f32 1e-05, %v272_v0  ;;  %4073 = vmatmul.mubr.msk.f32.gmra.mrb[2].mxu0 %vm111_vm0, %v5436_v1  ;;  %4466 = vmatpush3.bf16.msra.mxu1 %v4455_v30  ;;  %v329_v6 = vmul.f32 %v5377_v24, %v309_v18 }
 0x149   :  { %v4853_v40 = vpop.eup %4852  ;;  %v5447_v7 = vadd.f32 %v5383_v61, %v336_v2  ;;  %v317_v8 = vmul.f32 %v4851_v32, %v5294_v13  ;;  %4473 = vmatprep.subr.bf16.mxu1 %v5048_v3  ;;  %v959_v41 = vpop.xlane.xlu1 %958  ;;  %v962_v37 = vadd.f32 1e-05, %v960_v19 }
 0x14a   :  { %4862 = vrsqrt.f32 %v288_v5  ;;  %v310_v9 = vmul.f32 %v4853_v40, %v5303_v31  ;;  %v349_v10 = vadd.f32 %v5383_v61, %v329_v6  ;;  %v961_v16 = vmul.f32 0.03125, %v959_v41 }
 0x14b   :  { %4093 = vmatmul.mubr.msk.f32.gmra.mrb[2].mxu1 %vm111_vm0, %v5447_v7  ;;  %v337_v11 = vmul.f32 %v5377_v24, %v317_v8  ;;  %4864 = vrsqrt.f32 %v962_v37 }
 0x14c   :  { %v4855_v48 = vpop.eup %4854  ;;  %v330_v14 = vmul.f32 %v5377_v24, %v310_v9  ;;  %4075 = vmatprep.mubr.msk.f32.mxu0 %vm111_vm0, %v349_v10  ;;  %v963_v20 = vadd.f32 1e-05, %v961_v16 }
 0x14d   :  { %v4857_v12 = vpop.eup %4856  ;;  %v357_v13 = vadd.f32 %v5383_v61, %v337_v11  ;;  %v318_v22 = vmul.f32 %v4855_v48, %v5306_v17 }
 0x14e   :  { %v350_v31 = vadd.f32 %v5383_v61, %v330_v14  ;;  %v311_v23 = vmul.f32 %v4857_v12, %v5315_v43  ;;  %4866 = vrsqrt.f32 %v963_v20 }
 0x14f   :  { %4095 = vmatprep.mubr.msk.f32.mxu1 %vm111_vm0, %v357_v13  ;;  %v338_v27 = vmul.f32 %v5377_v24, %v318_v22 }
 0x150   :  { %v4859_v30 = vpop.eup %4858  ;;  %4076 = vmatmul.mubr.msk.f32.gmra.mrb[4].mxu0 %vm111_vm0, %v350_v31  ;;  %v331_v34 = vmul.f32 %v5377_v24, %v311_v23 }
 0x151   :  { %v4861_v36 = vpop.eup %4860  ;;  %v358_v38 = vadd.f32 %v5383_v61, %v338_v27  ;;  %v319_v17 = vmul.f32 %v4859_v30, %v5318_v21 }
 0x152   :  { %v351_v39 = vadd.f32 %v5383_v61, %v331_v34  ;;  %v312_v43 = vmul.f32 %v4861_v36, %v5327_v53  ;;  %v81_v53 = vld [vmem:[%s6529_s4] sm:$0xff] }
 0x153   :  { %4096 = vmatmul.mubr.msk.f32.gmra.mrb[4].mxu1 %vm111_vm0, %v358_v38  ;;  %v339_v42 = vmul.f32 %v5377_v24, %v319_v17  ;;  %v5489_v51 = vpack.c.bf16 %v82_v58, %v81_v53  ;;  %v55_v53 = vld [vmem:[%s6526_s1] sm:$0xff]  ;;  %v56_v58 = vld [vmem:[%s6526_s1 + $0x8] sm:$0xff] }
 0x154   :  { %v4863_v49 = vpop.eup %4862  ;;  %4078 = vmatprep.mubr.msk.f32.mxu0 %vm111_vm0, %v351_v39  ;;  %v332_v44 = vmul.f32 %v5377_v24, %v312_v43  ;;  %v58_v43 = vld [vmem:[%s6526_s1 + $0x18] sm:$0xff] }
 0x155   :  { %v359_v45 = vadd.f32 %v5383_v61, %v339_v42  ;;  %v320_v47 = vmul.f32 %v4863_v49, %v5330_v25 }
 0x156   :  { %v352_v21 = vadd.f32 %v5383_v61, %v332_v44 }
 0x157   :  { %4098 = vmatprep.mubr.msk.f32.mxu1 %vm111_vm0, %v359_v45  ;;  %v340_v50 = vmul.f32 %v5377_v24, %v320_v47  ;;  %v84_v24 = vld [vmem:[%s6529_s4 + $0x18] sm:$0xff] }
 0x158   :  { %4079 = vmatmul.mubr.msk.f32.gmra.mrb[6].mxu0 %vm111_vm0, %v352_v21 }
 0x159   :  { %4109 = vmatprep.mubr.msk.f32.mxu0 %vm111_vm0, %v5387_v33  ;;  %v360_v25 = vadd.f32 %v5383_v61, %v340_v50  ;;  %v5506_v61 = vpack.c.bf16 %v84_v24, %v83_v54  ;;  %v4865_v33 = vpop.eup %4864  ;;  %v59_v54 = vld [vmem:[%s6526_s1 + $0x20] sm:$0xff]  ;;  %v60_v24 = vld [vmem:[%s6526_s1 + $0x28] sm:$0xff] }
 0x15b   :  { %4099 = vmatmul.mubr.msk.f32.gmra.mrb[6].mxu1 %vm111_vm0, %v360_v25 }
 0x15c   :  { %4110 = vmatmul.mubr.msk.f32.vlgmr.msra.gmra.mrb[8].mxu0 %vm111_vm0, %v5406_v35  ;;  %4129 = vmatprep.mubr.msk.f32.mxu1 %vm111_vm0, %v5402_v26  ;;  %v4867_v26 = vpop.eup %4866  ;;  %v966_v35 = vmul.f32 %v4865_v33, %v5339_v63 }
 0x15d   :  { %4112 = vmatprep.mubr.msk.f32.mxu0 %vm111_vm0, %v5422_v52  ;;  %4469 = vmatpush3.bf16.msra.mxu0 %v5489_v51  ;;  %v967_v63 = vmul.f32 %v4867_v26, %v5342_v29  ;;  %v4785_v26 = vpack.i.bf16 %v56_v58, %v55_v53 }
 0x15e   :  { %4470 = vmatprep.subr.bf16.mxu0 %v5048_v3 }
 0x15f   :  { %4130 = vmatmul.mubr.msk.f32.vlgmr.msra.gmra.mrb[8].mxu1 %vm111_vm0, %v5416_v46  ;;  %v5522_v46 = vld [vmem:[%s6534_s9] ss:$0 sm:$0xff] }
 0x160   :  { %4113 = vmatmul.mubr.msk.f32.gmra.mrb[10].mxu0 %vm111_vm0, %v5436_v1  ;;  %4475 = vmatpush3.bf16.msra.mxu1 %v5489_v51  ;;  %v972_v52 = vmul.f32 %v5522_v46, %v966_v35  ;;  %v973_v29 = vmul.f32 %v5522_v46, %v967_v63  ;;  %v4805_v35 = vpack.i.bf16 %v60_v24, %v59_v54  ;;  %v63_v63 = vld [vmem:[%s6526_s1 + $0x40] sm:$0xff] }
 0x161   :  { %4115 = vmatprep.mubr.msk.f32.mxu0 %vm111_vm0, %v349_v10  ;;  %4132 = vmatprep.mubr.msk.f32.mxu1 %vm111_vm0, %v5432_v62 }
 0x162   :  { %4476 = vmatprep.subr.bf16.mxu1 %v5048_v3  ;;  %4472 = vmatpush3.bf16.msra.mxu0 %v5506_v61  ;;  %v978_v59 = vadd.f32 %v5538_v55, %v972_v52  ;;  %v979_v57 = vadd.f32 %v5538_v55, %v973_v29  ;;  %v64_v52 = vld [vmem:[%s6526_s1 + $0x48] sm:$0xff]  ;;  %v61_v29 = vld [vmem:[%s6526_s1 + $0x30] sm:$0xff] }
 0x163   :  { %4133 = vmatmul.mubr.msk.f32.gmra.mrb[10].mxu1 %vm111_vm0, %v5447_v7  ;;  %4479 = vmatprep.subr.bf16.mxu0 %v5048_v3 }
 0x164   :  { %4116 = vmatmul.mubr.msk.f32.gmra.mrb[12].mxu0 %vm111_vm0, %v350_v31  ;;  %4135 = vmatprep.mubr.msk.f32.mxu1 %vm111_vm0, %v357_v13 }
 0x165   :  { %4118 = vmatprep.mubr.msk.f32.mxu0 %vm111_vm0, %v351_v39  ;;  %4478 = vmatpush3.bf16.msra.mxu1 %v5506_v61  ;;  %v57_v39 = vld [vmem:[%s6526_s1 + $0x10] sm:$0xff] }
 0x166   :  { %4495 = vmatprep.subr.bf16.mxu1 %v5048_v3 }
 0x167   :  { %4136 = vmatmul.mubr.msk.f32.gmra.mrb[12].mxu1 %vm111_vm0, %v358_v38 }
 0x168   :  { %4119 = vmatmul.mubr.msk.f32.gmra.mrb[14].mxu0 %vm111_vm0, %v352_v21  ;;  %4138 = vmatprep.mubr.msk.f32.mxu1 %vm111_vm0, %v359_v45  ;;  %v4795_v21 = vpack.i.bf16 %v58_v43, %v57_v39  ;;  %v67_v43 = vld [vmem:[%s6526_s1 + $0x60] sm:$0xff] }
 0x169   :  { %4149 = vmatprep.mubr.msk.f32.mxu0 %vm5049_vm1, %v5050_v56 }
 0x16b   :  { %4139 = vmatmul.mubr.msk.f32.gmra.mrb[14].mxu1 %vm111_vm0, %v360_v25 }
 0x16c   :  { %4150 = vmatmul.mubr.msk.f32.vlgmr.msra.gmra.mrb[16].mxu0 %vm111_vm0, %v978_v59  ;;  %4160 = vmatprep.mubr.msk.f32.mxu1 %vm5049_vm1, %v5050_v56  ;;  %v62_v59 = vld [vmem:[%s6526_s1 + $0x38] sm:$0xff] }
 0x16d   :  { %4179 = vmatprep.mubr.msk.f32.mxu0 %vm5049_vm1, %v5050_v56 }
 0x16f   :  { %4161 = vmatmul.mubr.msk.f32.vlgmr.msra.gmra.mrb[16].mxu1 %vm111_vm0, %v979_v57  ;;  %v4790_v57 = vpack.i.bf16 %v64_v52, %v63_v63 }
 0x170   :  { %4198 = vmatprep.mubr.msk.f32.mxu1 %vm5049_vm1, %v5050_v56 }
 0x213   :  { %v5556_v60 = vpop.f32.mrb[0].mxu0 }
 0x214   :  { %v5558_v4 = vpop.f32.mrb[1].mxu0 }
 0x216   :  { %v5560_v62 = vpop.f32.mrb[0].mxu1 }
 0x217   :  { %v5562_v28 = vpop.f32.mrb[1].mxu1 }
 0x21b   :  { %v5564_v0 = vpop.f32.mrb[2].mxu0 }
 0x21c   :  { %v5566_v1 = vpop.f32.mrb[3].mxu0 }
 0x21e   :  { %v5568_v18 = vpop.f32.mrb[2].mxu1 }
 0x21f   :  { %v5570_v2 = vpop.f32.mrb[3].mxu1 }
 0x223   :  { %v5572_v32 = vpop.f32.mrb[4].mxu0 }
 0x224   :  { %v5574_v5 = vpop.f32.mrb[5].mxu0 }
 0x226   :  { %v5576_v40 = vpop.f32.mrb[4].mxu1 }
 0x227   :  { %v5578_v6 = vpop.f32.mrb[5].mxu1 }
 0x22b   :  { %v5580_v7 = vpop.f32.mrb[6].mxu0 }
 0x22c   :  { %v5582_v8 = vpop.f32.mrb[7].mxu0 }
 0x22e   :  { %v5584_v15 = vpop.f32.mrb[6].mxu1 }
 0x22f   :  { %v5586_v9 = vpop.f32.mrb[8].mxu0  ;;  %v5588_v10 = vpop.f32.mrb[7].mxu1 }
 0x230   :  { %v5590_v11 = vpop.f32.mrb[9].mxu0 }
 0x232   :  { %v5592_v48 = vpop.f32.mrb[8].mxu1 }
 0x233   :  { %v5594_v14 = vpop.f32.mrb[10].mxu0  ;;  %v5596_v12 = vpop.f32.mrb[9].mxu1 }
 0x234   :  { %v5598_v19 = vpop.f32.mrb[11].mxu0 }
 0x236   :  { %v5600_v41 = vpop.f32.mrb[10].mxu1 }
 0x237   :  { %v5602_v13 = vpop.f32.mrb[12].mxu0  ;;  %v5604_v22 = vpop.f32.mrb[11].mxu1 }
 0x238   :  { %v5606_v31 = vpop.f32.mrb[13].mxu0 }
 0x23a   :  { %v5608_v23 = vpop.f32.mrb[12].mxu1 }
 0x23b   :  { %v5610_v27 = vpop.f32.mrb[14].mxu0  ;;  %v5612_v30 = vpop.f32.mrb[13].mxu1 }
 0x23c   :  { %v5614_v16 = vpop.f32.mrb[15].mxu0 }
 0x23e   :  { %v5616_v34 = vpop.f32.mrb[14].mxu1 }
 0x23f   :  { %v1049_v36 = vpop.f32.mrb[16].mxu0  ;;  %v5618_v37 = vpop.f32.mrb[15].mxu1 }
 0x240   :  { %v1126_v38 = vmul.f32 0.2, %v1049_v36  ;;  %v4151_v17 = vpop.f32.mrb[17].mxu0 }
 0x241   :  { %v66_v17 = vld [vmem:[%s6526_s1 + $0x58] sm:$0xff] }
 0x242   :  { %v1150_v42 = vsel %vm111_vm0, %v1049_v36, %v1126_v38  ;;  %v1122_v49 = vpop.f32.mrb[16].mxu1  ;;  %v1128_v20 = vmul.f32 0.0, %v1126_v38  ;;  %v4815_v36 = vpack.i.bf16 %v62_v59, %v61_v29 }
 0x243   :  { %v1127_v44 = vmul.f32 0.2, %v1122_v49  ;;  %v4162_v45 = vpop.f32.mrb[17].mxu1  ;;  %v5628_v47 = vsel %vm1152_vm2, %v1150_v42, %v1126_v38  ;;  %v65_v38 = vld [vmem:[%s6526_s1 + $0x50] sm:$0xff]  ;;  %v68_v42 = vld [vmem:[%s6526_s1 + $0x68] sm:$0xff] }
 0x244   :  { %1132 = vrot.lane.b32.xlu0 %v1128_v20, %s5051_s25  ;;  %v4800_v39 = vpack.i.bf16 %v66_v17, %v65_v38  ;;  %v70_v45 = vld [vmem:[%s6526_s1 + $0x78] sm:$0xff] }
 0x245   :  { %v1151_v50 = vsel %vm111_vm0, %v1122_v49, %v1127_v44  ;;  %v1129_v25 = vmul.f32 0.0, %v1127_v44  ;;  %v4810_v49 = vpack.i.bf16 %v68_v42, %v67_v43 }
 0x246   :  { %v5645_v33 = vsel %vm1152_vm2, %v1151_v50, %v1127_v44  ;;  %v69_v44 = vld [vmem:[%s6526_s1 + $0x70] sm:$0xff] }
 0x247   :  { %1134 = vrot.lane.b32.xlu1 %v1129_v25, %s5051_s25 }
 0x248   :  { %4796 = vrot.lane.b32.xlu0 %v4795_v21, %s5052_s6  ;;  %v4820_v21 = vpack.i.bf16 %v70_v45, %v69_v44 }
 0x24b   :  { %4786 = vrot.lane.b32.xlu1 %v4785_v26, %s5052_s6 }
 0x24c   :  { %4806 = vrot.lane.b32.xlu0 %v4805_v35, %s5052_s6 }
 0x24f   :  { %4791 = vrot.lane.b32.xlu1 %v4790_v57, %s5052_s6 }
 0x250   :  { %4816 = vrot.lane.b32.xlu0 %v4815_v36, %s5052_s6 }
 0x253   :  { %4801 = vrot.lane.b32.xlu1 %v4800_v39, %s5052_s6 }
 0x257   :  { %4811 = vrot.lane.b32.xlu1 %v4810_v49, %s5052_s6 }
 0x25b   :  { %4821 = vrot.lane.b32.xlu1 %v4820_v21, %s5052_s6 }
 0x2b6   :  { %v1133_v53 = vpop.permute.xlu0 %1132 }
 0x2b7   :  { %v1138_v58 = vadd.f32 %v1133_v53, %v1128_v20 }
 0x2b9   :  { %v1140_v50 = vsub.f32 0.0, %v1138_v58  ;;  %v1135_v54 = vpop.permute.xlu1 %1134 }
 0x2ba   :  { %v1139_v24 = vadd.f32 %v1135_v54, %v1129_v25  ;;  %v4797_v26 = vpop.permute.xlu0 %4796 }
 0x2bb   :  { %v4799_v35 = vunpack.i.h.bf16 %v4797_v26  ;;  %v4798_v63 = vunpack.i.l.bf16 %v4797_v26  ;;  %1144 = vrot.lane.b32.xlu0 %v1140_v50, %s5053_s29 }
 0x2bc   :  { %v1141_v52 = vsub.f32 0.0, %v1139_v24 }
 0x2bd   :  { %v896_v29 = vsel %vm111_vm0, %v5564_v0, %v4799_v35  ;;  %v929_v59 = vsel %vm111_vm0, %v5594_v14, %v4799_v35  ;;  %v895_v20 = vsel %vm111_vm0, %v5566_v1, %v4798_v63  ;;  %v928_v25 = vsel %vm111_vm0, %v5598_v19, %v4798_v63  ;;  %v4787_v57 = vpop.permute.xlu1 %4786 }
 0x2be   :  { %v913_v36 = vsel %vm909_vm3, %v896_v29, 1.0  ;;  %v912_v38 = vsel %vm909_vm3, %v895_v20, 1.0  ;;  %v4789_v17 = vunpack.i.h.bf16 %v4787_v57  ;;  %v4788_v39 = vunpack.i.l.bf16 %v4787_v57  ;;  %v4807_v43 = vpop.permute.xlu0 %4806  ;;  %1146 = vrot.lane.b32.xlu1 %v1141_v52, %s5053_s29 }
 0x2bf   :  { %v5698_v0 = vpack.c.bf16 %v913_v36, %v912_v38  ;;  %v4809_v42 = vunpack.i.h.bf16 %v4807_v43  ;;  %v4808_v14 = vunpack.i.l.bf16 %v4807_v43  ;;  %v5700_v49 = vpack.c.bf16 %v929_v59, %v928_v25 }
 0x2c0   :  { %v893_v1 = vsel %vm111_vm0, %v5558_v4, %v4788_v39  ;;  %v894_v19 = vsel %vm111_vm0, %v5556_v60, %v4789_v17  ;;  %v926_v44 = vsel %vm111_vm0, %v5590_v11, %v4788_v39  ;;  %v927_v45 = vsel %vm111_vm0, %v5586_v9, %v4789_v17 }
 0x2c1   :  { %v910_v21 = vsel %vm909_vm3, %v893_v1, 1.0  ;;  %v911_v53 = vsel %vm909_vm3, %v894_v19, 1.0  ;;  %v898_v58 = vsel %vm111_vm0, %v5572_v32, %v4809_v42  ;;  %v931_v50 = vsel %vm111_vm0, %v5602_v13, %v4809_v42  ;;  %v4792_v4 = vpop.permute.xlu1 %4791 }
 0x2c2   :  { %v5722_v11 = vpack.c.bf16 %v911_v53, %v910_v21  ;;  %v915_v9 = vsel %vm909_vm3, %v898_v58, 1.0  ;;  %v897_v54 = vsel %vm111_vm0, %v5574_v5, %v4808_v14  ;;  %v930_v32 = vsel %vm111_vm0, %v5606_v31, %v4808_v14  ;;  %v4817_v24 = vpop.permute.xlu0 %4816 }
 0x2c3   :  { %v914_v13 = vsel %vm909_vm3, %v897_v54, 1.0  ;;  %v4794_v26 = vunpack.i.h.bf16 %v4792_v4  ;;  %v4793_v35 = vunpack.i.l.bf16 %v4792_v4  ;;  %v4819_v63 = vunpack.i.h.bf16 %v4817_v24 }
 0x2c4   :  { %v5730_v52 = vpack.c.bf16 %v915_v9, %v914_v13  ;;  %v4818_v29 = vunpack.i.l.bf16 %v4817_v24  ;;  %4482 = vmatpush3.bf16.xpose.msk.msra.mxu0 %vm5718_vm5, %v5722_v11  ;;  %v5735_v59 = vpack.c.bf16 %v927_v45, %v926_v44  ;;  %v5737_v20 = vpack.c.bf16 %v931_v50, %v930_v32 }
 0x2c5   :  { %v902_v5 = vsel %vm111_vm0, %v5560_v62, %v4794_v26  ;;  %v935_v31 = vsel %vm111_vm0, %v5592_v48, %v4794_v26  ;;  %v901_v25 = vsel %vm111_vm0, %v5562_v28, %v4793_v35  ;;  %v934_v57 = vsel %vm111_vm0, %v5596_v12, %v4793_v35  ;;  %v4802_v36 = vpop.permute.xlu1 %4801  ;;  %4483 = vmatprep.subr.bf16.mxu0 %v5048_v3 }
 0x2c6   :  { %v919_v38 = vsel %vm909_vm3, %v902_v5, 1.0  ;;  %v918_v17 = vsel %vm909_vm3, %v901_v25, 1.0  ;;  %v900_v39 = vsel %vm111_vm0, %v5580_v7, %v4819_v63  ;;  %v933_v62 = vsel %vm111_vm0, %v5610_v27, %v4819_v63 }
 0x2c7   :  { %v5754_v48 = vpack.c.bf16 %v919_v38, %v918_v17  ;;  %v917_v28 = vsel %vm909_vm3, %v900_v39, 1.0  ;;  %v899_v12 = vsel %vm111_vm0, %v5582_v8, %v4818_v29  ;;  %v932_v43 = vsel %vm111_vm0, %v5614_v16, %v4818_v29 }
 0x2c8   :  { %v916_v42 = vsel %vm909_vm3, %v899_v12, 1.0  ;;  %v4804_v14 = vunpack.i.h.bf16 %v4802_v36  ;;  %v4803_v1 = vunpack.i.l.bf16 %v4802_v36  ;;  %v5762_v19 = vpack.c.bf16 %v935_v31, %v934_v57 }
 0x2c9   :  { %v5764_v7 = vpack.c.bf16 %v917_v28, %v916_v42  ;;  %4498 = vmatpush3.bf16.xpose.msk.msra.mxu1 %vm5718_vm5, %v5754_v48  ;;  %v4812_v27 = vpop.permute.xlu1 %4811  ;;  %v5769_v44 = vpack.c.bf16 %v933_v62, %v932_v43 }
 0x2ca   :  { %v904_v8 = vsel %vm111_vm0, %v5568_v18, %v4804_v14  ;;  %v937_v16 = vsel %vm111_vm0, %v5600_v41, %v4804_v14  ;;  %v903_v45 = vsel %vm111_vm0, %v5570_v2, %v4803_v1  ;;  %v936_v21 = vsel %vm111_vm0, %v5604_v22, %v4803_v1  ;;  %4499 = vmatprep.subr.bf16.mxu1 %v5048_v3 }
 0x2cb   :  { %v921_v53 = vsel %vm909_vm3, %v904_v8, 1.0  ;;  %v920_v58 = vsel %vm909_vm3, %v903_v45, 1.0  ;;  %v4814_v50 = vunpack.i.h.bf16 %v4812_v27  ;;  %v4813_v4 = vunpack.i.l.bf16 %v4812_v27 }
 0x2cc   :  { %v5782_v9 = vpack.c.bf16 %v921_v53, %v920_v58  ;;  %4486 = vmatpush3.bf16.xpose.msk.msra.mxu0 %vm5718_vm5, %v5698_v0  ;;  %v5787_v18 = vpack.c.bf16 %v937_v16, %v936_v21 }
 0x2cd   :  { %v906_v2 = vsel %vm111_vm0, %v5576_v40, %v4814_v50  ;;  %v939_v41 = vsel %vm111_vm0, %v5608_v23, %v4814_v50  ;;  %v905_v22 = vsel %vm111_vm0, %v5578_v6, %v4813_v4  ;;  %v938_v54 = vsel %vm111_vm0, %v5612_v30, %v4813_v4  ;;  %v4822_v32 = vpop.permute.xlu1 %4821  ;;  %4487 = vmatprep.subr.bf16.mxu0 %v5048_v3 }
 0x2ce   :  { %v923_v24 = vsel %vm909_vm3, %v906_v2, 1.0  ;;  %v922_v13 = vsel %vm909_vm3, %v905_v22, 1.0  ;;  %v4824_v26 = vunpack.i.h.bf16 %v4822_v32  ;;  %v4823_v35 = vunpack.i.l.bf16 %v4822_v32 }
 0x2cf   :  { %v5800_v63 = vpack.c.bf16 %v923_v24, %v922_v13  ;;  %v5802_v40 = vpack.c.bf16 %v939_v41, %v938_v54 }
 0x2d0   :  { %v908_v23 = vsel %vm111_vm0, %v5584_v15, %v4824_v26  ;;  %v941_v6 = vsel %vm111_vm0, %v5616_v34, %v4824_v26  ;;  %v907_v30 = vsel %vm111_vm0, %v5588_v10, %v4823_v35  ;;  %v940_v29 = vsel %vm111_vm0, %v5618_v37, %v4823_v35 }
 0x2d1   :  { %v925_v5 = vsel %vm909_vm3, %v908_v23, 1.0  ;;  %v924_v31 = vsel %vm909_vm3, %v907_v30, 1.0  ;;  %4502 = vmatpush3.bf16.xpose.msk.msra.mxu1 %vm5718_vm5, %v5782_v9  ;;  %v5817_v25 = vpack.c.bf16 %v941_v6, %v940_v29 }
 0x2d2   :  { %v5819_v15 = vpack.c.bf16 %v925_v5, %v924_v31  ;;  %4503 = vmatprep.subr.bf16.mxu1 %v5048_v3 }
 0x2d4   :  { %4490 = vmatpush3.bf16.xpose.msk.msra.mxu0 %vm5718_vm5, %v5730_v52 }
 0x2d5   :  { %4491 = vmatprep.subr.bf16.mxu0 %v5048_v3 }
 0x2d9   :  { %4506 = vmatpush3.bf16.xpose.msk.msra.mxu1 %vm5718_vm5, %v5800_v63 }
 0x2da   :  { %4507 = vmatprep.subr.bf16.mxu1 %v5048_v3 }
 0x2dc   :  { %4494 = vmatpush3.bf16.xpose.msk.msra.mxu0 %vm5718_vm5, %v5764_v7 }
 0x2dd   :  { %4511 = vmatprep.subr.bf16.mxu0 %v5048_v3 }
 0x2e1   :  { %4510 = vmatpush3.bf16.xpose.msk.msra.mxu1 %vm5718_vm5, %v5819_v15 }
 0x2e2   :  { %4523 = vmatprep.subr.bf16.mxu1 %v5048_v3 }
 0x32d   :  { %v1145_v10 = vpop.permute.xlu0 %1144 }
 0x32e   :  { %v1155_v34 = vsel %vm909_vm3, %v5628_v47, %v1145_v10 }
 0x32f   :  { %4180 = vmatmul.mubr.msk.f32.vlgmr.msra.gmra.mrb[18].mxu0 %vm1157_vm4, %v1155_v34 }
 0x330   :  { %4513 = vmatpush3.bf16.msra.mxu0 %v5735_v59  ;;  %v1147_v37 = vpop.permute.xlu1 %1146  ;;  %4217 = vmatprep.mubr.msk.f32.mxu0 %vm5049_vm1, %v5050_v56 }
 0x331   :  { %v1156_v57 = vsel %vm909_vm3, %v5645_v33, %v1147_v37  ;;  %4514 = vmatprep.subr.bf16.mxu0 %v5048_v3 }
 0x332   :  { %4199 = vmatmul.mubr.msk.f32.vlgmr.msra.gmra.mrb[18].mxu1 %vm1157_vm4, %v1156_v57 }
 0x333   :  { %4525 = vmatpush3.bf16.msra.mxu1 %v5762_v19  ;;  %4236 = vmatprep.mubr.msk.f32.mxu1 %vm5049_vm1, %v5050_v56 }
 0x334   :  { %4516 = vmatpush3.bf16.msra.mxu0 %v5700_v49  ;;  %4526 = vmatprep.subr.bf16.mxu1 %v5048_v3 }
 0x335   :  { %4517 = vmatprep.subr.bf16.mxu0 %v5048_v3 }
 0x337   :  { %4528 = vmatpush3.bf16.msra.mxu1 %v5787_v18 }
 0x338   :  { %4519 = vmatpush3.bf16.msra.mxu0 %v5737_v20  ;;  %4529 = vmatprep.subr.bf16.mxu1 %v5048_v3 }
 0x339   :  { %4520 = vmatprep.subr.bf16.mxu0 %v5048_v3 }
 0x33b   :  { %4531 = vmatpush3.bf16.msra.mxu1 %v5802_v40 }
 0x33c   :  { %4522 = vmatpush3.bf16.msra.mxu0 %v5769_v44  ;;  %4532 = vmatprep.subr.bf16.mxu1 %v5048_v3 }
 0x33f   :  { %4534 = vmatpush3.bf16.msra.mxu1 %v5817_v25 }
 0x402   :  { %v1251_v47 = vpop.f32.mrb[18].mxu0 }
 0x403   :  { %v1353_v33 = vsel %vm1352_vm6, %v1251_v47, -inf  ;;  %v4181_v36 = vpop.f32.mrb[19].mxu0 }
 0x404   :  { %v1354_v38 = vrot.slane %v1353_v33, 4 }
 0x405   :  { %v1348_v17 = vpop.f32.mrb[18].mxu1 }
 0x406   :  { %v1355_v39 = vmax.f32 %v1353_v33, %v1354_v38  ;;  %v1360_v62 = vsel %vm1352_vm6, %v1348_v17, -inf  ;;  %v4200_v28 = vpop.f32.mrb[19].mxu1 }
 0x407   :  { %v1361_v12 = vrot.slane %v1360_v62, 4  ;;  %v5877_v28 = vld [vmem:[%s6528_s3] sm:$0xff] }
 0x408   :  { %v1356_v43 = vrot.slane %v1355_v39, 2 }
 0x409   :  { %v1362_v42 = vmax.f32 %v1360_v62, %v1361_v12  ;;  %v88_v62 = vld [vmem:[%s6532_s7 + $0x18] sm:$0xff]  ;;  %v5883_v12 = vld [vmem:[%s6528_s3 + $0x8] sm:$0xff] }
 0x40a   :  { %v1357_v14 = vmax.f32 %v1355_v39, %v1356_v43  ;;  %v86_v39 = vld [vmem:[%s6532_s7 + $0x8] sm:$0xff] }
 0x40b   :  { %v1363_v1 = vrot.slane %v1362_v42, 2  ;;  %v5886_v43 = vpack.c.bf16 %v88_v62, %v86_v39 }
 0x40c   :  { %v1358_v27 = vrot.slane %v1357_v14, 1 }
 0x40d   :  { %v1364_v8 = vmax.f32 %v1362_v42, %v1363_v1  ;;  %4536 = vmatprep.subr.bf16.mxu0 %v5886_v43  ;;  %4552 = vmatprep.subr.bf16.mxu1 %v5886_v43  ;;  %v85_v1 = vld [vmem:[%s6532_s7] sm:$0xff] }
 0x40e   :  { %v1359_v16 = vmax.f32 %v1357_v14, %v1358_v27  ;;  %v87_v27 = vld [vmem:[%s6532_s7 + $0x10] sm:$0xff] }
 0x40f   :  { %v1365_v45 = vrot.slane %v1364_v8, 1 }
 0x410   :  { %v1367_v21 = vsub.f32 %v1251_v47, %v1359_v16  ;;  %v92_v16 = vld [vmem:[%s6532_s7 + $0x38] sm:$0xff] }
 0x411   :  { %v1366_v53 = vmax.f32 %v1364_v8, %v1365_v45  ;;  %v90_v8 = vld [vmem:[%s6532_s7 + $0x28] sm:$0xff] }
 0x412   :  { %v1369_v58 = vmul.f32 1.442695, %v1367_v21  ;;  %v5902_v21 = vpack.c.bf16 %v87_v27, %v85_v1 }
 0x413   :  { %v1368_v50 = vsub.f32 %v1348_v17, %v1366_v53 }
 0x414   :  { %4868 = vpow2.f32 %v1369_v58  ;;  %v5904_v58 = vpack.c.bf16 %v92_v16, %v90_v8 }
 0x415   :  { %v1371_v4 = vmul.f32 1.442695, %v1368_v50  ;;  %v89_v50 = vld [vmem:[%s6532_s7 + $0x20] sm:$0xff] }
 0x417   :  { %4870 = vpow2.f32 %v1371_v4  ;;  %v91_v4 = vld [vmem:[%s6532_s7 + $0x30] sm:$0xff] }
 0x41e   :  { %v4869_v2 = vpop.eup %4868 }
 0x41f   :  { %v1373_v41 = vsel %vm1352_vm6, %v4869_v2, 0.0 }
 0x420   :  { %v1374_v22 = vrot.slane %v1373_v41, 4 }
 0x421   :  { %v4871_v54 = vpop.eup %4870 }
 0x422   :  { %v1375_v32 = vadd.f32 %v1374_v22, %v1373_v41  ;;  %v1380_v24 = vsel %vm1352_vm6, %v4871_v54, 0.0  ;;  %v96_v41 = vld [vmem:[%s6532_s7 + $0x58] sm:$0xff] }
 0x423   :  { %v1381_v13 = vrot.slane %v1380_v24, 4 }
 0x424   :  { %v1376_v26 = vrot.slane %v1375_v32, 2 }
 0x425   :  { %v1382_v35 = vadd.f32 %v1381_v13, %v1380_v24  ;;  %v93_v13 = vld [vmem:[%s6532_s7 + $0x40] sm:$0xff] }
 0x426   :  { %v1377_v23 = vadd.f32 %v1376_v26, %v1375_v32  ;;  %v5920_v32 = vpack.c.bf16 %v91_v4, %v89_v50  ;;  %v95_v26 = vld [vmem:[%s6532_s7 + $0x50] sm:$0xff] }
 0x427   :  { %v1383_v6 = vrot.slane %v1382_v35, 2 }
 0x428   :  { %v1378_v30 = vrot.slane %v1377_v23, 1 }
 0x429   :  { %v1384_v29 = vadd.f32 %v1383_v6, %v1382_v35  ;;  %v5937_v35 = vpack.c.bf16 %v95_v26, %v93_v13  ;;  %v100_v6 = vld [vmem:[%s6532_s7 + $0x78] sm:$0xff] }
 0x42a   :  { %v1379_v5 = vadd.f32 %v1378_v30, %v1377_v23  ;;  %v98_v23 = vld [vmem:[%s6532_s7 + $0x68] sm:$0xff]  ;;  %v97_v30 = vld [vmem:[%s6532_s7 + $0x60] sm:$0xff] }
 0x42b   :  { %v1385_v31 = vrot.slane %v1384_v29, 1 }
 0x42c   :  { %4872 = vrcp.f32 %v1379_v5  ;;  %v99_v5 = vld [vmem:[%s6532_s7 + $0x70] sm:$0xff] }
 0x42d   :  { %v1386_v10 = vadd.f32 %v1385_v31, %v1384_v29  ;;  %v5953_v29 = vpack.c.bf16 %v100_v6, %v98_v23  ;;  %v5958_v31 = vpack.c.bf16 %v99_v5, %v97_v30 }
 0x42f   :  { %4874 = vrcp.f32 %v1386_v10  ;;  %v5967_v10 = vld [vmem:[%s6532_s7 + $0x88] sm:$0x7] }
 0x436   :  { %v4873_v34 = vpop.eup %4872 }
 0x437   :  { %v1389_v37 = vmul.f32 %v4873_v34, %v4869_v2  ;;  %v94_v2 = vld [vmem:[%s6532_s7 + $0x48] sm:$0xff]  ;;  %v5972_v34 = vld [vmem:[%s6532_s7 + $0x80] sm:$0x7] }
 0x438   :  { %v5924_v24 = vpack.c.bf16 %v96_v41, %v94_v2 }
 0x439   :  { %v4875_v57 = vpop.eup %4874  ;;  %v1391_v47 = vadd.f32 1e-08, %v1389_v37 }
 0x43a   :  { %v1390_v33 = vmul.f32 %v4875_v57, %v4871_v54 }
 0x43b   :  { %v1393_v36 = vsel %vm1352_vm6, %v1391_v47, 0.0 }
 0x43c   :  { %1394 = vadd.xlane.f32.xlu0 %v1393_v36  ;;  %v1392_v38 = vadd.f32 1e-08, %v1390_v33 }
 0x43e   :  { %v1396_v17 = vsel %vm1352_vm6, %v1392_v38, 0.0 }
 0x43f   :  { %1397 = vadd.xlane.f32.xlu1 %v1396_v17 }
 0x450   :  { %1587 = vrot.lane.b32.xlu1 %v5883_v12, %s5054_s15 }
 0x452   :  { %1585 = vrot.lane.b32.xlu0 %v5877_v28, %s5054_s15  ;;  %s3724_s15 = sshll.u32 %s5063_s0, 4  ;;  %s6494_s15 = int_to_ptr.vmem [resolvable:$true] %s3724_s15 }
 0x4c9   :  { %v1395_v42 = vpop.xlane.xlu0 %1394 }
 0x4ca   :  { %4876 = vrcp.f32 %v1395_v42 }
 0x4cc   :  { %v1398_v14 = vpop.xlane.xlu1 %1397 }
 0x4cd   :  { %4878 = vrcp.f32 %v1398_v14  ;;  %v1586_v33 = vpop.permute.xlu0 %1585 }
 0x4d0   :  { %v1588_v14 = vpop.permute.xlu1 %1587 }
 0x4d4   :  { %v4877_v45 = vpop.eup %4876 }
 0x4d5   :  { %v1403_v53 = vmul.f32 %v4877_v45, %v1391_v47 }
 0x4d7   :  { %v4879_v22 = vpop.eup %4878  ;;  %4218 = vmatmul.mubr.msk.f32.vlgmr.msra.gmra.mrb[20].mxu0 %vm1352_vm6, %v1403_v53 }
 0x4d8   :  { %v1404_v54 = vmul.f32 %v4879_v22, %v1392_v38  ;;  %4538 = vmatpush1.bf16.msra.mxu0 %v5902_v21  ;;  %1675 = vmatprep.mubr.f32.mxu0 %v5050_v56 }
 0x4d9   :  { %4540 = vmatprep.subr.bf16.mxu0 %v5904_v58 }
 0x4da   :  { %4237 = vmatmul.mubr.msk.f32.vlgmr.msra.gmra.mrb[20].mxu1 %vm1352_vm6, %v1404_v54 }
 0x4db   :  { %4554 = vmatpush1.bf16.msra.mxu1 %v5902_v21  ;;  %1749 = vmatprep.mubr.f32.mxu1 %v5050_v56 }
 0x4dc   :  { %4542 = vmatpush1.bf16.msra.mxu0 %v5920_v32  ;;  %4556 = vmatprep.subr.bf16.mxu1 %v5904_v58 }
 0x4dd   :  { %4544 = vmatprep.subr.bf16.mxu0 %v5924_v24 }
 0x4df   :  { %4558 = vmatpush1.bf16.msra.mxu1 %v5920_v32 }
 0x4e0   :  { %4546 = vmatpush1.bf16.msra.mxu0 %v5937_v35  ;;  %4560 = vmatprep.subr.bf16.mxu1 %v5924_v24 }
 0x4e1   :  { %4548 = vmatprep.subr.bf16.mxu0 %v5953_v29 }
 0x4e3   :  { %4562 = vmatpush1.bf16.msra.mxu1 %v5937_v35 }
 0x4e4   :  { %4564 = vmatprep.subr.bf16.mxu1 %v5953_v29  ;;  %4550 = vmatpush1.bf16.msra.mxu0 %v5958_v31 }
 0x4e5   :  { %3797 = vmatprep.subr.msk.mxu0 %vm1604_vm7, %v5967_v10 }
 0x4e7   :  { %4566 = vmatpush1.bf16.msra.mxu1 %v5958_v31 }
 0x4e8   :  { %3800 = vmatprep.subr.msk.mxu1 %vm1604_vm7, %v5967_v10  ;;  %3798 = vmatpush1.msk.msra.mxu0 %vm1604_vm7, %v5972_v34 }
 0x4e9   :  { %4567 = vmatprep.subr.bf16.mxu0 %v5048_v3 }
 0x4eb   :  { %3801 = vmatpush1.msk.msra.mxu1 %vm1604_vm7, %v5972_v34 }
 0x4ec   :  { %4573 = vmatprep.subr.bf16.mxu1 %v5048_v3 }
 0x5aa   :  { %v5984_v37 = vpop.f32.mrb[20].mxu0 }
 0x5ab   :  { %v4219_v57 = vpop.f32.mrb[21].mxu0  ;;  %v1581_v47 = vmul.f32 0.2, %v5984_v37 }
 0x5ad   :  { %v5987_v36 = vpop.f32.mrb[20].mxu1  ;;  %v1591_v38 = vsel %vm111_vm0, %v5984_v37, %v1581_v47 }
 0x5ae   :  { %v1593_v17 = vsel %vm1152_vm2, %v1591_v38, %v1581_v47  ;;  %v4238_v39 = vpop.f32.mrb[21].mxu1  ;;  %v1582_v62 = vmul.f32 0.2, %v5987_v36 }
 0x5af   :  { %v1595_v42 = vsel %vm909_vm3, %v1593_v17, %v1586_v33 }
 0x5b0   :  { %v1598_v1 = vsel %vm1597_vm8, %v1595_v42, 1.0  ;;  %v1592_v27 = vsel %vm111_vm0, %v5987_v36, %v1582_v62 }
 0x5b1   :  { %3799 = vmatmul.mubr.msk.f32.vlgmr.msra.gmra.mrb[22].mxu0 %vm1600_vm9, %v1598_v1  ;;  %v1594_v8 = vsel %vm1152_vm2, %v1592_v27, %v1582_v62 }
 0x5b2   :  { %v1596_v16 = vsel %vm909_vm3, %v1594_v8, %v1588_v14  ;;  %4569 = vmatpush3.bf16.msra.mxu0 %v5489_v51  ;;  %4247 = vmatprep.mubr.msk.f32.mxu0 %vm5049_vm1, %v5050_v56 }
 0x5b3   :  { %v1599_v45 = vsel %vm1597_vm8, %v1596_v16, 1.0  ;;  %4570 = vmatprep.subr.bf16.mxu0 %v5048_v3 }
 0x5b4   :  { %3802 = vmatmul.mubr.msk.f32.vlgmr.msra.gmra.mrb[22].mxu1 %vm1600_vm9, %v1599_v45 }
 0x5b5   :  { %4575 = vmatpush3.bf16.msra.mxu1 %v5489_v51  ;;  %4258 = vmatprep.mubr.msk.f32.mxu1 %vm5049_vm1, %v5050_v56 }
 0x5b6   :  { %4572 = vmatpush3.bf16.msra.mxu0 %v5506_v61  ;;  %4576 = vmatprep.subr.bf16.mxu1 %v5048_v3 }
 0x5b7   :  { %4579 = vmatprep.subr.bf16.mxu0 %v5048_v3 }
 0x5b9   :  { %4578 = vmatpush3.bf16.msra.mxu1 %v5506_v61 }
 0x5ba   :  { %4595 = vmatprep.subr.bf16.mxu1 %v5048_v3 }
 0x684   :  { %v1677_v53 = vpop.f32.mrb[22].mxu0 }
 0x685   :  { %1758 = vrot.lane.b32.xlu0 %v1677_v53, %s5052_s6  ;;  %v1679_v50 = vpop.f32.mrb[23].mxu0 }
 0x687   :  { %v1751_v4 = vpop.f32.mrb[22].mxu1 }
 0x688   :  { %1760 = vrot.lane.b32.xlu1 %v1751_v4, %s5052_s6  ;;  %v1753_v2 = vpop.f32.mrb[23].mxu1 }
 0x689   :  { %1800 = vrot.lane.b32.xlu0 %v1679_v50, %s5055_s23 }
 0x68c   :  { %1802 = vrot.lane.b32.xlu1 %v1753_v2, %s5055_s23 }
 0x6f7   :  { %v1759_v41 = vpop.permute.xlu0 %1758 }
 0x6f8   :  { %v1764_v22 = vadd.f32 %v1759_v41, %v1677_v53 }
 0x6fa   :  { %v3803_v54 = vmul.f32 -1.442695, %v1764_v22  ;;  %v1761_v13 = vpop.permute.xlu1 %1760 }
 0x6fb   :  { %v1765_v26 = vadd.f32 %v1761_v13, %v1751_v4  ;;  %v1801_v33 = vpop.permute.xlu0 %1800 }
 0x6fc   :  { %4880 = vpow2.f32 %v3803_v54 }
 0x6fd   :  { %v3804_v23 = vmul.f32 -1.442695, %v1765_v26 }
 0x6fe   :  { %v1803_v39 = vpop.permute.xlu1 %1802 }
 0x6ff   :  { %4882 = vpow2.f32 %v3804_v23 }
 0x706   :  { %v4881_v6 = vpop.eup %4880 }
 0x707   :  { %v1772_v30 = vadd.f32 1.0, %v4881_v6 }
 0x709   :  { %v4883_v5 = vpop.eup %4882  ;;  %4884 = vrcp.f32 %v1772_v30 }
 0x70a   :  { %v1773_v57 = vadd.f32 1.0, %v4883_v5 }
 0x70c   :  { %4886 = vrcp.f32 %v1773_v57 }
 0x713   :  { %v4885_v47 = vpop.eup %4884 }
 0x714   :  { %v1806_v38 = vmul.f32 %v4885_v47, %v1801_v33 }
 0x716   :  { %v4887_v17 = vpop.eup %4886  ;;  %1810 = vrot.lane.b32.xlu0 %v1806_v38, %s5056_s24 }
 0x717   :  { %v1807_v62 = vmul.f32 %v4887_v17, %v1803_v39 }
 0x719   :  { %1812 = vrot.lane.b32.xlu1 %v1807_v62, %s5056_s24 }
 0x71a   :  { %1780 = vrot.lane.b32.xlu0 %v1679_v50, %s5052_s6 }
 0x71d   :  { %1782 = vrot.lane.b32.xlu1 %v1753_v2, %s5052_s6 }
 0x788   :  { %v1811_v42 = vpop.permute.xlu0 %1810 }
 0x789   :  { %v1816_v14 = vadd.f32 %v1811_v42, %v1677_v53 }
 0x78b   :  { %4888 = vtanh.f32 %v1816_v14  ;;  %v1813_v1 = vpop.permute.xlu1 %1812 }
 0x78c   :  { %v1817_v27 = vadd.f32 %v1813_v1, %v1751_v4  ;;  %v1781_v45 = vpop.permute.xlu0 %1780 }
 0x78d   :  { %v1786_v50 = vadd.f32 %v1781_v45, %v1677_v53 }
 0x78e   :  { %4890 = vtanh.f32 %v1817_v27 }
 0x78f   :  { %v1783_v2 = vpop.permute.xlu1 %1782  ;;  %v3805_v22 = vmul.f32 -1.442695, %v1786_v50 }
 0x790   :  { %v1787_v41 = vadd.f32 %v1783_v2, %v1751_v4 }
 0x791   :  { %4892 = vpow2.f32 %v3805_v22 }
 0x792   :  { %v3806_v54 = vmul.f32 -1.442695, %v1787_v41 }
 0x794   :  { %4894 = vpow2.f32 %v3806_v54 }
 0x795   :  { %v4889_v8 = vpop.eup %4888 }
 0x796   :  { %1824 = vrot.lane.b32.xlu0 %v4889_v8, %s5055_s23 }
 0x798   :  { %v4891_v16 = vpop.eup %4890 }
 0x799   :  { %1826 = vrot.lane.b32.xlu1 %v4891_v16, %s5055_s23 }
 0x79a   :  { %1832 = vrot.lane.b32.xlu0 %v5877_v28, %s5052_s6 }
 0x79b   :  { %v4893_v13 = vpop.eup %4892 }
 0x79c   :  { %v1794_v23 = vadd.f32 1.0, %v4893_v13 }
 0x79d   :  { %1834 = vrot.lane.b32.xlu1 %v5883_v12, %s5052_s6 }
 0x79e   :  { %v4895_v26 = vpop.eup %4894  ;;  %4896 = vrcp.f32 %v1794_v23 }
 0x79f   :  { %v1795_v6 = vadd.f32 1.0, %v4895_v26 }
 0x7a1   :  { %4898 = vrcp.f32 %v1795_v6 }
 0x7a8   :  { %v4897_v30 = vpop.eup %4896 }
 0x7a9   :  { %v1820_v57 = vsub.f32 1.0, %v4897_v30 }
 0x7ab   :  { %v4899_v28 = vpop.eup %4898 }
 0x7ac   :  { %v1821_v38 = vsub.f32 1.0, %v4899_v28 }
 0x808   :  { %v1825_v5 = vpop.permute.xlu0 %1824 }
 0x809   :  { %v1830_v33 = vmul.f32 %v1825_v5, %v1820_v57 }
 0x80b   :  { %v1827_v47 = vpop.permute.xlu1 %1826 }
 0x80c   :  { %v1833_v12 = vpop.permute.xlu0 %1832  ;;  %v1831_v39 = vmul.f32 %v1827_v47, %v1821_v38 }
 0x80d   :  { %v1838_v53 = vmul.f32 %v4897_v30, %v1833_v12 }
 0x80f   :  { %v6028_v4 = vadd.f32 %v1838_v53, %v1830_v33  ;;  %v1835_v17 = vpop.permute.xlu1 %1834 }
 0x810   :  { %v1839_v62 = vmul.f32 %v4899_v28, %v1835_v17 }
 0x811   :  { %1844 = vrot.lane.b32.xlu0 %v6028_v4, %s5055_s23 }
 0x812   :  { %v6032_v42 = vadd.f32 %v1839_v62, %v1831_v39 }
 0x814   :  { %1846 = vrot.lane.b32.xlu1 %v6032_v42, %s5055_s23 }
 0x883   :  { %v1845_v14 = vpop.permute.xlu0 %1844 }
 0x884   :  { %v1850_v1 = vsel %vm111_vm0, %v1845_v14, 0.0 }
 0x885   :  { %1851 = vadd.xlane.f32.xlu0 %v1850_v1 }
 0x886   :  { %v1847_v27 = vpop.permute.xlu1 %1846 }
 0x887   :  { %v1853_v8 = vsel %vm111_vm0, %v1847_v27, 0.0 }
 0x888   :  { %1854 = vadd.xlane.f32.xlu1 %v1853_v8  ;;  %v1551_v8 = vmul.f32 %v5984_v37, %v5984_v37 }
 0x912   :  { %v1852_v16 = vpop.xlane.xlu0 %1851 }
 0x913   :  { %v1856_v45 = vmul.f32 0.03125, %v1852_v16  ;;  %v1552_v16 = vmul.f32 %v5987_v36, %v5987_v36 }
 0x915   :  { %v1858_v50 = vsub.f32 %v6028_v4, %v1856_v45  ;;  %v1855_v2 = vpop.xlane.xlu1 %1854 }
 0x916   :  { %v1857_v41 = vmul.f32 0.03125, %v1855_v2 }
 0x917   :  { %v1860_v22 = vmul.f32 %v1858_v50, %v1858_v50 }
 0x918   :  { %v1859_v54 = vsub.f32 %v6032_v42, %v1857_v41 }
 0x919   :  { %1864 = vrot.lane.b32.xlu0 %v1860_v22, %s5055_s23 }
 0x91a   :  { %v1861_v13 = vmul.f32 %v1859_v54, %v1859_v54 }
 0x91c   :  { %1866 = vrot.lane.b32.xlu1 %v1861_v13, %s5055_s23 }
 0x98b   :  { %v1865_v26 = vpop.permute.xlu0 %1864 }
 0x98c   :  { %v1870_v23 = vsel %vm111_vm0, %v1865_v26, 0.0 }
 0x98d   :  { %1871 = vadd.xlane.f32.xlu0 %v1870_v23 }
 0x98e   :  { %v1867_v6 = vpop.permute.xlu1 %1866 }
 0x98f   :  { %v1873_v30 = vsel %vm111_vm0, %v1867_v6, 0.0 }
 0x990   :  { %1874 = vadd.xlane.f32.xlu1 %v1873_v30 }
 0x9a1   :  { %1891 = vrot.lane.b32.xlu1 %v5538_v55, %s5052_s6 }
 0x9a3   :  { %1885 = vrot.lane.b32.xlu0 %v5522_v46, %s5052_s6 }
 0xa1a   :  { %v1872_v5 = vpop.xlane.xlu0 %1871 }
 0xa1b   :  { %v1876_v28 = vmul.f32 0.03125, %v1872_v5 }
 0xa1d   :  { %v1878_v57 = vadd.f32 1e-05, %v1876_v28  ;;  %v1875_v47 = vpop.xlane.xlu1 %1874 }
 0xa1e   :  { %v1877_v12 = vmul.f32 0.03125, %v1875_v47  ;;  %v6048_v38 = vpop.permute.xlu0 %1885 }
 0xa1f   :  { %4900 = vrsqrt.f32 %v1878_v57 }
 0xa20   :  { %v1879_v33 = vadd.f32 1e-05, %v1877_v12 }
 0xa21   :  { %v6050_v39 = vpop.permute.xlu1 %1891 }
 0xa22   :  { %4902 = vrsqrt.f32 %v1879_v33 }
 0xa29   :  { %v4901_v53 = vpop.eup %4900 }
 0xa2a   :  { %v1882_v17 = vmul.f32 %v4901_v53, %v1858_v50 }
 0xa2c   :  { %v4903_v62 = vpop.eup %4902  ;;  %v1888_v55 = vmul.f32 %v6048_v38, %v1882_v17 }
 0xa2d   :  { %v1883_v14 = vmul.f32 %v4903_v62, %v1859_v54 }
 0xa2e   :  { %v1894_v46 = vadd.f32 %v6050_v39, %v1888_v55 }
 0xa2f   :  { %v1889_v1 = vmul.f32 %v6048_v38, %v1883_v14 }
 0xa30   :  { %1897 = vrot.lane.b32.xlu0 %v1894_v46, %s5055_s23 }
 0xa31   :  { %v1895_v27 = vadd.f32 %v6050_v39, %v1889_v1 }
 0xa33   :  { %1972 = vrot.lane.b32.xlu1 %v1895_v27, %s5055_s23 }
 0xa34   :  { %1555 = vrot.lane.b32.xlu0 %v1551_v8, %s5053_s29 }
 0xa37   :  { %1557 = vrot.lane.b32.xlu1 %v1552_v16, %s5053_s29 }
 0xaa2   :  { %v1898_v45 = vpop.permute.xlu0 %1897 }
 0xaa3   :  { %4248 = vmatmul.mubr.msk.f32.vlgmr.msra.gmra.mrb[24].mxu0 %vm111_vm0, %v1898_v45 }
 0xaa4   :  { %4582 = vmatpush3.bf16.xpose.msk.msra.mxu0 %vm5718_vm5, %v5722_v11  ;;  %4277 = vmatprep.mubr.msk.f32.mxu0 %vm5049_vm1, %v5050_v56 }
 0xaa5   :  { %v1973_v50 = vpop.permute.xlu1 %1972  ;;  %4583 = vmatprep.subr.bf16.mxu0 %v5048_v3 }
 0xaa6   :  { %v1556_v2 = vpop.permute.xlu0 %1555  ;;  %4259 = vmatmul.mubr.msk.f32.vlgmr.msra.gmra.mrb[24].mxu1 %vm111_vm0, %v1973_v50 }
 0xaa7   :  { %v1561_v41 = vsub.f32 %v5984_v37, %v1556_v2  ;;  %4598 = vmatpush3.bf16.xpose.msk.msra.mxu1 %vm5718_vm5, %v5754_v48  ;;  %4296 = vmatprep.mubr.msk.f32.mxu1 %vm5049_vm1, %v5050_v56 }
 0xaa8   :  { %4599 = vmatprep.subr.bf16.mxu1 %v5048_v3 }
 0xaa9   :  { %v1563_v22 = vmax.f32 %v1561_v41, 0.0  ;;  %v1558_v54 = vpop.permute.xlu1 %1557 }
 0xaaa   :  { %v1562_v13 = vsub.f32 %v5987_v36, %v1558_v54 }
 0xaab   :  { %v1565_v26 = vadd.f32 1e-08, %v1563_v22 }
 0xaac   :  { %v1564_v23 = vmax.f32 %v1562_v13, 0.0  ;;  %4586 = vmatpush3.bf16.xpose.msk.msra.mxu0 %vm5718_vm5, %v5698_v0 }
 0xaad   :  { %4904 = vrsqrt.f32 %v1565_v26  ;;  %4587 = vmatprep.subr.bf16.mxu0 %v5048_v3  ;;  %vm1569_vm10 = vcmp.eq.f32.partialorder %v1565_v26, inf  ;;  %v1572_v28 = vand.u32 2147483648, %v1565_v26  ;;  %vm1571_vm11 = vcmp.eq.f32.partialorder %v1565_v26, 0.0 }
 0xaae   :  { %v1566_v6 = vadd.f32 1e-08, %v1564_v23 }
 0xaaf   :  { %4602 = vmatpush3.bf16.xpose.msk.msra.mxu1 %vm5718_vm5, %v5782_v9 }
 0xab0   :  { %4906 = vrsqrt.f32 %v1566_v6  ;;  %4603 = vmatprep.subr.bf16.mxu1 %v5048_v3  ;;  %vm1576_vm12 = vcmp.eq.f32.partialorder %v1566_v6, inf  ;;  %v1579_v17 = vand.u32 2147483648, %v1566_v6  ;;  %vm1578_vm13 = vcmp.eq.f32.partialorder %v1566_v6, 0.0 }
 0xab4   :  { %4590 = vmatpush3.bf16.xpose.msk.msra.mxu0 %vm5718_vm5, %v5730_v52 }
 0xab5   :  { %4591 = vmatprep.subr.bf16.mxu0 %v5048_v3 }
 0xab7   :  { %v4905_v30 = vpop.eup %4904  ;;  %4606 = vmatpush3.bf16.xpose.msk.msra.mxu1 %vm5718_vm5, %v5800_v63 }
 0xab8   :  { %v1568_v5 = vmul.f32 %v4905_v30, %v1565_v26  ;;  %4607 = vmatprep.subr.bf16.mxu1 %v5048_v3 }
 0xaba   :  { %v4907_v57 = vpop.eup %4906  ;;  %v1570_v47 = vsel %vm1569_vm10, %v1565_v26, %v1568_v5 }
 0xabb   :  { %v1573_v12 = vsel %vm1571_vm11, %v1572_v28, %v1570_v47  ;;  %v1575_v33 = vmul.f32 %v4907_v57, %v1566_v6 }
 0xabc   :  { %v2046_v53 = vmul.f32 5.0, %v1573_v12  ;;  %4594 = vmatpush3.bf16.xpose.msk.msra.mxu0 %vm5718_vm5, %v5764_v7 }
 0xabd   :  { %v1577_v62 = vsel %vm1576_vm12, %v1566_v6, %v1575_v33  ;;  %4611 = vmatprep.subr.bf16.mxu0 %v5048_v3 }
 0xabe   :  { %4908 = vrcp.f32 %v2046_v53  ;;  %v1580_v55 = vsel %vm1578_vm13, %v1579_v17, %v1577_v62 }
 0xabf   :  { %v2047_v14 = vmul.f32 5.0, %v1580_v55  ;;  %4610 = vmatpush3.bf16.xpose.msk.msra.mxu1 %vm5718_vm5, %v5819_v15 }
 0xac0   :  { %4623 = vmatprep.subr.bf16.mxu1 %v5048_v3 }
 0xac1   :  { %4910 = vrcp.f32 %v2047_v14 }
 0xac8   :  { %v6104_v46 = vpop.eup %4908 }
 0xac9   :  { %2054 = vrot.lane.b32.xlu0 %v6104_v46, %s5057_s5 }
 0xacb   :  { %v6108_v1 = vpop.eup %4910 }
 0xacc   :  { %2056 = vrot.lane.b32.xlu1 %v6108_v1, %s5057_s5 }
 0xb3b   :  { %v2055_v27 = vpop.permute.xlu0 %2054 }
 0xb3e   :  { %v2057_v50 = vpop.permute.xlu1 %2056 }
 0xb76   :  { %v1967_v8 = vpop.f32.mrb[24].mxu0 }
 0xb77   :  { %v2060_v16 = vmul.f32 %v2055_v27, %v1967_v8  ;;  %v4249_v45 = vpop.f32.mrb[25].mxu0 }
 0xb79   :  { %v2084_v2 = vsel %vm111_vm0, %v1967_v8, %v2060_v16  ;;  %v2042_v41 = vpop.f32.mrb[24].mxu1  ;;  %v2062_v22 = vmul.f32 %v2060_v16, %v5984_v37 }
 0xb7a   :  { %v2061_v54 = vmul.f32 %v2057_v50, %v2042_v41  ;;  %v4260_v13 = vpop.f32.mrb[25].mxu1  ;;  %v2086_v26 = vsel %vm1152_vm2, %v2084_v2, %v2060_v16 }
 0xb7b   :  { %2066 = vrot.lane.b32.xlu0 %v2062_v22, %s5051_s25 }
 0xb7c   :  { %v2085_v23 = vsel %vm111_vm0, %v2042_v41, %v2061_v54  ;;  %v2063_v6 = vmul.f32 %v2061_v54, %v5987_v36 }
 0xb7d   :  { %v2087_v30 = vsel %vm1152_vm2, %v2085_v23, %v2061_v54 }
 0xb7e   :  { %2068 = vrot.lane.b32.xlu1 %v2063_v6, %s5051_s25 }
 0xbed   :  { %v2067_v5 = vpop.permute.xlu0 %2066 }
 0xbee   :  { %v2072_v28 = vadd.f32 %v2067_v5, %v2062_v22 }
 0xbf0   :  { %v2074_v57 = vsub.f32 0.0, %v2072_v28  ;;  %v2069_v47 = vpop.permute.xlu1 %2068 }
 0xbf1   :  { %v2073_v12 = vadd.f32 %v2069_v47, %v2063_v6 }
 0xbf2   :  { %2078 = vrot.lane.b32.xlu0 %v2074_v57, %s5053_s29 }
 0xbf3   :  { %v2075_v33 = vsub.f32 0.0, %v2073_v12 }
 0xbf5   :  { %2080 = vrot.lane.b32.xlu1 %v2075_v33, %s5053_s29 }
 0xc64   :  { %v2079_v53 = vpop.permute.xlu0 %2078 }
 0xc65   :  { %v2088_v17 = vsel %vm909_vm3, %v2086_v26, %v2079_v53 }
 0xc66   :  { %4278 = vmatmul.mubr.msk.f32.vlgmr.msra.gmra.mrb[26].mxu0 %vm1157_vm4, %v2088_v17 }
 0xc67   :  { %4613 = vmatpush3.bf16.msra.mxu0 %v5735_v59  ;;  %v2081_v62 = vpop.permute.xlu1 %2080  ;;  %4315 = vmatprep.mubr.msk.f32.mxu0 %vm5049_vm1, %v5050_v56 }
 0xc68   :  { %v2089_v55 = vsel %vm909_vm3, %v2087_v30, %v2081_v62  ;;  %4614 = vmatprep.subr.bf16.mxu0 %v5048_v3 }
 0xc69   :  { %4297 = vmatmul.mubr.msk.f32.vlgmr.msra.gmra.mrb[26].mxu1 %vm1157_vm4, %v2089_v55 }
 0xc6a   :  { %4625 = vmatpush3.bf16.msra.mxu1 %v5762_v19  ;;  %4334 = vmatprep.mubr.msk.f32.mxu1 %vm5049_vm1, %v5050_v56 }
 0xc6b   :  { %4616 = vmatpush3.bf16.msra.mxu0 %v5700_v49  ;;  %4626 = vmatprep.subr.bf16.mxu1 %v5048_v3 }
 0xc6c   :  { %4617 = vmatprep.subr.bf16.mxu0 %v5048_v3 }
 0xc6e   :  { %4628 = vmatpush3.bf16.msra.mxu1 %v5787_v18 }
 0xc6f   :  { %4619 = vmatpush3.bf16.msra.mxu0 %v5737_v20  ;;  %4629 = vmatprep.subr.bf16.mxu1 %v5048_v3 }
 0xc70   :  { %4620 = vmatprep.subr.bf16.mxu0 %v5048_v3 }
 0xc72   :  { %4631 = vmatpush3.bf16.msra.mxu1 %v5802_v40 }
 0xc73   :  { %4622 = vmatpush3.bf16.msra.mxu0 %v5769_v44  ;;  %4632 = vmatprep.subr.bf16.mxu1 %v5048_v3 }
 0xc74   :  { %4636 = vmatprep.subr.bf16.mxu0 %v5886_v43 }
 0xc76   :  { %4634 = vmatpush3.bf16.msra.mxu1 %v5817_v25 }
 0xc77   :  { %4652 = vmatprep.subr.bf16.mxu1 %v5886_v43 }
 0xd39   :  { %v2159_v14 = vpop.f32.mrb[26].mxu0 }
 0xd3a   :  { %v2236_v27 = vsel %vm1352_vm6, %v2159_v14, -inf  ;;  %v4279_v8 = vpop.f32.mrb[27].mxu0 }
 0xd3b   :  { %v2237_v16 = vrot.slane %v2236_v27, 4 }
 0xd3c   :  { %v2232_v45 = vpop.f32.mrb[26].mxu1 }
 0xd3d   :  { %v2238_v50 = vmax.f32 %v2236_v27, %v2237_v16  ;;  %v2243_v2 = vsel %vm1352_vm6, %v2232_v45, -inf  ;;  %v4298_v41 = vpop.f32.mrb[27].mxu1 }
 0xd3e   :  { %v2244_v22 = vrot.slane %v2243_v2, 4 }
 0xd3f   :  { %v2239_v54 = vrot.slane %v2238_v50, 2 }
 0xd40   :  { %v2245_v13 = vmax.f32 %v2243_v2, %v2244_v22 }
 0xd41   :  { %v2240_v26 = vmax.f32 %v2238_v50, %v2239_v54 }
 0xd42   :  { %v2246_v23 = vrot.slane %v2245_v13, 2 }
 0xd43   :  { %v2241_v6 = vrot.slane %v2240_v26, 1 }
 0xd44   :  { %v2247_v30 = vmax.f32 %v2245_v13, %v2246_v23 }
 0xd45   :  { %v2242_v5 = vmax.f32 %v2240_v26, %v2241_v6 }
 0xd46   :  { %v2248_v28 = vrot.slane %v2247_v30, 1 }
 0xd47   :  { %v2250_v57 = vsub.f32 %v2159_v14, %v2242_v5 }
 0xd48   :  { %v2249_v47 = vmax.f32 %v2247_v30, %v2248_v28 }
 0xd49   :  { %v2252_v12 = vmul.f32 1.442695, %v2250_v57 }
 0xd4a   :  { %v2251_v33 = vsub.f32 %v2232_v45, %v2249_v47 }
 0xd4b   :  { %4912 = vpow2.f32 %v2252_v12 }
 0xd4c   :  { %v2254_v53 = vmul.f32 1.442695, %v2251_v33 }
 0xd4e   :  { %4914 = vpow2.f32 %v2254_v53 }
 0xd55   :  { %v4913_v17 = vpop.eup %4912 }
 0xd56   :  { %v2256_v62 = vsel %vm1352_vm6, %v4913_v17, 0.0 }
 0xd57   :  { %v2257_v55 = vrot.slane %v2256_v62, 4 }
 0xd58   :  { %v4915_v27 = vpop.eup %4914 }
 0xd59   :  { %v2258_v8 = vadd.f32 %v2257_v55, %v2256_v62  ;;  %v2263_v16 = vsel %vm1352_vm6, %v4915_v27, 0.0 }
 0xd5a   :  { %v2264_v50 = vrot.slane %v2263_v16, 4 }
 0xd5b   :  { %v2259_v2 = vrot.slane %v2258_v8, 2 }
 0xd5c   :  { %v2265_v41 = vadd.f32 %v2264_v50, %v2263_v16 }
 0xd5d   :  { %v2260_v22 = vadd.f32 %v2259_v2, %v2258_v8 }
 0xd5e   :  { %v2266_v54 = vrot.slane %v2265_v41, 2 }
 0xd5f   :  { %v2261_v14 = vrot.slane %v2260_v22, 1 }
 0xd60   :  { %v2267_v13 = vadd.f32 %v2266_v54, %v2265_v41 }
 0xd61   :  { %v2262_v26 = vadd.f32 %v2261_v14, %v2260_v22 }
 0xd62   :  { %v2268_v45 = vrot.slane %v2267_v13, 1 }
 0xd63   :  { %4916 = vrcp.f32 %v2262_v26 }
 0xd64   :  { %v2269_v23 = vadd.f32 %v2268_v45, %v2267_v13 }
 0xd66   :  { %4918 = vrcp.f32 %v2269_v23 }
 0xd6d   :  { %v4917_v6 = vpop.eup %4916 }
 0xd6e   :  { %v2272_v30 = vmul.f32 %v4917_v6, %v4913_v17 }
 0xd70   :  { %v4919_v5 = vpop.eup %4918  ;;  %v2274_v28 = vadd.f32 1e-08, %v2272_v30 }
 0xd71   :  { %v2273_v57 = vmul.f32 %v4919_v5, %v4915_v27 }
 0xd72   :  { %v2276_v47 = vsel %vm1352_vm6, %v2274_v28, 0.0 }
 0xd73   :  { %2277 = vadd.xlane.f32.xlu0 %v2276_v47  ;;  %v2275_v12 = vadd.f32 1e-08, %v2273_v57 }
 0xd75   :  { %v2279_v33 = vsel %vm1352_vm6, %v2275_v12, 0.0 }
 0xd76   :  { %2280 = vadd.xlane.f32.xlu1 %v2279_v33 }
 0xe00   :  { %v2278_v53 = vpop.xlane.xlu0 %2277 }
 0xe01   :  { %4920 = vrcp.f32 %v2278_v53 }
 0xe03   :  { %v2281_v62 = vpop.xlane.xlu1 %2280 }
 0xe04   :  { %4922 = vrcp.f32 %v2281_v62 }
 0xe0b   :  { %v4921_v55 = vpop.eup %4920 }
 0xe0c   :  { %v2286_v8 = vmul.f32 %v4921_v55, %v2274_v28 }
 0xe0e   :  { %v4923_v16 = vpop.eup %4922  ;;  %4316 = vmatmul.mubr.msk.f32.vlgmr.msra.gmra.mrb[28].mxu0 %vm1352_vm6, %v2286_v8 }
 0xe0f   :  { %v2287_v17 = vmul.f32 %v4923_v16, %v2275_v12  ;;  %4638 = vmatpush1.bf16.msra.mxu0 %v5902_v21  ;;  %2565 = vmatprep.mubr.f32.mxu0 %v5050_v56 }
 0xe10   :  { %4640 = vmatprep.subr.bf16.mxu0 %v5904_v58 }
 0xe11   :  { %4335 = vmatmul.mubr.msk.f32.vlgmr.msra.gmra.mrb[28].mxu1 %vm1352_vm6, %v2287_v17 }
 0xe12   :  { %4654 = vmatpush1.bf16.msra.mxu1 %v5902_v21  ;;  %2639 = vmatprep.mubr.f32.mxu1 %v5050_v56 }
 0xe13   :  { %4642 = vmatpush1.bf16.msra.mxu0 %v5920_v32  ;;  %4656 = vmatprep.subr.bf16.mxu1 %v5904_v58 }
 0xe14   :  { %4644 = vmatprep.subr.bf16.mxu0 %v5924_v24 }
 0xe16   :  { %4658 = vmatpush1.bf16.msra.mxu1 %v5920_v32 }
 0xe17   :  { %4646 = vmatpush1.bf16.msra.mxu0 %v5937_v35  ;;  %4660 = vmatprep.subr.bf16.mxu1 %v5924_v24 }
 0xe18   :  { %4648 = vmatprep.subr.bf16.mxu0 %v5953_v29 }
 0xe1a   :  { %4662 = vmatpush1.bf16.msra.mxu1 %v5937_v35 }
 0xe1b   :  { %4650 = vmatpush1.bf16.msra.mxu0 %v5958_v31  ;;  %4664 = vmatprep.subr.bf16.mxu1 %v5953_v29 }
 0xe1c   :  { %3829 = vmatprep.subr.msk.mxu0 %vm1604_vm7, %v5967_v10 }
 0xe1e   :  { %4666 = vmatpush1.bf16.msra.mxu1 %v5958_v31 }
 0xe1f   :  { %3830 = vmatpush1.msk.msra.mxu0 %vm1604_vm7, %v5972_v34  ;;  %3832 = vmatprep.subr.msk.mxu1 %vm1604_vm7, %v5967_v10 }
 0xe20   :  { %4667 = vmatprep.subr.bf16.mxu0 %v5048_v3 }
 0xe22   :  { %3833 = vmatpush1.msk.msra.mxu1 %vm1604_vm7, %v5972_v34 }
 0xe23   :  { %4673 = vmatprep.subr.bf16.mxu1 %v5048_v3 }
 0xee1   :  { %v6180_v27 = vpop.f32.mrb[28].mxu0 }
 0xee2   :  { %v4317_v50 = vpop.f32.mrb[29].mxu0  ;;  %v2464_v2 = vsub.f32 %v6180_v27, %v5984_v37 }
 0xee4   :  { %2468 = vrot.lane.b32.xlu0 %v2464_v2, %s5053_s29  ;;  %v6185_v41 = vpop.f32.mrb[28].mxu1 }
 0xee5   :  { %v4336_v22 = vpop.f32.mrb[29].mxu1  ;;  %v2465_v10 = vsub.f32 %v6185_v41, %v5987_v36 }
 0xee7   :  { %2470 = vrot.lane.b32.xlu1 %v2465_v10, %s5053_s29 }
 0xf56   :  { %v2469_v54 = vpop.permute.xlu0 %2468 }
 0xf57   :  { %v2474_v34 = vmul.f32 %v6104_v46, %v2469_v54 }
 0xf59   :  { %2478 = vrot.lane.b32.xlu0 %v2474_v34, %s5057_s5  ;;  %v2471_v14 = vpop.permute.xlu1 %2470 }
 0xf5a   :  { %v2475_v13 = vmul.f32 %v6108_v1, %v2471_v14 }
 0xf5c   :  { %2480 = vrot.lane.b32.xlu1 %v2475_v13, %s5057_s5 }
 0xf5d   :  { %2484 = vrot.lane.b32.xlu0 %v6028_v4, %s5053_s29 }
 0xf60   :  { %2486 = vrot.lane.b32.xlu1 %v6032_v42, %s5053_s29 }
 0xfcb   :  { %v2479_v37 = vpop.permute.xlu0 %2478 }
 0xfcc   :  { %v2490_v36 = vsel %vm111_vm0, %v6180_v27, %v2479_v37 }
 0xfcd   :  { %v2492_v46 = vsel %vm1152_vm2, %v2490_v36, %v2479_v37 }
 0xfce   :  { %v2481_v26 = vpop.permute.xlu1 %2480 }
 0xfcf   :  { %v2491_v45 = vsel %vm111_vm0, %v6185_v41, %v2481_v26  ;;  %v2485_v23 = vpop.permute.xlu0 %2484 }
 0xfd0   :  { %v2494_v1 = vsel %vm909_vm3, %v2492_v46, %v2485_v23  ;;  %v2493_v30 = vsel %vm1152_vm2, %v2491_v45, %v2481_v26 }
 0xfd1   :  { %v2496_v6 = vsel %vm1597_vm8, %v2494_v1, 1.0 }
 0xfd2   :  { %3831 = vmatmul.mubr.msk.f32.vlgmr.msra.gmra.mrb[30].mxu0 %vm1600_vm9, %v2496_v6  ;;  %v2487_v5 = vpop.permute.xlu1 %2486 }
 0xfd3   :  { %v2495_v28 = vsel %vm909_vm3, %v2493_v30, %v2487_v5  ;;  %4669 = vmatpush3.bf16.msra.mxu0 %v5489_v51  ;;  %4345 = vmatprep.mubr.msk.f32.mxu0 %vm5049_vm1, %v5050_v56 }
 0xfd4   :  { %v2497_v57 = vsel %vm1597_vm8, %v2495_v28, 1.0  ;;  %4670 = vmatprep.subr.bf16.mxu0 %v5048_v3 }
 0xfd5   :  { %3834 = vmatmul.mubr.msk.f32.vlgmr.msra.gmra.mrb[30].mxu1 %vm1600_vm9, %v2497_v57 }
 0xfd6   :  { %4675 = vmatpush3.bf16.msra.mxu1 %v5489_v51  ;;  %4356 = vmatprep.mubr.msk.f32.mxu1 %vm5049_vm1, %v5050_v56 }
 0xfd7   :  { %4672 = vmatpush3.bf16.msra.mxu0 %v5506_v61  ;;  %4676 = vmatprep.subr.bf16.mxu1 %v5048_v3 }
 0xfd8   :  { %4679 = vmatprep.subr.bf16.mxu0 %v5048_v3 }
 0xfda   :  { %4678 = vmatpush3.bf16.msra.mxu1 %v5506_v61 }
 0xfdb   :  { %4695 = vmatprep.subr.bf16.mxu1 %v5048_v3 }
0x10a5   :  { %v2567_v47 = vpop.f32.mrb[30].mxu0 }
0x10a6   :  { %2648 = vrot.lane.b32.xlu0 %v2567_v47, %s5052_s6  ;;  %v2569_v12 = vpop.f32.mrb[31].mxu0 }
0x10a8   :  { %v2641_v33 = vpop.f32.mrb[30].mxu1 }
0x10a9   :  { %2650 = vrot.lane.b32.xlu1 %v2641_v33, %s5052_s6  ;;  %v2643_v51 = vpop.f32.mrb[31].mxu1 }
0x10aa   :  { %2690 = vrot.lane.b32.xlu0 %v2569_v12, %s5055_s23 }
0x10ad   :  { %2692 = vrot.lane.b32.xlu1 %v2643_v51, %s5055_s23 }
0x1118   :  { %v2649_v53 = vpop.permute.xlu0 %2648 }
0x1119   :  { %v2654_v62 = vadd.f32 %v2649_v53, %v2567_v47 }
0x111b   :  { %v3835_v55 = vmul.f32 -1.442695, %v2654_v62  ;;  %v2651_v8 = vpop.permute.xlu1 %2650 }
0x111c   :  { %v2655_v16 = vadd.f32 %v2651_v8, %v2641_v33  ;;  %v2691_v54 = vpop.permute.xlu0 %2690 }
0x111d   :  { %4924 = vpow2.f32 %v3835_v55 }
0x111e   :  { %v3836_v61 = vmul.f32 -1.442695, %v2655_v16 }
0x111f   :  { %v2693_v13 = vpop.permute.xlu1 %2692 }
0x1120   :  { %4926 = vpow2.f32 %v3836_v61 }
0x1127   :  { %v4925_v17 = vpop.eup %4924 }
0x1128   :  { %v2662_v50 = vadd.f32 1.0, %v4925_v17 }
0x112a   :  { %v4927_v2 = vpop.eup %4926  ;;  %4928 = vrcp.f32 %v2662_v50 }
0x112b   :  { %v2663_v22 = vadd.f32 1.0, %v4927_v2 }
0x112d   :  { %4930 = vrcp.f32 %v2663_v22 }
0x1134   :  { %v4929_v10 = vpop.eup %4928 }
0x1135   :  { %v2696_v34 = vmul.f32 %v4929_v10, %v2691_v54 }
0x1137   :  { %v4931_v14 = vpop.eup %4930  ;;  %2700 = vrot.lane.b32.xlu0 %v2696_v34, %s5056_s24 }
0x1138   :  { %v2697_v37 = vmul.f32 %v4931_v14, %v2693_v13 }
0x113a   :  { %2702 = vrot.lane.b32.xlu1 %v2697_v37, %s5056_s24 }
0x113b   :  { %2670 = vrot.lane.b32.xlu0 %v2569_v12, %s5052_s6 }
0x113e   :  { %2672 = vrot.lane.b32.xlu1 %v2643_v51, %s5052_s6 }
0x11a9   :  { %v2701_v36 = vpop.permute.xlu0 %2700 }
0x11aa   :  { %v2706_v26 = vadd.f32 %v2701_v36, %v2567_v47 }
0x11ac   :  { %4932 = vtanh.f32 %v2706_v26  ;;  %v2703_v46 = vpop.permute.xlu1 %2702 }
0x11ad   :  { %v2707_v45 = vadd.f32 %v2703_v46, %v2641_v33  ;;  %v2671_v6 = vpop.permute.xlu0 %2670 }
0x11ae   :  { %v2676_v30 = vadd.f32 %v2671_v6, %v2567_v47 }
0x11af   :  { %4934 = vtanh.f32 %v2707_v45 }
0x11b0   :  { %v2673_v5 = vpop.permute.xlu1 %2672  ;;  %v3837_v57 = vmul.f32 -1.442695, %v2676_v30 }
0x11b1   :  { %v2677_v28 = vadd.f32 %v2673_v5, %v2641_v33 }
0x11b2   :  { %4936 = vpow2.f32 %v3837_v57 }
0x11b3   :  { %v3838_v12 = vmul.f32 -1.442695, %v2677_v28 }
0x11b5   :  { %4938 = vpow2.f32 %v3838_v12 }
0x11b6   :  { %v4933_v23 = vpop.eup %4932 }
0x11b7   :  { %2714 = vrot.lane.b32.xlu0 %v4933_v23, %s5055_s23 }
0x11b9   :  { %v4935_v1 = vpop.eup %4934 }
0x11ba   :  { %2716 = vrot.lane.b32.xlu1 %v4935_v1, %s5055_s23 }
0x11bc   :  { %v4937_v51 = vpop.eup %4936 }
0x11bd   :  { %v2684_v62 = vadd.f32 1.0, %v4937_v51 }
0x11bf   :  { %v4939_v53 = vpop.eup %4938  ;;  %4940 = vrcp.f32 %v2684_v62 }
0x11c0   :  { %v2685_v55 = vadd.f32 1.0, %v4939_v53 }
0x11c2   :  { %4942 = vrcp.f32 %v2685_v55 }
0x11c9   :  { %v4941_v8 = vpop.eup %4940 }
0x11ca   :  { %v2710_v61 = vsub.f32 1.0, %v4941_v8  ;;  %v2722_v50 = vmul.f32 %v4941_v8, %v6028_v4 }
0x11cc   :  { %v4943_v16 = vpop.eup %4942 }
0x11cd   :  { %v2711_v47 = vsub.f32 1.0, %v4943_v16  ;;  %v2723_v10 = vmul.f32 %v4943_v16, %v6032_v42 }
0x1229   :  { %v2715_v17 = vpop.permute.xlu0 %2714 }
0x122a   :  { %v2720_v2 = vmul.f32 %v2715_v17, %v2710_v61 }
0x122c   :  { %v6233_v22 = vadd.f32 %v2722_v50, %v2720_v2  ;;  %v2717_v33 = vpop.permute.xlu1 %2716 }
0x122d   :  { %v2721_v54 = vmul.f32 %v2717_v33, %v2711_v47 }
0x122e   :  { %2728 = vrot.lane.b32.xlu0 %v6233_v22, %s5055_s23 }
0x122f   :  { %v6238_v34 = vadd.f32 %v2723_v10, %v2721_v54  ;;  %v2434_v54 = vmul.f32 %v6180_v27, %v6180_v27 }
0x1231   :  { %2730 = vrot.lane.b32.xlu1 %v6238_v34, %s5055_s23 }
0x12a0   :  { %v2729_v14 = vpop.permute.xlu0 %2728 }
0x12a1   :  { %v2734_v13 = vsel %vm111_vm0, %v2729_v14, 0.0  ;;  %v2435_v14 = vmul.f32 %v6185_v41, %v6185_v41 }
0x12a2   :  { %2735 = vadd.xlane.f32.xlu0 %v2734_v13 }
0x12a3   :  { %v2731_v4 = vpop.permute.xlu1 %2730 }
0x12a4   :  { %v2737_v37 = vsel %vm111_vm0, %v2731_v4, 0.0 }
0x12a5   :  { %2738 = vadd.xlane.f32.xlu1 %v2737_v37 }
0x132f   :  { %v2736_v36 = vpop.xlane.xlu0 %2735 }
0x1330   :  { %v2740_v26 = vmul.f32 0.03125, %v2736_v36 }
0x1332   :  { %v2742_v42 = vsub.f32 %v6233_v22, %v2740_v26  ;;  %v2739_v46 = vpop.xlane.xlu1 %2738 }
0x1333   :  { %v2741_v45 = vmul.f32 0.03125, %v2739_v46 }
0x1334   :  { %v2744_v23 = vmul.f32 %v2742_v42, %v2742_v42 }
0x1335   :  { %v2743_v1 = vsub.f32 %v6238_v34, %v2741_v45 }
0x1336   :  { %2748 = vrot.lane.b32.xlu0 %v2744_v23, %s5055_s23 }
0x1337   :  { %v2745_v6 = vmul.f32 %v2743_v1, %v2743_v1 }
0x1339   :  { %2750 = vrot.lane.b32.xlu1 %v2745_v6, %s5055_s23 }
0x13a8   :  { %v2749_v30 = vpop.permute.xlu0 %2748 }
0x13a9   :  { %v2754_v5 = vsel %vm111_vm0, %v2749_v30, 0.0 }
0x13aa   :  { %2755 = vadd.xlane.f32.xlu0 %v2754_v5 }
0x13ab   :  { %v2751_v28 = vpop.permute.xlu1 %2750 }
0x13ac   :  { %v2757_v57 = vsel %vm111_vm0, %v2751_v28, 0.0 }
0x13ad   :  { %2758 = vadd.xlane.f32.xlu1 %v2757_v57 }
0x1437   :  { %v2756_v12 = vpop.xlane.xlu0 %2755 }
0x1438   :  { %v2760_v51 = vmul.f32 0.03125, %v2756_v12 }
0x143a   :  { %v2762_v53 = vadd.f32 1e-05, %v2760_v51  ;;  %v2759_v62 = vpop.xlane.xlu1 %2758 }
0x143b   :  { %v2761_v55 = vmul.f32 0.03125, %v2759_v62 }
0x143c   :  { %4944 = vrsqrt.f32 %v2762_v53 }
0x143d   :  { %v2763_v8 = vadd.f32 1e-05, %v2761_v55 }
0x143f   :  { %4946 = vrsqrt.f32 %v2763_v8 }
0x1446   :  { %v4945_v16 = vpop.eup %4944 }
0x1447   :  { %v2766_v61 = vmul.f32 %v4945_v16, %v2742_v42 }
0x1449   :  { %v4947_v17 = vpop.eup %4946  ;;  %v2768_v50 = vmul.f32 %v2766_v61, %v6048_v38 }
0x144a   :  { %v2767_v2 = vmul.f32 %v4947_v17, %v2743_v1 }
0x144b   :  { %v2770_v47 = vadd.f32 %v2768_v50, %v6050_v39 }
0x144c   :  { %v2769_v33 = vmul.f32 %v2767_v2, %v6048_v38 }
0x144d   :  { %2773 = vrot.lane.b32.xlu0 %v2770_v47, %s5055_s23 }
0x144e   :  { %v2771_v10 = vadd.f32 %v2769_v33, %v6050_v39 }
0x1450   :  { %2848 = vrot.lane.b32.xlu1 %v2771_v10, %s5055_s23 }
0x1451   :  { %2438 = vrot.lane.b32.xlu0 %v2434_v54, %s5053_s29 }
0x1454   :  { %2440 = vrot.lane.b32.xlu1 %v2435_v14, %s5053_s29 }
0x14bf   :  { %v2774_v13 = vpop.permute.xlu0 %2773 }
0x14c0   :  { %4346 = vmatmul.mubr.msk.f32.vlgmr.msra.gmra.mrb[32].mxu0 %vm111_vm0, %v2774_v13 }
0x14c1   :  { %4682 = vmatpush3.bf16.xpose.msk.msra.mxu0 %vm5718_vm5, %v5722_v11  ;;  %4375 = vmatprep.mubr.msk.f32.mxu0 %vm5049_vm1, %v5050_v56 }
0x14c2   :  { %v2849_v38 = vpop.permute.xlu1 %2848  ;;  %4683 = vmatprep.subr.bf16.mxu0 %v5048_v3 }
0x14c3   :  { %v2439_v39 = vpop.permute.xlu0 %2438  ;;  %4357 = vmatmul.mubr.msk.f32.vlgmr.msra.gmra.mrb[32].mxu1 %vm111_vm0, %v2849_v38 }
0x14c4   :  { %v2444_v4 = vsub.f32 %v6180_v27, %v2439_v39  ;;  %4698 = vmatpush3.bf16.xpose.msk.msra.mxu1 %vm5718_vm5, %v5754_v48  ;;  %4394 = vmatprep.mubr.msk.f32.mxu1 %vm5049_vm1, %v5050_v56 }
0x14c5   :  { %4699 = vmatprep.subr.bf16.mxu1 %v5048_v3 }
0x14c6   :  { %v2446_v11 = vmax.f32 %v2444_v4, 0.0  ;;  %v2441_v37 = vpop.permute.xlu1 %2440 }
0x14c7   :  { %v2445_v36 = vsub.f32 %v6185_v41, %v2441_v37 }
0x14c8   :  { %v2448_v26 = vadd.f32 1e-08, %v2446_v11 }
0x14c9   :  { %v2447_v42 = vmax.f32 %v2445_v36, 0.0  ;;  %4686 = vmatpush3.bf16.xpose.msk.msra.mxu0 %vm5718_vm5, %v5698_v0 }
0x14ca   :  { %4948 = vrsqrt.f32 %v2448_v26  ;;  %4687 = vmatprep.subr.bf16.mxu0 %v5048_v3  ;;  %vm2452_vm14 = vcmp.eq.f32.partialorder %v2448_v26, inf  ;;  %v2455_v45 = vand.u32 2147483648, %v2448_v26  ;;  %vm2454_vm15 = vcmp.eq.f32.partialorder %v2448_v26, 0.0 }
0x14cb   :  { %v2449_v46 = vadd.f32 1e-08, %v2447_v42 }
0x14cc   :  { %4702 = vmatpush3.bf16.xpose.msk.msra.mxu1 %vm5718_vm5, %v5782_v9 }
0x14cd   :  { %4950 = vrsqrt.f32 %v2449_v46  ;;  %4703 = vmatprep.subr.bf16.mxu1 %v5048_v3  ;;  %vm2459_vm10 = vcmp.eq.f32.partialorder %v2449_v46, inf  ;;  %vm2461_vm11 = vcmp.eq.f32.partialorder %v2449_v46, 0.0 }
0x14d1   :  { %4690 = vmatpush3.bf16.xpose.msk.msra.mxu0 %vm5718_vm5, %v5730_v52  ;;  %v2462_v52 = vand.u32 2147483648, %v2449_v46 }
0x14d2   :  { %4691 = vmatprep.subr.bf16.mxu0 %v5048_v3 }
0x14d4   :  { %v4949_v48 = vpop.eup %4948  ;;  %4706 = vmatpush3.bf16.xpose.msk.msra.mxu1 %vm5718_vm5, %v5800_v63 }
0x14d5   :  { %v2451_v0 = vmul.f32 %v4949_v48, %v2448_v26  ;;  %4707 = vmatprep.subr.bf16.mxu1 %v5048_v3 }
0x14d7   :  { %v4951_v9 = vpop.eup %4950  ;;  %v2453_v23 = vsel %vm2452_vm14, %v2448_v26, %v2451_v0 }
0x14d8   :  { %v2456_v1 = vsel %vm2454_vm15, %v2455_v45, %v2453_v23  ;;  %v2458_v6 = vmul.f32 %v4951_v9, %v2449_v46 }
0x14d9   :  { %v2922_v30 = vmul.f32 5.0, %v2456_v1  ;;  %4694 = vmatpush3.bf16.xpose.msk.msra.mxu0 %vm5718_vm5, %v5764_v7 }
0x14da   :  { %v2460_v5 = vsel %vm2459_vm10, %v2449_v46, %v2458_v6  ;;  %4711 = vmatprep.subr.bf16.mxu0 %v5048_v3 }
0x14db   :  { %4952 = vrcp.f32 %v2922_v30  ;;  %v2463_v63 = vsel %vm2461_vm11, %v2462_v52, %v2460_v5 }
0x14dc   :  { %v2923_v28 = vmul.f32 5.0, %v2463_v63  ;;  %4710 = vmatpush3.bf16.xpose.msk.msra.mxu1 %vm5718_vm5, %v5819_v15 }
0x14dd   :  { %4723 = vmatprep.subr.bf16.mxu1 %v5048_v3 }
0x14de   :  { %4954 = vrcp.f32 %v2923_v28 }
0x14e5   :  { %v6302_v57 = vpop.eup %4952 }
0x14e6   :  { %2930 = vrot.lane.b32.xlu0 %v6302_v57, %s5057_s5 }
0x14e8   :  { %v6306_v7 = vpop.eup %4954 }
0x14e9   :  { %2932 = vrot.lane.b32.xlu1 %v6306_v7, %s5057_s5 }
0x1558   :  { %v2931_v12 = vpop.permute.xlu0 %2930 }
0x155b   :  { %v2933_v55 = vpop.permute.xlu1 %2932 }
0x1593   :  { %v2843_v51 = vpop.f32.mrb[32].mxu0 }
0x1594   :  { %v2936_v53 = vmul.f32 %v2931_v12, %v2843_v51  ;;  %v4347_v62 = vpop.f32.mrb[33].mxu0 }
0x1596   :  { %v2938_v60 = vmul.f32 %v2936_v53, %v6180_v27  ;;  %v2960_v15 = vsel %vm111_vm0, %v2843_v51, %v2936_v53  ;;  %v2918_v8 = vpop.f32.mrb[32].mxu1 }
0x1597   :  { %v2937_v16 = vmul.f32 %v2933_v55, %v2918_v8  ;;  %v4358_v61 = vpop.f32.mrb[33].mxu1  ;;  %v2962_v17 = vsel %vm1152_vm2, %v2960_v15, %v2936_v53 }
0x1598   :  { %2942 = vrot.lane.b32.xlu0 %v2938_v60, %s5051_s25 }
0x1599   :  { %v2939_v50 = vmul.f32 %v2937_v16, %v6185_v41  ;;  %v2961_v2 = vsel %vm111_vm0, %v2918_v8, %v2937_v16 }
0x159a   :  { %v2963_v47 = vsel %vm1152_vm2, %v2961_v2, %v2937_v16 }
0x159b   :  { %2944 = vrot.lane.b32.xlu1 %v2939_v50, %s5051_s25 }
0x160a   :  { %v2943_v33 = vpop.permute.xlu0 %2942 }
0x160b   :  { %v2948_v10 = vadd.f32 %v2943_v33, %v2938_v60 }
0x160d   :  { %v2950_v54 = vsub.f32 0.0, %v2948_v10  ;;  %v2945_v14 = vpop.permute.xlu1 %2944 }
0x160e   :  { %v2949_v13 = vadd.f32 %v2945_v14, %v2939_v50 }
0x160f   :  { %2954 = vrot.lane.b32.xlu0 %v2950_v54, %s5053_s29 }
0x1610   :  { %v2951_v38 = vsub.f32 0.0, %v2949_v13 }
0x1612   :  { %2956 = vrot.lane.b32.xlu1 %v2951_v38, %s5053_s29 }
0x1681   :  { %v2955_v39 = vpop.permute.xlu0 %2954 }
0x1682   :  { %v2964_v4 = vsel %vm909_vm3, %v2962_v17, %v2955_v39 }
0x1683   :  { %4376 = vmatmul.mubr.msk.f32.vlgmr.msra.gmra.mrb[34].mxu0 %vm1157_vm4, %v2964_v4 }
0x1684   :  { %4713 = vmatpush3.bf16.msra.mxu0 %v5735_v59  ;;  %v2957_v11 = vpop.permute.xlu1 %2956  ;;  %4413 = vmatprep.mubr.msk.f32.mxu0 %vm5049_vm1, %v5050_v56 }
0x1685   :  { %v2965_v37 = vsel %vm909_vm3, %v2963_v47, %v2957_v11  ;;  %4714 = vmatprep.subr.bf16.mxu0 %v5048_v3 }
0x1686   :  { %4395 = vmatmul.mubr.msk.f32.vlgmr.msra.gmra.mrb[34].mxu1 %vm1157_vm4, %v2965_v37 }
0x1687   :  { %4725 = vmatpush3.bf16.msra.mxu1 %v5762_v19  ;;  %4432 = vmatprep.mubr.msk.f32.mxu1 %vm5049_vm1, %v5050_v56 }
0x1688   :  { %4716 = vmatpush3.bf16.msra.mxu0 %v5700_v49  ;;  %4726 = vmatprep.subr.bf16.mxu1 %v5048_v3 }
0x1689   :  { %4717 = vmatprep.subr.bf16.mxu0 %v5048_v3 }
0x168b   :  { %4728 = vmatpush3.bf16.msra.mxu1 %v5787_v18 }
0x168c   :  { %4719 = vmatpush3.bf16.msra.mxu0 %v5737_v20  ;;  %4729 = vmatprep.subr.bf16.mxu1 %v5048_v3 }
0x168d   :  { %4720 = vmatprep.subr.bf16.mxu0 %v5048_v3 }
0x168f   :  { %4731 = vmatpush3.bf16.msra.mxu1 %v5802_v40 }
0x1690   :  { %4722 = vmatpush3.bf16.msra.mxu0 %v5769_v44  ;;  %4732 = vmatprep.subr.bf16.mxu1 %v5048_v3 }
0x1691   :  { %4736 = vmatprep.subr.bf16.mxu0 %v5886_v43 }
0x1693   :  { %4734 = vmatpush3.bf16.msra.mxu1 %v5817_v25 }
0x1694   :  { %4752 = vmatprep.subr.bf16.mxu1 %v5886_v43 }
0x1756   :  { %v3035_v49 = vpop.f32.mrb[34].mxu0 }
0x1757   :  { %v3112_v59 = vsel %vm1352_vm6, %v3035_v49, -inf  ;;  %v4377_v20 = vpop.f32.mrb[35].mxu0 }
0x1758   :  { %v3113_v19 = vrot.slane %v3112_v59, 4 }
0x1759   :  { %v3108_v18 = vpop.f32.mrb[34].mxu1 }
0x175a   :  { %v3114_v36 = vmax.f32 %v3112_v59, %v3113_v19  ;;  %v3119_v26 = vsel %vm1352_vm6, %v3108_v18, -inf  ;;  %v4396_v40 = vpop.f32.mrb[35].mxu1 }
0x175b   :  { %v3120_v42 = vrot.slane %v3119_v26, 4 }
0x175c   :  { %v3115_v44 = vrot.slane %v3114_v36, 2 }
0x175d   :  { %v3121_v46 = vmax.f32 %v3119_v26, %v3120_v42 }
0x175e   :  { %v3116_v3 = vmax.f32 %v3114_v36, %v3115_v44 }
0x175f   :  { %v3122_v48 = vrot.slane %v3121_v46, 2 }
0x1760   :  { %v3117_v0 = vrot.slane %v3116_v3, 1 }
0x1761   :  { %v3123_v45 = vmax.f32 %v3121_v46, %v3122_v48 }
0x1762   :  { %v3118_v25 = vmax.f32 %v3116_v3, %v3117_v0 }
0x1763   :  { %v3124_v9 = vrot.slane %v3123_v45, 1 }
0x1764   :  { %v3126_v43 = vsub.f32 %v3035_v49, %v3118_v25 }
0x1765   :  { %v3125_v23 = vmax.f32 %v3123_v45, %v3124_v9 }
0x1766   :  { %v3128_v1 = vmul.f32 1.442695, %v3126_v43 }
0x1767   :  { %v3127_v6 = vsub.f32 %v3108_v18, %v3125_v23 }
0x1768   :  { %4956 = vpow2.f32 %v3128_v1 }
0x1769   :  { %v3130_v30 = vmul.f32 1.442695, %v3127_v6  ;;  %v5058_v6 = vmov 32  }
0x176a   :  { %4825 = vset.pattern.permute.xlu0 %v5058_v6  ;;  %4826 = vset.pattern.permute.xlu1 %v5058_v6 }
0x176b   :  { %4958 = vpow2.f32 %v3130_v30 }
0x1772   :  { %v4957_v52 = vpop.eup %4956 }
0x1773   :  { %v3132_v5 = vsel %vm1352_vm6, %v4957_v52, 0.0 }
0x1774   :  { %v3133_v63 = vrot.slane %v3132_v5, 4 }
0x1775   :  { %v4959_v28 = vpop.eup %4958 }
0x1776   :  { %v3134_v12 = vadd.f32 %v3133_v63, %v3132_v5  ;;  %v3139_v51 = vsel %vm1352_vm6, %v4959_v28, 0.0 }
0x1777   :  { %v3140_v53 = vrot.slane %v3139_v51, 4 }
0x1778   :  { %v3135_v62 = vrot.slane %v3134_v12, 2 }
0x1779   :  { %v3141_v55 = vadd.f32 %v3140_v53, %v3139_v51 }
0x177a   :  { %v3136_v60 = vadd.f32 %v3135_v62, %v3134_v12 }
0x177b   :  { %v3142_v15 = vrot.slane %v3141_v55, 2 }
0x177c   :  { %v3137_v8 = vrot.slane %v3136_v60, 1 }
0x177d   :  { %v3143_v16 = vadd.f32 %v3142_v15, %v3141_v55 }
0x177e   :  { %v3138_v61 = vadd.f32 %v3137_v8, %v3136_v60 }
0x177f   :  { %v3144_v17 = vrot.slane %v3143_v16, 1 }
0x1780   :  { %4960 = vrcp.f32 %v3138_v61 }
0x1781   :  { %v3145_v50 = vadd.f32 %v3144_v17, %v3143_v16 }
0x1783   :  { %4962 = vrcp.f32 %v3145_v50 }
0x178a   :  { %v4961_v2 = vpop.eup %4960 }
0x178b   :  { %v6348_v47 = vmul.f32 %v4961_v2, %v4957_v52 }
0x178d   :  { %v4963_v33 = vpop.eup %4962  ;;  %v3150_v10 = vadd.f32 1e-08, %v6348_v47 }
0x178e   :  { %v6351_v54 = vmul.f32 %v4963_v33, %v4959_v28 }
0x178f   :  { %v3152_v14 = vsel %vm1352_vm6, %v3150_v10, 0.0 }
0x1790   :  { %3153 = vadd.xlane.f32.xlu0 %v3152_v14  ;;  %v3151_v13 = vadd.f32 1e-08, %v6351_v54 }
0x1792   :  { %v3155_v38 = vsel %vm1352_vm6, %v3151_v13, 0.0 }
0x1793   :  { %3156 = vadd.xlane.f32.xlu1 %v3155_v38 }
0x181d   :  { %v3154_v39 = vpop.xlane.xlu0 %3153 }
0x181e   :  { %4964 = vrcp.f32 %v3154_v39 }
0x1820   :  { %v3157_v4 = vpop.xlane.xlu1 %3156 }
0x1821   :  { %4966 = vrcp.f32 %v3157_v4 }
0x1828   :  { %v4965_v11 = vpop.eup %4964 }
0x1829   :  { %v3162_v37 = vmul.f32 %v4965_v11, %v3150_v10 }
0x182b   :  { %v4967_v49 = vpop.eup %4966  ;;  %4414 = vmatmul.mubr.msk.f32.vlgmr.msra.gmra.mrb[36].mxu0 %vm1352_vm6, %v3162_v37 }
0x182c   :  { %v3163_v59 = vmul.f32 %v4967_v49, %v3151_v13  ;;  %4738 = vmatpush1.bf16.msra.mxu0 %v5902_v21  ;;  %3441 = vmatprep.mubr.f32.mxu0 %v5050_v56 }
0x182d   :  { %4740 = vmatprep.subr.bf16.mxu0 %v5904_v58 }
0x182e   :  { %4433 = vmatmul.mubr.msk.f32.vlgmr.msra.gmra.mrb[36].mxu1 %vm1352_vm6, %v3163_v59 }
0x182f   :  { %4754 = vmatpush1.bf16.msra.mxu1 %v5902_v21  ;;  %3515 = vmatprep.mubr.f32.mxu1 %v5050_v56  ;;  %v4998_v56 = vld [vmem:[%s6532_s7 + $0x88] sm:$0x7]  ;;  %v4999_v21 = vld [vmem:[%s6532_s7 + $0x80] sm:$0x7] }
0x1830   :  { %4742 = vmatpush1.bf16.msra.mxu0 %v5920_v32  ;;  %4756 = vmatprep.subr.bf16.mxu1 %v5904_v58 }
0x1831   :  { %4744 = vmatprep.subr.bf16.mxu0 %v5924_v24 }
0x1833   :  { %4758 = vmatpush1.bf16.msra.mxu1 %v5920_v32 }
0x1834   :  { %4746 = vmatpush1.bf16.msra.mxu0 %v5937_v35  ;;  %4760 = vmatprep.subr.bf16.mxu1 %v5924_v24 }
0x1835   :  { %4748 = vmatprep.subr.bf16.mxu0 %v5953_v29 }
0x1837   :  { %4762 = vmatpush1.bf16.msra.mxu1 %v5937_v35 }
0x1838   :  { %4750 = vmatpush1.bf16.msra.mxu0 %v5958_v31  ;;  %4764 = vmatprep.subr.bf16.mxu1 %v5953_v29 }
0x1839   :  { %3861 = vmatprep.subr.msk.mxu0 %vm1604_vm7, %v4998_v56 }
0x183b   :  { %4766 = vmatpush1.bf16.msra.mxu1 %v5958_v31 }
0x183c   :  { %3862 = vmatpush1.msk.msra.mxu0 %vm1604_vm7, %v4999_v21  ;;  %3864 = vmatprep.subr.msk.mxu1 %vm1604_vm7, %v4998_v56 }
0x183f   :  { %3865 = vmatpush1.msk.msra.mxu1 %vm1604_vm7, %v4999_v21 }
0x18fe   :  { %v6384_v58 = vpop.f32.mrb[36].mxu0 }
0x18ff   :  { %v4415_v32 = vpop.f32.mrb[37].mxu0  ;;  %v3340_v24 = vsub.f32 %v6384_v58, %v6180_v27  ;;  %v3310_v23 = vmul.f32 %v6384_v58, %v6384_v58 }
0x1901   :  { %3344 = vrot.lane.b32.xlu0 %v3340_v24, %s5053_s29  ;;  %v6389_v35 = vpop.f32.mrb[36].mxu1 }
0x1902   :  { %v4434_v29 = vpop.f32.mrb[37].mxu1  ;;  %v3341_v31 = vsub.f32 %v6389_v35, %v6185_v41  ;;  %v3311_v1 = vmul.f32 %v6389_v35, %v6389_v35 }
0x1904   :  { %3346 = vrot.lane.b32.xlu1 %v3341_v31, %s5053_s29 }
0x1973   :  { %v3345_v20 = vpop.permute.xlu0 %3344 }
0x1974   :  { %v3350_v19 = vmul.f32 %v6302_v57, %v3345_v20 }
0x1976   :  { %3354 = vrot.lane.b32.xlu0 %v3350_v19, %s5057_s5  ;;  %v3347_v18 = vpop.permute.xlu1 %3346  ;;  %v5059_v19 = vmov 33  }
0x1977   :  { %v3351_v36 = vmul.f32 %v6306_v7, %v3347_v18 }
0x1979   :  { %3356 = vrot.lane.b32.xlu1 %v3351_v36, %s5057_s5  ;;  %v5060_v36 = vmov 35  }
0x197a   :  { %3360 = vrot.lane.b32.xlu0 %v6233_v22, %s5053_s29 }
0x197d   :  { %3362 = vrot.lane.b32.xlu1 %v6238_v34, %s5053_s29 }
0x19e8   :  { %v3355_v27 = vpop.permute.xlu0 %3354 }
0x19e9   :  { %v3366_v41 = vsel %vm111_vm0, %v6384_v58, %v3355_v27 }
0x19ea   :  { %v3368_v57 = vsel %vm1152_vm2, %v3366_v41, %v3355_v27  ;;  %v5061_v27 = vmov 34  }
0x19eb   :  { %v3357_v26 = vpop.permute.xlu1 %3356 }
0x19ec   :  { %v3367_v40 = vsel %vm111_vm0, %v6389_v35, %v3357_v26  ;;  %v3361_v42 = vpop.permute.xlu0 %3360 }
0x19ed   :  { %v3370_v7 = vsel %vm909_vm3, %v3368_v57, %v3361_v42  ;;  %v3369_v46 = vsel %vm1152_vm2, %v3367_v40, %v3357_v26 }
0x19ee   :  { %v3372_v44 = vsel %vm1597_vm8, %v3370_v7, 1.0 }
0x19ef   :  { %3863 = vmatmul.mubr.msk.f32.vlgmr.msra.gmra.mrb[38].mxu0 %vm1600_vm9, %v3372_v44  ;;  %v3363_v3 = vpop.permute.xlu1 %3362 }
0x19f0   :  { %v3371_v48 = vsel %vm909_vm3, %v3369_v46, %v3363_v3 }
0x19f1   :  { %v3373_v0 = vsel %vm1597_vm8, %v3371_v48, 1.0 }
0x19f2   :  { %3866 = vmatmul.mubr.msk.f32.vlgmr.msra.gmra.mrb[38].mxu1 %vm1600_vm9, %v3373_v0  ;;  %vm3690_vm9 = vcmask 293888  }
0x1ac2   :  { %v6414_v45 = vpop.f32.mrb[38].mxu0 }
0x1ac3   :  { %3524 = vrot.lane.b32.xlu0 %v6414_v45, %s5052_s6  ;;  %v3445_v25 = vpop.f32.mrb[39].mxu0 }
0x1ac5   :  { %v6418_v9 = vpop.f32.mrb[38].mxu1 }
0x1ac6   :  { %3526 = vrot.lane.b32.xlu1 %v6418_v9, %s5052_s6  ;;  %v3519_v43 = vpop.f32.mrb[39].mxu1 }
0x1ac7   :  { %3566 = vrot.lane.b32.xlu0 %v3445_v25, %s5055_s23 }
0x1aca   :  { %3568 = vrot.lane.b32.xlu1 %v3519_v43, %s5055_s23 }
0x1acb   :  { %3314 = vrot.lane.b32.xlu0 %v3310_v23, %s5053_s29 }
0x1ace   :  { %3316 = vrot.lane.b32.xlu1 %v3311_v1, %s5053_s29 }
0x1b35   :  { %v3525_v30 = vpop.permute.xlu0 %3524 }
0x1b36   :  { %v3530_v52 = vadd.f32 %v3525_v30, %v6414_v45 }
0x1b38   :  { %v3867_v5 = vmul.f32 -1.442695, %v3530_v52  ;;  %v3527_v63 = vpop.permute.xlu1 %3526 }
0x1b39   :  { %v3531_v28 = vadd.f32 %v3527_v63, %v6418_v9  ;;  %v3567_v12 = vpop.permute.xlu0 %3566 }
0x1b3a   :  { %4968 = vpow2.f32 %v3867_v5 }
0x1b3b   :  { %v3868_v51 = vmul.f32 -1.442695, %v3531_v28 }
0x1b3c   :  { %v3569_v53 = vpop.permute.xlu1 %3568 }
0x1b3d   :  { %4970 = vpow2.f32 %v3868_v51  ;;  %v3315_v62 = vpop.permute.xlu0 %3314 }
0x1b3e   :  { %v3320_v55 = vsub.f32 %v6384_v58, %v3315_v62 }
0x1b40   :  { %v3322_v60 = vmax.f32 %v3320_v55, 0.0  ;;  %v3317_v15 = vpop.permute.xlu1 %3316 }
0x1b41   :  { %v3321_v8 = vsub.f32 %v6389_v35, %v3317_v15 }
0x1b42   :  { %v3324_v16 = vadd.f32 1e-08, %v3322_v60  ;;  %v3874_v60 = vld [vmem:[%s6527_s2 + $0x3] ss:$0 sm:$0xff] }
0x1b43   :  { %v3323_v61 = vmax.f32 %v3321_v8, 0.0 }
0x1b44   :  { %v4969_v17 = vpop.eup %4968  ;;  %4972 = vrsqrt.f32 %v3324_v16  ;;  %vm3328_vm1 = vcmp.eq.f32.partialorder %v3324_v16, inf  ;;  %v3331_v37 = vand.u32 2147483648, %v3324_v16  ;;  %vm3330_vm5 = vcmp.eq.f32.partialorder %v3324_v16, 0.0 }
0x1b45   :  { %v3538_v50 = vadd.f32 1.0, %v4969_v17  ;;  %v3325_v2 = vadd.f32 1e-08, %v3323_v61  ;;  %v3872_v61 = vld [vmem:[%s6527_s2 + $0x2] ss:$0 sm:$0xff] }
0x1b47   :  { %v4971_v33 = vpop.eup %4970  ;;  %4974 = vrcp.f32 %v3538_v50  ;;  %vm3335_vm7 = vcmp.eq.f32.partialorder %v3325_v2, inf  ;;  %v3338_v29 = vand.u32 2147483648, %v3325_v2  ;;  %vm3337_vm8 = vcmp.eq.f32.partialorder %v3325_v2, 0.0 }
0x1b48   :  { %v3539_v10 = vadd.f32 1.0, %v4971_v33  ;;  %4976 = vrsqrt.f32 %v3325_v2 }
0x1b4a   :  { %4978 = vrcp.f32 %v3539_v10 }
0x1b4e   :  { %v4973_v14 = vpop.eup %4972 }
0x1b4f   :  { %v3327_v13 = vmul.f32 %v4973_v14, %v3324_v16 }
0x1b51   :  { %v4975_v38 = vpop.eup %4974  ;;  %v3329_v39 = vsel %vm3328_vm1, %v3324_v16, %v3327_v13 }
0x1b52   :  { %v4977_v4 = vpop.eup %4976  ;;  %v3572_v11 = vmul.f32 %v4975_v38, %v3567_v12  ;;  %v6434_v59 = vsel %vm3330_vm5, %v3331_v37, %v3329_v39 }
0x1b53   :  { %v3334_v56 = vmul.f32 %v4977_v4, %v3325_v2  ;;  %v3602_v32 = vmul.f32 5.0, %v6434_v59 }
0x1b54   :  { %v4979_v49 = vpop.eup %4978  ;;  %3576 = vrot.lane.b32.xlu0 %v3572_v11, %s5056_s24 }
0x1b55   :  { %v3573_v21 = vmul.f32 %v4979_v49, %v3569_v53  ;;  %v3336_v24 = vsel %vm3335_vm7, %v3325_v2, %v3334_v56  ;;  %4980 = vrcp.f32 %v3602_v32 }
0x1b56   :  { %v6440_v31 = vsel %vm3337_vm8, %v3338_v29, %v3336_v24 }
0x1b57   :  { %3578 = vrot.lane.b32.xlu1 %v3573_v21, %s5056_s24  ;;  %v3603_v20 = vmul.f32 5.0, %v6440_v31 }
0x1b58   :  { %3546 = vrot.lane.b32.xlu0 %v3445_v25, %s5052_s6 }
0x1b59   :  { %4982 = vrcp.f32 %v3603_v20 }
0x1b5b   :  { %3548 = vrot.lane.b32.xlu1 %v3519_v43, %s5052_s6 }
0x1b5c   :  { %3618 = vperm.xlu0 %4825, %v6384_v58  }
0x1b5f   :  { %3623 = vperm.xlu1 %4826, %v6389_v35   ;;  %v4981_v18 = vpop.eup %4980 }
0x1b60   :  { %4828 = vset.pattern.permute.xlu0 %v5059_v19 }
0x1b61   :  { %3655 = vperm.xlu0 %4828, %v6389_v35  }
0x1b63   :  { %4827 = vset.pattern.permute.xlu1 %v5059_v19  ;;  %v4983_v41 = vpop.eup %4982 }
0x1b64   :  { %3651 = vperm.xlu1 %4827, %v6384_v58  }
0x1b65   :  { %4830 = vset.pattern.permute.xlu0 %v5060_v36 }
0x1b66   :  { %3661 = vperm.xlu0 %4830, %v4981_v18  }
0x1b68   :  { %4829 = vset.pattern.permute.xlu1 %v5061_v27 }
0x1b69   :  { %3630 = vperm.xlu1 %4829, %v4981_v18  }
0x1b6d   :  { %3635 = vperm.xlu1 %4829, %v4983_v41  }
0x1b71   :  { %4831 = vset.pattern.permute.xlu1 %v5060_v36 }
0x1b72   :  { %3665 = vperm.xlu1 %4831, %v4983_v41  }
0x1bc6   :  { %v3577_v26 = vpop.permute.xlu0 %3576 }
0x1bc7   :  { %v3582_v57 = vadd.f32 %v3577_v26, %v6414_v45 }
0x1bc9   :  { %4984 = vtanh.f32 %v3582_v57  ;;  %v3579_v40 = vpop.permute.xlu1 %3578 }
0x1bca   :  { %v3583_v42 = vadd.f32 %v3579_v40, %v6418_v9  ;;  %v3547_v46 = vpop.permute.xlu0 %3546 }
0x1bcb   :  { %v3552_v3 = vadd.f32 %v3547_v46, %v6414_v45  ;;  %v3871_v45 = vld [vmem:[%s6527_s2] ss:$0 sm:$0xff] }
0x1bcc   :  { %4986 = vtanh.f32 %v3583_v42 }
0x1bcd   :  { %v3549_v48 = vpop.permute.xlu1 %3548  ;;  %v3869_v25 = vmul.f32 -1.442695, %v3552_v3 }
0x1bce   :  { %v3553_v0 = vadd.f32 %v3549_v48, %v6418_v9  ;;  %v3873_v9 = vld [vmem:[%s6527_s2 + $0x1] ss:$0 sm:$0xff]  ;;  %s5062_s2 = smov [#allocation2]  }
0x1bcf   :  { %4988 = vpow2.f32 %v3869_v25  ;;  %s3712_s14 = sshll.u32 %s5062_s2, 4  ;;  %s3713_s14 = int_to_ptr.vmem [resolvable:$true] %s3712_s14 }
0x1bd0   :  { %v3870_v43 = vmul.f32 -1.442695, %v3553_v0  ;;  %s5000_s16 = scalar_lea.vmem %s3713_s14, 256  ;;  %p5005_p1 = scmp.lt.s32.totalorder %s3713_s14, %s3713_s14 }
0x1bd1   :  { %p5001_p0 = scmp.ne.s32.totalorder %s3713_s14, %s5000_s16  ;;  %p5006_p2 = scmp.lt.s32.totalorder %s5000_s16, %s5000_s16 }
0x1bd2   :  { %4990 = vpow2.f32 %v3870_v43 }
0x1bd3   :  { %v4985_v7 = vpop.eup %4984  ;;  %p5007_p3 = por %p5006_p2, %p5005_p1 }
0x1bd4   :  { %3590 = vrot.lane.b32.xlu1 %v4985_v7, %s5055_s23 }
0x1bd5   :  { %p5008_p4 = pnand %p5007_p3, %p5001_p0 }
0x1bd6   :  { %v4987_v44 = vpop.eup %4986 }
0x1bd7   :  { %3592 = vrot.lane.b32.xlu0 %v4987_v44, %s5055_s23 }
0x1bd9   :  { %v4989_v6 = vpop.eup %4988 }
0x1bda   :  { %v3560_v52 = vadd.f32 1.0, %v4989_v6 }
0x1bdb   :  { %v3619_v28 = vpop.permute.xlu0 %3618 }
0x1bdc   :  { %v4991_v30 = vpop.eup %4990  ;;  %4992 = vrcp.f32 %v3560_v52  ;;  %v3626_v55 = vsub.f32 %v3871_v45, %v3619_v28 }
0x1bdd   :  { %v3561_v63 = vadd.f32 1.0, %v4991_v30 }
0x1bde   :  { %v3624_v23 = vpop.permute.xlu1 %3623 }
0x1bdf   :  { %4994 = vrcp.f32 %v3561_v63  ;;  %v3627_v38 = vsub.f32 %v3872_v61, %v3624_v23 }
0x1be0   :  { %v3656_v51 = vpop.permute.xlu0 %3655 }
0x1be1   :  { %v3659_v2 = vsub.f32 %v3874_v60, %v3656_v51 }
0x1be3   :  { %v3652_v1 = vpop.permute.xlu1 %3651 }
0x1be4   :  { %v3658_v15 = vsub.f32 %v3873_v9, %v3652_v1 }
0x1be5   :  { %v3662_v8 = vpop.permute.xlu0 %3661 }
0x1be6   :  { %v4993_v53 = vpop.eup %4992  ;;  %v3668_v10 = vmul.f32 %v3662_v8, %v3658_v15 }
0x1be7   :  { %v3586_v50 = vsub.f32 1.0, %v4993_v53  ;;  %v3598_v13 = vmul.f32 %v4993_v53, %v6233_v22 }
0x1be8   :  { %v3631_v5 = vpop.permute.xlu1 %3630  ;;  %v3670_v24 = vand.u32 2147483647, %v3668_v10 }
0x1be9   :  { %v4995_v16 = vpop.eup %4994  ;;  %v3638_v17 = vmul.f32 %v3631_v5, %v3626_v55 }
0x1bea   :  { %v3587_v4 = vsub.f32 1.0, %v4995_v16  ;;  %v3599_v21 = vmul.f32 %v4995_v16, %v6238_v34 }
0x1beb   :  { %v3640_v11 = vand.u32 2147483647, %v3638_v17 }
0x1bec   :  { %v3636_v12 = vpop.permute.xlu1 %3635 }
0x1bed   :  { %v3639_v56 = vmul.f32 %v3636_v12, %v3627_v38  ;;  %v3672_v19 = vadd.f32 %v3670_v24, %v3640_v11 }
0x1bef   :  { %v3641_v18 = vand.u32 2147483647, %v3639_v56 }
0x1bf1   :  { %v3666_v62 = vpop.permute.xlu1 %3665 }
0x1bf2   :  { %v3669_v39 = vmul.f32 %v3666_v62, %v3659_v2 }
0x1bf4   :  { %v3671_v29 = vand.u32 2147483647, %v3669_v39 }
0x1bf6   :  { %v3673_v22 = vadd.f32 %v3671_v29, %v3641_v18 }
0x1c46   :  { %v3591_v33 = vpop.permute.xlu1 %3590 }
0x1c47   :  { %v3596_v14 = vmul.f32 %v3591_v33, %v3586_v50 }
0x1c49   :  { %v3600_v37 = vadd.f32 %v3598_v13, %v3596_v14  ;;  %v3593_v49 = vpop.permute.xlu0 %3592 }
0x1c4a   :  { %v3597_v32 = vmul.f32 %v3593_v49, %v3587_v4 }
0x1c4b   :  { %3676 = vrot.lane.b32.xlu1 %v3600_v37, %s5055_s23 }
0x1c4c   :  { %v3601_v20 = vadd.f32 %v3599_v21, %v3597_v32 }
0x1c4e   :  { %3678 = vrot.lane.b32.xlu0 %v3601_v20, %s5055_s23 }
0x1c4f   :  { %3697 = vrot.lane.b32.xlu1 %v3672_v19, %s5056_s24 }
0x1c52   :  { %3699 = vrot.lane.b32.xlu0 %v3673_v22, %s5056_s24 }
0x1cbd   :  { %v3677_v36 = vpop.permute.xlu1 %3676 }
0x1cbe   :  { %v3682_v27 = vsel %vm111_vm0, %v3677_v36, %v6384_v58 }
0x1cbf   :  { %v3684_v34 = vsel %vm1152_vm2, %v3682_v27, %v6384_v58 }
0x1cc0   :  { %v3686_v41 = vsel %vm909_vm3, %v3684_v34, %v6434_v59  ;;  %v3679_v26 = vpop.permute.xlu0 %3678 }
0x1cc1   :  { %v3698_v57 = vpop.permute.xlu1 %3697  ;;  %v3683_v40 = vsel %vm111_vm0, %v3679_v26, %v6389_v35  ;;  %v3688_v42 = vsel %vm1157_vm4, %v3686_v41, %v6434_v59 }
0x1cc2   :  { %v3703_v7 = vsel %vm1352_vm6, %v6348_v47, %v3698_v57  ;;  %v3685_v58 = vsel %vm1152_vm2, %v3683_v40, %v6389_v35  ;;  %v3691_v44 = vsel %vm3690_vm9, %v3688_v42, 0.0 }
0x1cc3   :  { %3705 = vst [vmem:[#allocation4] sm:$0xff] %v3703_v7  ;;  %v3687_v46 = vsel %vm909_vm3, %v3685_v58, %v6440_v31  ;;  %3693 = vst [vmem:[#allocation2] sm:$0xff] %v3691_v44 }
0x1cc4   :  { %v3700_v3 = vpop.permute.xlu0 %3699  ;;  %v3689_v59 = vsel %vm1157_vm4, %v3687_v46, %v6440_v31 }
0x1cc5   :  { %v3704_v47 = vsel %vm1352_vm6, %v6351_v54, %v3700_v3  ;;  %v3692_v48 = vsel %vm3690_vm9, %v3689_v59, 0.0 }
0x1cc6   :  { %3706 = vst [vmem:[#allocation4 + $0x8] sm:$0xff] %v3704_v47  ;;  %3694 = vst [vmem:[#allocation2 + $0x8] sm:$0xff] %v3692_v48 }
0x1cc7   :  { %5011 = shalt.err (!%p5008_p4)
}
0x1cc8   :  { %s5012_s4 = scalar_lea.hbm %s6535_s10, 256 }
0x1cc9   :  { %p5013_p5 = scmp.ne.s32.totalorder %s6535_s10, %s5012_s4  ;;  %p5016_p6 = scmp.lt.u32.totalorder %s5012_s4, %s6535_s10 }
0x1ccb   :  { %p5018_p7 = pnand %p5016_p6, %p5013_p5 }
0x1ccd   :  { %5021 = shalt.err (!%p5018_p7)
}
0x1cce   :  { %s5064_s9 = smov 128   ;;  %s5065_s22 = smov 8  }
0x1ccf   :  { %3718 = dma.vmem_to_hbm [thread:$0]  %s3713_s14, 256, %s6535_s10, [#allocation3], %s5064_s9, %s5064_s9, %s5065_s22  }
0x1cd0   :  { %s5022_s5 = scalar_lea.vmem %s6494_s15, 256  ;;  %p5027_p9 = scmp.lt.s32.totalorder %s6494_s15, %s6494_s15 }
0x1cd1   :  { %p5023_p8 = scmp.ne.s32.totalorder %s6494_s15, %s5022_s5  ;;  %p5028_p10 = scmp.lt.s32.totalorder %s5022_s5, %s5022_s5 }
0x1cd3   :  { %p5029_p11 = por %p5028_p10, %p5027_p9 }
0x1cd5   :  { %p5030_p12 = pnand %p5029_p11, %p5023_p8 }
0x1cd7   :  { %5033 = shalt.err (!%p5030_p12)
}
0x1cd8   :  { %s5034_s27 = scalar_lea.hbm %s6536_s11, 256 }
0x1cd9   :  { %p5035_p13 = scmp.ne.s32.totalorder %s6536_s11, %s5034_s27  ;;  %p5038_p0 = scmp.lt.u32.totalorder %s5034_s27, %s6536_s11 }
0x1cdb   :  { %p5040_p1 = pnand %p5038_p0, %p5035_p13 }
0x1cdd   :  { %5043 = shalt.err (!%p5040_p1)
}
0x1cde   :  { %3730 = dma.vmem_to_hbm [thread:$0]  %s6494_s15, 256, %s6536_s11, [#allocation5], %s5064_s9, %s5064_s9, %s5065_s22  }
0x1cdf   :  { %5044 = dma.done.wait [#allocation3], 256  }
0x1ce0   :  { %5045 = vsyncadd [#allocation3], 4294967040 }
0x1ce1   :  { %5046 = dma.done.wait [#allocation5], 256  }
0x1ce2   :  { %5047 = vsyncadd [#allocation5], 4294967040 }
0x1ce3   :  { %3737 = vsyncpa [#allocation3], 1 }
0x1ce4   :  { %3738 = vsyncpa [#allocation5], 1 }

</bundles_post_ra>
